<compile_context>
chip_gen: v7x
topology: tpu7x:2x2x1
jax: 0.10.0
libtpu: 0.0.40
codegen_flags: <defaults>
</compile_context>

<pallas_src>
import math
import functools

import numpy as np
import jax
import jax.numpy as jnp
from jax.experimental import pallas as pl
from jax.experimental.pallas import tpu as pltpu

LN_EPS = 1e-5


# ---------------------------------------------------------------------------
# in-kernel math helpers (f32 vector math)
# ---------------------------------------------------------------------------
def _layernorm(x, g, b):
    mu = jnp.mean(x, axis=-1, keepdims=True)
    var = jnp.mean(jnp.square(x - mu), axis=-1, keepdims=True)
    return (x - mu) * jax.lax.rsqrt(var + LN_EPS) * g + b


def _gelu_exact(x):
    # matches torch.nn.functional.gelu (erf form). tanh-approx would move more
    # work onto the EUP but changes numerics; keep exact for the f32 check.
    return 0.5 * x * (1.0 + jax.lax.erf(x * (1.0 / math.sqrt(2.0))))


def _softmax_lastdim(x):
    m = jnp.max(x, axis=-1, keepdims=True)
    e = jnp.exp(x - m)
    # approx=True would push the divide fully onto the idle EUP slot at a small
    # accuracy cost; keep exact so the f32 reference matches at 1e-4.
    return e * pl.reciprocal(jnp.sum(e, axis=-1, keepdims=True), approx=False)


def _proj(x_rows, w_ref, b_ref):
    # rows are flattened (Bblk*N, in) so the MXU sees a large M dimension.
    # matmul inputs in the weight storage dtype (f32 or bf16), f32 accumulation.
    w = w_ref[...]
    y = jnp.dot(x_rows.astype(w.dtype), w, preferred_element_type=jnp.float32)
    return y + b_ref[...].astype(jnp.float32)


# ---------------------------------------------------------------------------
# Fused QFormer layer kernel (one batch block per grid step)
# ---------------------------------------------------------------------------
def _qformer_kernel(num_heads, has_mask, *refs):
    refs = list(refs)
    q_ref = refs.pop(0)
    enc_ref = refs.pop(0)
    mask_ref = refs.pop(0) if has_mask else None
    (g1_ref, b1_ref, g2_ref, b2_ref, g3_ref, b3_ref,
     sa_wqkv, sa_bqkv, sa_wo, sa_bo,
     ca_wq, ca_bq, ca_wkv, ca_bkv, ca_wo, ca_bo,
     mlp_w1, mlp_b1, mlp_w2, mlp_b2,
     out_ref, probs_ref) = refs

    Bblk, Nq, C = q_ref.shape
    _, Nk, Ckv = enc_ref.shape
    H = num_heads
    hd = C // H
    scale = 1.0 / math.sqrt(hd)
    cdt = sa_wqkv.dtype          # matmul compute dtype == weight storage dtype
    rows = Bblk * Nq

    def ln(x, g_ref, b_ref):
        # elementwise path stays f32 (v5e VPU/EUP have no bf16)
        return _layernorm(x, g_ref[...].astype(jnp.float32),
                          b_ref[...].astype(jnp.float32))

    def attention(q, k, v, mask, probs_dst):
        # q: (Bblk,Nq,C), k/v: (Bblk,n_kv,C), already cast once to cdt.
        # NOTE: a single bulk pre-transpose of k to (Bblk,C,n_kv) is an option
        # if a bundle dump shows the per-head 'bqd,bkd->bqk' contractions make
        # the XLU the binding slot; kept as-is pending a profile.
        heads = []
        for h in range(H):                       # small static loop, unrolled
            sl = slice(h * hd, (h + 1) * hd)
            s = jnp.einsum('bqd,bkd->bqk', q[:, :, sl], k[:, :, sl],
                           preferred_element_type=jnp.float32) * scale
            if mask is not None:
                s = s + mask
            p = _softmax_lastdim(s)              # (Bblk, Nq, n_kv) f32
            if probs_dst is not None:
                # streamed, lane-dense per-head store: kernel emits the final
                # (B,H,Nq,Nk) layout directly (no wrapper transpose pass).
                probs_dst[:, h] = p.astype(probs_dst.dtype)
            heads.append(jnp.einsum('bqk,bkd->bqd', p.astype(cdt), v[:, :, sl],
                                    preferred_element_type=jnp.float32))
        # assemble all heads, then ONE full-depth (rows,C)@(C,C) out-projection
        return jnp.concatenate(heads, axis=-1).reshape(rows, C)

    # residual stream, flattened to (Bblk*Nq, C) rows, resident for the layer
    x = q_ref[...].astype(jnp.float32).reshape(rows, C)

    # ---- self-attention block: x = x + MHA(LN1(x), LN1(x), LN1(x)) ----
    xn = ln(x, g1_ref, b1_ref)
    qkv = _proj(xn, sa_wqkv, sa_bqkv)            # fused QKV: (rows, 3C) f32
    q = qkv[:, :C].reshape(Bblk, Nq, C).astype(cdt)          # cast once
    k = qkv[:, C:2 * C].reshape(Bblk, Nq, C).astype(cdt)
    v = qkv[:, 2 * C:].reshape(Bblk, Nq, C).astype(cdt)
    x = x + _proj(attention(q, k, v, None, None), sa_wo, sa_bo)

    # ---- cross-attention block: x = x + MHA(LN1(x), LN2(enc), LN2(enc), mask)
    xn = ln(x, g1_ref, b1_ref)
    ekv = enc_ref[...].astype(jnp.float32).reshape(Bblk * Nk, Ckv)
    kvn = ln(ekv, g2_ref, b2_ref)
    qx = _proj(xn, ca_wq, ca_bq).reshape(Bblk, Nq, C).astype(cdt)
    kv = _proj(kvn, ca_wkv, ca_bkv)              # fused K/V: (Bblk*Nk, 2C) f32
    kx = kv[:, :C].reshape(Bblk, Nk, C).astype(cdt)
    vx = kv[:, C:].reshape(Bblk, Nk, C).astype(cdt)
    mask = mask_ref[...].astype(jnp.float32) if mask_ref is not None else None
    x = x + _proj(attention(qx, kx, vx, mask, probs_ref), ca_wo, ca_bo)

    # ---- MLP block: x = x + fc2(gelu(fc1(LN3(x)))) ----
    xn = ln(x, g3_ref, b3_ref)
    hmid = _gelu_exact(_proj(xn, mlp_w1, mlp_b1))
    x = x + _proj(hmid, mlp_w2, mlp_b2)

    out_ref[...] = x.reshape(Bblk, Nq, C).astype(out_ref.dtype)


# ---------------------------------------------------------------------------
# Wrapper
# ---------------------------------------------------------------------------
def qformer_layer_forward(params, query, encoder_hidden_states,
                          attention_mask=None, block_rows=256,
                          probs_dtype=jnp.float32):
    """Fused QFormer layer. Weights are used in their storage dtype (f32/bf16)
    with f32 accumulation. block_rows ~256 default; raise toward 512-1024 on
    v6e (128 MiB VMEM) when B allows — do NOT carry that to v7x (64 MiB).
    probs_dtype=bf16 halves the largest HBM write if the caller tolerates it."""
    B, Nq, C = query.shape
    _, Nk, Ckv = encoder_hidden_states.shape
    H = params["num_heads"]
    has_mask = attention_mask is not None

    # pack QKV / KV weights (one-time, wrapper-side): full-depth MXU launches
    sa_wqkv = jnp.concatenate([params["sa_wq"], params["sa_wk"], params["sa_wv"]], axis=1)
    sa_bqkv = jnp.concatenate([params["sa_bq"], params["sa_bk"], params["sa_bv"]], axis=1)
    ca_wkv = jnp.concatenate([params["ca_wk"], params["ca_wv"]], axis=1)
    ca_bkv = jnp.concatenate([params["ca_bk"], params["ca_bv"]], axis=1)

    # Batch-block size: target ~block_rows flattened rows per grid step for a
    # large MXU M-dim, but keep >=2 grid steps when B allows so v7x's two
    # TensorCores both get work. Must divide B.
    bb = max(1, min(B, block_rows // max(Nq, 1)))
    bb = min(bb, max(1, B // 2))
    while B % bb:
        bb -= 1
    nb = B // bb

    tensor_inputs = [query, encoder_hidden_states]
    if has_mask:
        tensor_inputs.append(attention_mask)
    const_inputs = [
        params["ln1_g"], params["ln1_b"], params["ln2_g"], params["ln2_b"],
        params["ln3_g"], params["ln3_b"],
        sa_wqkv, sa_bqkv, params["sa_wo"], params["sa_bo"],
        params["ca_wq"], params["ca_bq"], ca_wkv, ca_bkv,
        params["ca_wo"], params["ca_bo"],
        params["mlp_w1"], params["mlp_b1"], params["mlp_w2"], params["mlp_b2"],
    ]

    const_bytes = sum(int(a.size) * a.dtype.itemsize for a in const_inputs)
    io_bytes = ((bb * Nq * C + bb * Nk * Ckv + (bb * Nq * Nk if has_mask else 0)
                 + bb * Nq * C) * 4
                + bb * H * Nq * Nk * np.dtype(probs_dtype).itemsize)

    out_shape = (jax.ShapeDtypeStruct((B, Nq, C), jnp.float32),
                 jax.ShapeDtypeStruct((B, H, Nq, Nk), probs_dtype))

    def run(single_buffer_weights):
        def wspec(shape):
            # grid-invariant weight blocks: single-buffered (double-buffering
            # an invariant block doubles VMEM for nothing).
            if single_buffer_weights:
                return pl.BlockSpec(shape, lambda b: (0,) * len(shape),
                                    pipeline_mode=pl.Buffered(1))
            return pl.BlockSpec(shape, lambda b: (0,) * len(shape))

        in_specs = [pl.BlockSpec((bb, Nq, C), lambda b: (b, 0, 0)),
                    pl.BlockSpec((bb, Nk, Ckv), lambda b: (b, 0, 0))]
        if has_mask:
            in_specs.append(pl.BlockSpec((bb, Nq, Nk), lambda b: (b, 0, 0)))
        in_specs += [wspec(tuple(a.shape)) for a in const_inputs]

        # scoped VMEM limit sized from the real footprint: weights (x1 or x2
        # depending on buffering) + double-buffered activation blocks + slack
        # for in-kernel intermediates. Default limits (16/32 MiB) are too small
        # at production QFormer sizes.
        weight_factor = 1 if single_buffer_weights else 2
        vmem_limit = weight_factor * const_bytes + 6 * io_bytes + (8 << 20)
        vmem_limit = int(min(max(vmem_limit, 32 << 20), 128 << 20))

        return pl.pallas_call(
            functools.partial(_qformer_kernel, H, has_mask),
            out_shape=out_shape,
            grid=(nb,),
            in_specs=in_specs,
            out_specs=[pl.BlockSpec((bb, Nq, C), lambda b: (b, 0, 0)),
                       pl.BlockSpec((bb, H, Nq, Nk), lambda b: (b, 0, 0, 0))],
            compiler_params=pltpu.CompilerParams(
                dimension_semantics=("parallel",),
                vmem_limit_bytes=vmem_limit),
        )(*tensor_inputs, *const_inputs)

    try:
        out, attn_map = run(True)
    except Exception:
        # TODO(synk): this jax build rejected BlockSpec pipeline_mode
        # (pl.Buffered(1)); fall back to default double-buffered weight blocks.
        out, attn_map = run(False)

    return out, attn_map


# ---------------------------------------------------------------------------
# Pure-JAX reference (mirrors the PyTorch forward, dropout = identity)
# ---------------------------------------------------------------------------
def _ref_ln(x, g, b):
    mu = jnp.mean(x, axis=-1, keepdims=True)
    var = jnp.mean(jnp.square(x - mu), axis=-1, keepdims=True)
    return (x - mu) / jnp.sqrt(var + LN_EPS) * g + b


def _ref_mha(xq, xkv, wq, bq, wk, bk, wv, bv, wo, bo, H, mask=None):
    B, Nq, C = xq.shape
    Nk = xkv.shape[1]
    hd = C // H
    q = (xq @ wq + bq).reshape(B, Nq, H, hd).transpose(0, 2, 1, 3)
    k = (xkv @ wk + bk).reshape(B, Nk, H, hd).transpose(0, 2, 1, 3)
    v = (xkv @ wv + bv).reshape(B, Nk, H, hd).transpose(0, 2, 1, 3)
    s = jnp.einsum("bhqd,bhkd->bhqk", q, k) / math.sqrt(hd)
    if mask is not None:
        s = s + mask[:, None]
    p = jax.nn.softmax(s, axis=-1)
    o = jnp.einsum("bhqk,bhkd->bhqd", p, v).transpose(0, 2, 1, 3).reshape(B, Nq, C)
    return o @ wo + bo, p


def _ref_forward(params, query, enc, mask):
    H = params["num_heads"]
    ln1 = lambda x: _ref_ln(x, params["ln1_g"], params["ln1_b"])
    xn = ln1(query)
    sa, _ = _ref_mha(xn, xn, params["sa_wq"], params["sa_bq"], params["sa_wk"],
                     params["sa_bk"], params["sa_wv"], params["sa_bv"],
                     params["sa_wo"], params["sa_bo"], H)
    query = query + sa
    nq = ln1(query)
    nkv = _ref_ln(enc, params["ln2_g"], params["ln2_b"])
    ca, attn = _ref_mha(nq, nkv, params["ca_wq"], params["ca_bq"], params["ca_wk"],
                        params["ca_bk"], params["ca_wv"], params["ca_bv"],
                        params["ca_wo"], params["ca_bo"], H, mask)
    query = query + ca
    n3 = _ref_ln(query, params["ln3_g"], params["ln3_b"])
    h = jax.nn.gelu(n3 @ params["mlp_w1"] + params["mlp_b1"], approximate=False)
    query = query + (h @ params["mlp_w2"] + params["mlp_b2"])
    return query, attn


# ---------------------------------------------------------------------------
# Deterministic parameter init + driver
# ---------------------------------------------------------------------------
def _init_params(key, dim, num_heads, kv_dim, mlp_ratio):
    inter = int(dim * mlp_ratio)
    keys = jax.random.split(key, 32)
    ki = iter(keys)
    n = lambda shape, s=0.05: s * jax.random.normal(next(ki), shape, jnp.float32)
    p = {"num_heads": num_heads}
    p["ln1_g"] = 1.0 + n((1, dim)); p["ln1_b"] = n((1, dim))
    p["ln2_g"] = 1.0 + n((1, kv_dim)); p["ln2_b"] = n((1, kv_dim))
    p["ln3_g"] = 1.0 + n((1, dim)); p["ln3_b"] = n((1, dim))
    for nm in ("wq", "wk", "wv", "wo"):
        p[f"sa_{nm}"] = n((dim, dim))
        p[f"sa_b{nm[-1]}"] = n((1, dim))
    p["ca_wq"] = n((dim, dim)); p["ca_bq"] = n((1, dim))
    p["ca_wk"] = n((kv_dim, dim)); p["ca_bk"] = n((1, dim))
    p["ca_wv"] = n((kv_dim, dim)); p["ca_bv"] = n((1, dim))
    p["ca_wo"] = n((dim, dim)); p["ca_bo"] = n((1, dim))
    p["mlp_w1"] = n((dim, inter)); p["mlp_b1"] = n((1, inter))
    p["mlp_w2"] = n((inter, dim)); p["mlp_b2"] = n((1, dim))
    return p


if __name__ == "__main__":
    B, Nq, Nk = 2, 8, 16
    dim, num_heads, kv_dim, mlp_ratio = 32, 4, 48, 4.0

    root = jax.random.PRNGKey(0)
    kp, kq, ke, km = jax.random.split(root, 4)

    params = _init_params(kp, dim, num_heads, kv_dim, mlp_ratio)
    query = jax.random.normal(kq, (B, Nq, dim), jnp.float32)
    enc = jax.random.normal(ke, (B, Nk, kv_dim), jnp.float32)
    # additive attention mask (0 = keep, -1e9 = masked), broadcast over heads
    mask = jnp.where(jax.random.bernoulli(km, 0.2, (B, Nq, Nk)), -1e9, 0.0).astype(jnp.float32)

    # TODO(synk): dropout (p=0.1) is treated as identity (eval-mode); no RNG dropout in kernel.

    # ---- f32 weight storage: bit-comparable to the f32 reference ----
    out, attn_map = qformer_layer_forward(params, query, enc, mask)
    out = jax.block_until_ready(out)
    attn_map = jax.block_until_ready(attn_map)
    ref_out, ref_attn = _ref_forward(params, query, enc, mask)
    assert out.shape == (B, Nq, dim) and attn_map.shape == (B, num_heads, Nq, Nk)
    assert jnp.allclose(out, ref_out, rtol=1e-4, atol=1e-4), "f32 query output mismatch"
    assert jnp.allclose(attn_map, ref_attn, rtol=1e-4, atol=1e-4), "f32 attention map mismatch"

    # ---- bf16 weight storage (production config): halves weight HBM/VMEM and
    # engages the bf16 MXU on v5e/v6e/v7x; f32 accumulation + f32 elementwise.
    # Tolerance is loosened (bf16 activations/weights at the matmul inputs).
    # TODO(synk): on v7x, fp8 weight storage would halve HBM bytes again.
    params_bf16 = {k: (v if k == "num_heads" else v.astype(jnp.bfloat16))
                   for k, v in params.items()}
    out16, attn16 = qformer_layer_forward(params_bf16, query, enc, mask)
    out16 = jax.block_until_ready(out16)
    attn16 = jax.block_until_ready(attn16)
    params_bf16_as_f32 = {k: (v if k == "num_heads" else v.astype(jnp.float32))
                          for k, v in params_bf16.items()}
    ref16_out, ref16_attn = _ref_forward(params_bf16_as_f32, query, enc, mask)
    assert jnp.allclose(out16, ref16_out, rtol=2e-2, atol=2e-2), "bf16 query output mismatch"
    assert jnp.allclose(attn16, ref16_attn, rtol=2e-2, atol=2e-2), "bf16 attention map mismatch"

    print("KERNEL_OK")
</pallas_src>

<mosaic_0001>
module attributes {stable_mosaic.version = 11 : i64} {
  func.func @_qformer_kernel(%arg0: i32, %arg1: memref<1x8x32xf32, #tpu.memory_space<vmem>>, %arg2: memref<1x16x48xf32, #tpu.memory_space<vmem>>, %arg3: memref<1x8x16xf32, #tpu.memory_space<vmem>>, %arg4: memref<1x32xf32, #tpu.memory_space<vmem>>, %arg5: memref<1x32xf32, #tpu.memory_space<vmem>>, %arg6: memref<1x48xf32, #tpu.memory_space<vmem>>, %arg7: memref<1x48xf32, #tpu.memory_space<vmem>>, %arg8: memref<1x32xf32, #tpu.memory_space<vmem>>, %arg9: memref<1x32xf32, #tpu.memory_space<vmem>>, %arg10: memref<32x96xf32, #tpu.memory_space<vmem>>, %arg11: memref<1x96xf32, #tpu.memory_space<vmem>>, %arg12: memref<32x32xf32, #tpu.memory_space<vmem>>, %arg13: memref<1x32xf32, #tpu.memory_space<vmem>>, %arg14: memref<32x32xf32, #tpu.memory_space<vmem>>, %arg15: memref<1x32xf32, #tpu.memory_space<vmem>>, %arg16: memref<48x64xf32, #tpu.memory_space<vmem>>, %arg17: memref<1x64xf32, #tpu.memory_space<vmem>>, %arg18: memref<32x32xf32, #tpu.memory_space<vmem>>, %arg19: memref<1x32xf32, #tpu.memory_space<vmem>>, %arg20: memref<32x128xf32, #tpu.memory_space<vmem>>, %arg21: memref<1x128xf32, #tpu.memory_space<vmem>>, %arg22: memref<128x32xf32, #tpu.memory_space<vmem>>, %arg23: memref<1x32xf32, #tpu.memory_space<vmem>>, %arg24: memref<1x8x32xf32, #tpu.memory_space<vmem>>, %arg25: memref<1x4x8x16xf32, #tpu.memory_space<vmem>>) attributes {dimension_semantics = [#tpu.dimension_semantics<parallel>], iteration_bounds = array<i64: 2>, scalar_prefetch = 0 : i64, scratch_operands = 0 : i64, tpu.core_type = #tpu.core_type<tc>, window_params = [{transform_indices = @transform_0, window_bounds = array<i64: 1, 8, 32>}, {transform_indices = @transform_1, window_bounds = array<i64: 1, 16, 48>}, {transform_indices = @transform_2, window_bounds = array<i64: 1, 8, 16>}, {pipeline_mode = #tpu.pipeline_mode<synchronous>, transform_indices = @transform_3, window_bounds = array<i64: 1, 32>}, {pipeline_mode = #tpu.pipeline_mode<synchronous>, transform_indices = @transform_4, window_bounds = array<i64: 1, 32>}, {pipeline_mode = #tpu.pipeline_mode<synchronous>, transform_indices = @transform_5, window_bounds = array<i64: 1, 48>}, {pipeline_mode = #tpu.pipeline_mode<synchronous>, transform_indices = @transform_6, window_bounds = array<i64: 1, 48>}, {pipeline_mode = #tpu.pipeline_mode<synchronous>, transform_indices = @transform_7, window_bounds = array<i64: 1, 32>}, {pipeline_mode = #tpu.pipeline_mode<synchronous>, transform_indices = @transform_8, window_bounds = array<i64: 1, 32>}, {pipeline_mode = #tpu.pipeline_mode<synchronous>, transform_indices = @transform_9, window_bounds = array<i64: 32, 96>}, {pipeline_mode = #tpu.pipeline_mode<synchronous>, transform_indices = @transform_10, window_bounds = array<i64: 1, 96>}, {pipeline_mode = #tpu.pipeline_mode<synchronous>, transform_indices = @transform_11, window_bounds = array<i64: 32, 32>}, {pipeline_mode = #tpu.pipeline_mode<synchronous>, transform_indices = @transform_12, window_bounds = array<i64: 1, 32>}, {pipeline_mode = #tpu.pipeline_mode<synchronous>, transform_indices = @transform_13, window_bounds = array<i64: 32, 32>}, {pipeline_mode = #tpu.pipeline_mode<synchronous>, transform_indices = @transform_14, window_bounds = array<i64: 1, 32>}, {pipeline_mode = #tpu.pipeline_mode<synchronous>, transform_indices = @transform_15, window_bounds = array<i64: 48, 64>}, {pipeline_mode = #tpu.pipeline_mode<synchronous>, transform_indices = @transform_16, window_bounds = array<i64: 1, 64>}, {pipeline_mode = #tpu.pipeline_mode<synchronous>, transform_indices = @transform_17, window_bounds = array<i64: 32, 32>}, {pipeline_mode = #tpu.pipeline_mode<synchronous>, transform_indices = @transform_18, window_bounds = array<i64: 1, 32>}, {pipeline_mode = #tpu.pipeline_mode<synchronous>, transform_indices = @transform_19, window_bounds = array<i64: 32, 128>}, {pipeline_mode = #tpu.pipeline_mode<synchronous>, transform_indices = @transform_20, window_bounds = array<i64: 1, 128>}, {pipeline_mode = #tpu.pipeline_mode<synchronous>, transform_indices = @transform_21, window_bounds = array<i64: 128, 32>}, {pipeline_mode = #tpu.pipeline_mode<synchronous>, transform_indices = @transform_22, window_bounds = array<i64: 1, 32>}, {transform_indices = @transform_23, window_bounds = array<i64: 1, 8, 32>}, {transform_indices = @transform_24, window_bounds = array<i64: 1, 4, 8, 16>}]} {
    %c0 = arith.constant 0 : index
    %c0_0 = arith.constant 0 : index
    %c0_1 = arith.constant 0 : index
    %0 = vector.load %arg1[%c0, %c0_0, %c0_1] : memref<1x8x32xf32, #tpu.memory_space<vmem>>, vector<1x8x32xf32>
    %1 = vector.shape_cast %0 : vector<1x8x32xf32> to vector<8x32xf32>
    %c0_2 = arith.constant 0 : index
    %c0_3 = arith.constant 0 : index
    %2 = vector.load %arg4[%c0_2, %c0_3] : memref<1x32xf32, #tpu.memory_space<vmem>>, vector<1x32xf32>
    %c0_4 = arith.constant 0 : index
    %c0_5 = arith.constant 0 : index
    %3 = vector.load %arg5[%c0_4, %c0_5] : memref<1x32xf32, #tpu.memory_space<vmem>>, vector<1x32xf32>
    %cst = arith.constant dense<0.000000e+00> : vector<8xf32>
    %4 = vector.multi_reduction <add>, %1, %cst [1] : vector<8x32xf32> to vector<8xf32>
    %5 = vector.shape_cast %4 : vector<8xf32> to vector<8x1xf32>
    %cst_6 = arith.constant 3.200000e+01 : f32
    %6 = vector.broadcast %cst_6 : f32 to vector<8x1xf32>
    %7 = arith.divf %5, %6 : vector<8x1xf32>
    %8 = vector.broadcast %7 : vector<8x1xf32> to vector<8x32xf32>
    %9 = arith.subf %1, %8 : vector<8x32xf32>
    %10 = arith.mulf %9, %9 : vector<8x32xf32>
    %cst_7 = arith.constant dense<0.000000e+00> : vector<8xf32>
    %11 = vector.multi_reduction <add>, %10, %cst_7 [1] : vector<8x32xf32> to vector<8xf32>
    %12 = vector.shape_cast %11 : vector<8xf32> to vector<8x1xf32>
    %cst_8 = arith.constant 3.200000e+01 : f32
    %13 = vector.broadcast %cst_8 : f32 to vector<8x1xf32>
    %14 = arith.divf %12, %13 : vector<8x1xf32>
    %15 = vector.broadcast %7 : vector<8x1xf32> to vector<8x32xf32>
    %16 = arith.subf %1, %15 : vector<8x32xf32>
    %cst_9 = arith.constant 9.99999974E-6 : f32
    %17 = vector.broadcast %cst_9 : f32 to vector<8x1xf32>
    %18 = arith.addf %14, %17 : vector<8x1xf32>
    %19 = math.rsqrt %18 : vector<8x1xf32>
    %20 = vector.broadcast %19 : vector<8x1xf32> to vector<8x32xf32>
    %21 = arith.mulf %16, %20 : vector<8x32xf32>
    %22 = vector.broadcast %2 : vector<1x32xf32> to vector<8x32xf32>
    %23 = arith.mulf %21, %22 : vector<8x32xf32>
    %24 = vector.broadcast %3 : vector<1x32xf32> to vector<8x32xf32>
    %25 = arith.addf %23, %24 : vector<8x32xf32>
    %c0_10 = arith.constant 0 : index
    %c0_11 = arith.constant 0 : index
    %26 = vector.load %arg10[%c0_10, %c0_11] : memref<32x96xf32, #tpu.memory_space<vmem>>, vector<32x96xf32>
    %cst_12 = arith.constant dense<0.000000e+00> : vector<8x96xf32>
    %27 = tpu.matmul %25, %26, %cst_12 {dimension_numbers = #tpu.dot_dimension_numbers<[1], [0], [0], [1], [0, 0, 1, 1], [], []>} : vector<8x32xf32>, vector<32x96xf32>, vector<8x96xf32> -> vector<8x96xf32>
    %c0_13 = arith.constant 0 : index
    %c0_14 = arith.constant 0 : index
    %28 = vector.load %arg11[%c0_13, %c0_14] : memref<1x96xf32, #tpu.memory_space<vmem>>, vector<1x96xf32>
    %29 = vector.broadcast %28 : vector<1x96xf32> to vector<8x96xf32>
    %30 = arith.addf %27, %29 : vector<8x96xf32>
    %31 = vector.extract_strided_slice %30 {offsets = [0, 0], sizes = [8, 32], strides = [1, 1]} : vector<8x96xf32> to vector<8x32xf32>
    %32 = vector.shape_cast %31 : vector<8x32xf32> to vector<1x8x32xf32>
    %33 = vector.extract_strided_slice %30 {offsets = [0, 32], sizes = [8, 32], strides = [1, 1]} : vector<8x96xf32> to vector<8x32xf32>
    %34 = vector.shape_cast %33 : vector<8x32xf32> to vector<1x8x32xf32>
    %35 = vector.extract_strided_slice %30 {offsets = [0, 64], sizes = [8, 32], strides = [1, 1]} : vector<8x96xf32> to vector<8x32xf32>
    %36 = vector.shape_cast %35 : vector<8x32xf32> to vector<1x8x32xf32>
    %37 = vector.extract_strided_slice %32 {offsets = [0, 0, 0], sizes = [1, 8, 8], strides = [1, 1, 1]} : vector<1x8x32xf32> to vector<1x8x8xf32>
    %38 = vector.extract_strided_slice %34 {offsets = [0, 0, 0], sizes = [1, 8, 8], strides = [1, 1, 1]} : vector<1x8x32xf32> to vector<1x8x8xf32>
    "tpu.trace_start"() <{level = 10 : i32, message = "bqd,bkd->bqk"}> : () -> ()
    %cst_15 = arith.constant dense<0.000000e+00> : vector<1x8x8xf32>
    %39 = tpu.matmul %37, %38, %cst_15 {dimension_numbers = #tpu.dot_dimension_numbers<[2], [2], [1], [1], [0, 0, 0, 1, 1, 1], [0], [0]>} : vector<1x8x8xf32>, vector<1x8x8xf32>, vector<1x8x8xf32> -> vector<1x8x8xf32>
    "tpu.trace_stop"() : () -> ()
    %cst_16 = arith.constant 0.353553385 : f32
    %40 = vector.broadcast %cst_16 : f32 to vector<1x8x8xf32>
    %41 = arith.mulf %39, %40 : vector<1x8x8xf32>
    %cst_17 = arith.constant dense<0xFF800000> : vector<1x8xf32>
    %42 = vector.multi_reduction <maximumf>, %41, %cst_17 [2] : vector<1x8x8xf32> to vector<1x8xf32>
    %43 = vector.shape_cast %42 : vector<1x8xf32> to vector<1x8x1xf32>
    %44 = vector.broadcast %43 : vector<1x8x1xf32> to vector<1x8x8xf32>
    %45 = arith.subf %41, %44 : vector<1x8x8xf32>
    %46 = math.exp %45 : vector<1x8x8xf32>
    %cst_18 = arith.constant dense<0.000000e+00> : vector<1x8xf32>
    %47 = vector.multi_reduction <add>, %46, %cst_18 [2] : vector<1x8x8xf32> to vector<1x8xf32>
    %48 = vector.shape_cast %47 : vector<1x8xf32> to vector<1x8x1xf32>
    %49 = tpu.reciprocal %48 : vector<1x8x1xf32> -> vector<1x8x1xf32>
    %50 = vector.broadcast %49 : vector<1x8x1xf32> to vector<1x8x8xf32>
    %51 = arith.mulf %46, %50 : vector<1x8x8xf32>
    %52 = vector.extract_strided_slice %36 {offsets = [0, 0, 0], sizes = [1, 8, 8], strides = [1, 1, 1]} : vector<1x8x32xf32> to vector<1x8x8xf32>
    "tpu.trace_start"() <{level = 10 : i32, message = "bqk,bkd->bqd"}> : () -> ()
    %cst_19 = arith.constant dense<0.000000e+00> : vector<1x8x8xf32>
    %53 = tpu.matmul %51, %52, %cst_19 {dimension_numbers = #tpu.dot_dimension_numbers<[2], [1], [1], [2], [0, 0, 0, 1, 1, 2], [0], [0]>} : vector<1x8x8xf32>, vector<1x8x8xf32>, vector<1x8x8xf32> -> vector<1x8x8xf32>
    "tpu.trace_stop"() : () -> ()
    %54 = vector.extract_strided_slice %32 {offsets = [0, 0, 8], sizes = [1, 8, 8], strides = [1, 1, 1]} : vector<1x8x32xf32> to vector<1x8x8xf32>
    %55 = vector.extract_strided_slice %34 {offsets = [0, 0, 8], sizes = [1, 8, 8], strides = [1, 1, 1]} : vector<1x8x32xf32> to vector<1x8x8xf32>
    "tpu.trace_start"() <{level = 10 : i32, message = "bqd,bkd->bqk"}> : () -> ()
    %cst_20 = arith.constant dense<0.000000e+00> : vector<1x8x8xf32>
    %56 = tpu.matmul %54, %55, %cst_20 {dimension_numbers = #tpu.dot_dimension_numbers<[2], [2], [1], [1], [0, 0, 0, 1, 1, 1], [0], [0]>} : vector<1x8x8xf32>, vector<1x8x8xf32>, vector<1x8x8xf32> -> vector<1x8x8xf32>
    "tpu.trace_stop"() : () -> ()
    %cst_21 = arith.constant 0.353553385 : f32
    %57 = vector.broadcast %cst_21 : f32 to vector<1x8x8xf32>
    %58 = arith.mulf %56, %57 : vector<1x8x8xf32>
    %cst_22 = arith.constant dense<0xFF800000> : vector<1x8xf32>
    %59 = vector.multi_reduction <maximumf>, %58, %cst_22 [2] : vector<1x8x8xf32> to vector<1x8xf32>
    %60 = vector.shape_cast %59 : vector<1x8xf32> to vector<1x8x1xf32>
    %61 = vector.broadcast %60 : vector<1x8x1xf32> to vector<1x8x8xf32>
    %62 = arith.subf %58, %61 : vector<1x8x8xf32>
    %63 = math.exp %62 : vector<1x8x8xf32>
    %cst_23 = arith.constant dense<0.000000e+00> : vector<1x8xf32>
    %64 = vector.multi_reduction <add>, %63, %cst_23 [2] : vector<1x8x8xf32> to vector<1x8xf32>
    %65 = vector.shape_cast %64 : vector<1x8xf32> to vector<1x8x1xf32>
    %66 = tpu.reciprocal %65 : vector<1x8x1xf32> -> vector<1x8x1xf32>
    %67 = vector.broadcast %66 : vector<1x8x1xf32> to vector<1x8x8xf32>
    %68 = arith.mulf %63, %67 : vector<1x8x8xf32>
    %69 = vector.extract_strided_slice %36 {offsets = [0, 0, 8], sizes = [1, 8, 8], strides = [1, 1, 1]} : vector<1x8x32xf32> to vector<1x8x8xf32>
    "tpu.trace_start"() <{level = 10 : i32, message = "bqk,bkd->bqd"}> : () -> ()
    %cst_24 = arith.constant dense<0.000000e+00> : vector<1x8x8xf32>
    %70 = tpu.matmul %68, %69, %cst_24 {dimension_numbers = #tpu.dot_dimension_numbers<[2], [1], [1], [2], [0, 0, 0, 1, 1, 2], [0], [0]>} : vector<1x8x8xf32>, vector<1x8x8xf32>, vector<1x8x8xf32> -> vector<1x8x8xf32>
    "tpu.trace_stop"() : () -> ()
    %71 = vector.extract_strided_slice %32 {offsets = [0, 0, 16], sizes = [1, 8, 8], strides = [1, 1, 1]} : vector<1x8x32xf32> to vector<1x8x8xf32>
    %72 = vector.extract_strided_slice %34 {offsets = [0, 0, 16], sizes = [1, 8, 8], strides = [1, 1, 1]} : vector<1x8x32xf32> to vector<1x8x8xf32>
    "tpu.trace_start"() <{level = 10 : i32, message = "bqd,bkd->bqk"}> : () -> ()
    %cst_25 = arith.constant dense<0.000000e+00> : vector<1x8x8xf32>
    %73 = tpu.matmul %71, %72, %cst_25 {dimension_numbers = #tpu.dot_dimension_numbers<[2], [2], [1], [1], [0, 0, 0, 1, 1, 1], [0], [0]>} : vector<1x8x8xf32>, vector<1x8x8xf32>, vector<1x8x8xf32> -> vector<1x8x8xf32>
    "tpu.trace_stop"() : () -> ()
    %cst_26 = arith.constant 0.353553385 : f32
    %74 = vector.broadcast %cst_26 : f32 to vector<1x8x8xf32>
    %75 = arith.mulf %73, %74 : vector<1x8x8xf32>
    %cst_27 = arith.constant dense<0xFF800000> : vector<1x8xf32>
    %76 = vector.multi_reduction <maximumf>, %75, %cst_27 [2] : vector<1x8x8xf32> to vector<1x8xf32>
    %77 = vector.shape_cast %76 : vector<1x8xf32> to vector<1x8x1xf32>
    %78 = vector.broadcast %77 : vector<1x8x1xf32> to vector<1x8x8xf32>
    %79 = arith.subf %75, %78 : vector<1x8x8xf32>
    %80 = math.exp %79 : vector<1x8x8xf32>
    %cst_28 = arith.constant dense<0.000000e+00> : vector<1x8xf32>
    %81 = vector.multi_reduction <add>, %80, %cst_28 [2] : vector<1x8x8xf32> to vector<1x8xf32>
    %82 = vector.shape_cast %81 : vector<1x8xf32> to vector<1x8x1xf32>
    %83 = tpu.reciprocal %82 : vector<1x8x1xf32> -> vector<1x8x1xf32>
    %84 = vector.broadcast %83 : vector<1x8x1xf32> to vector<1x8x8xf32>
    %85 = arith.mulf %80, %84 : vector<1x8x8xf32>
    %86 = vector.extract_strided_slice %36 {offsets = [0, 0, 16], sizes = [1, 8, 8], strides = [1, 1, 1]} : vector<1x8x32xf32> to vector<1x8x8xf32>
    "tpu.trace_start"() <{level = 10 : i32, message = "bqk,bkd->bqd"}> : () -> ()
    %cst_29 = arith.constant dense<0.000000e+00> : vector<1x8x8xf32>
    %87 = tpu.matmul %85, %86, %cst_29 {dimension_numbers = #tpu.dot_dimension_numbers<[2], [1], [1], [2], [0, 0, 0, 1, 1, 2], [0], [0]>} : vector<1x8x8xf32>, vector<1x8x8xf32>, vector<1x8x8xf32> -> vector<1x8x8xf32>
    "tpu.trace_stop"() : () -> ()
    %88 = vector.extract_strided_slice %32 {offsets = [0, 0, 24], sizes = [1, 8, 8], strides = [1, 1, 1]} : vector<1x8x32xf32> to vector<1x8x8xf32>
    %89 = vector.extract_strided_slice %34 {offsets = [0, 0, 24], sizes = [1, 8, 8], strides = [1, 1, 1]} : vector<1x8x32xf32> to vector<1x8x8xf32>
    "tpu.trace_start"() <{level = 10 : i32, message = "bqd,bkd->bqk"}> : () -> ()
    %cst_30 = arith.constant dense<0.000000e+00> : vector<1x8x8xf32>
    %90 = tpu.matmul %88, %89, %cst_30 {dimension_numbers = #tpu.dot_dimension_numbers<[2], [2], [1], [1], [0, 0, 0, 1, 1, 1], [0], [0]>} : vector<1x8x8xf32>, vector<1x8x8xf32>, vector<1x8x8xf32> -> vector<1x8x8xf32>
    "tpu.trace_stop"() : () -> ()
    %cst_31 = arith.constant 0.353553385 : f32
    %91 = vector.broadcast %cst_31 : f32 to vector<1x8x8xf32>
    %92 = arith.mulf %90, %91 : vector<1x8x8xf32>
    %cst_32 = arith.constant dense<0xFF800000> : vector<1x8xf32>
    %93 = vector.multi_reduction <maximumf>, %92, %cst_32 [2] : vector<1x8x8xf32> to vector<1x8xf32>
    %94 = vector.shape_cast %93 : vector<1x8xf32> to vector<1x8x1xf32>
    %95 = vector.broadcast %94 : vector<1x8x1xf32> to vector<1x8x8xf32>
    %96 = arith.subf %92, %95 : vector<1x8x8xf32>
    %97 = math.exp %96 : vector<1x8x8xf32>
    %cst_33 = arith.constant dense<0.000000e+00> : vector<1x8xf32>
    %98 = vector.multi_reduction <add>, %97, %cst_33 [2] : vector<1x8x8xf32> to vector<1x8xf32>
    %99 = vector.shape_cast %98 : vector<1x8xf32> to vector<1x8x1xf32>
    %100 = tpu.reciprocal %99 : vector<1x8x1xf32> -> vector<1x8x1xf32>
    %101 = vector.broadcast %100 : vector<1x8x1xf32> to vector<1x8x8xf32>
    %102 = arith.mulf %97, %101 : vector<1x8x8xf32>
    %103 = vector.extract_strided_slice %36 {offsets = [0, 0, 24], sizes = [1, 8, 8], strides = [1, 1, 1]} : vector<1x8x32xf32> to vector<1x8x8xf32>
    "tpu.trace_start"() <{level = 10 : i32, message = "bqk,bkd->bqd"}> : () -> ()
    %cst_34 = arith.constant dense<0.000000e+00> : vector<1x8x8xf32>
    %104 = tpu.matmul %102, %103, %cst_34 {dimension_numbers = #tpu.dot_dimension_numbers<[2], [1], [1], [2], [0, 0, 0, 1, 1, 2], [0], [0]>} : vector<1x8x8xf32>, vector<1x8x8xf32>, vector<1x8x8xf32> -> vector<1x8x8xf32>
    "tpu.trace_stop"() : () -> ()
    %105 = tpu.concatenate %53, %70, %87, %104 in 2 : vector<1x8x8xf32>, vector<1x8x8xf32>, vector<1x8x8xf32>, vector<1x8x8xf32> -> vector<1x8x32xf32>
    %106 = vector.shape_cast %105 : vector<1x8x32xf32> to vector<8x32xf32>
    %c0_35 = arith.constant 0 : index
    %c0_36 = arith.constant 0 : index
    %107 = vector.load %arg12[%c0_35, %c0_36] : memref<32x32xf32, #tpu.memory_space<vmem>>, vector<32x32xf32>
    %cst_37 = arith.constant dense<0.000000e+00> : vector<8x32xf32>
    %108 = tpu.matmul %106, %107, %cst_37 {dimension_numbers = #tpu.dot_dimension_numbers<[1], [0], [0], [1], [0, 0, 1, 1], [], []>} : vector<8x32xf32>, vector<32x32xf32>, vector<8x32xf32> -> vector<8x32xf32>
    %c0_38 = arith.constant 0 : index
    %c0_39 = arith.constant 0 : index
    %109 = vector.load %arg13[%c0_38, %c0_39] : memref<1x32xf32, #tpu.memory_space<vmem>>, vector<1x32xf32>
    %110 = vector.broadcast %109 : vector<1x32xf32> to vector<8x32xf32>
    %111 = arith.addf %108, %110 : vector<8x32xf32>
    %112 = arith.addf %1, %111 : vector<8x32xf32>
    %c0_40 = arith.constant 0 : index
    %c0_41 = arith.constant 0 : index
    %113 = vector.load %arg4[%c0_40, %c0_41] : memref<1x32xf32, #tpu.memory_space<vmem>>, vector<1x32xf32>
    %c0_42 = arith.constant 0 : index
    %c0_43 = arith.constant 0 : index
    %114 = vector.load %arg5[%c0_42, %c0_43] : memref<1x32xf32, #tpu.memory_space<vmem>>, vector<1x32xf32>
    %cst_44 = arith.constant dense<0.000000e+00> : vector<8xf32>
    %115 = vector.multi_reduction <add>, %112, %cst_44 [1] : vector<8x32xf32> to vector<8xf32>
    %116 = vector.shape_cast %115 : vector<8xf32> to vector<8x1xf32>
    %cst_45 = arith.constant 3.200000e+01 : f32
    %117 = vector.broadcast %cst_45 : f32 to vector<8x1xf32>
    %118 = arith.divf %116, %117 : vector<8x1xf32>
    %119 = vector.broadcast %118 : vector<8x1xf32> to vector<8x32xf32>
    %120 = arith.subf %112, %119 : vector<8x32xf32>
    %121 = arith.mulf %120, %120 : vector<8x32xf32>
    %cst_46 = arith.constant dense<0.000000e+00> : vector<8xf32>
    %122 = vector.multi_reduction <add>, %121, %cst_46 [1] : vector<8x32xf32> to vector<8xf32>
    %123 = vector.shape_cast %122 : vector<8xf32> to vector<8x1xf32>
    %cst_47 = arith.constant 3.200000e+01 : f32
    %124 = vector.broadcast %cst_47 : f32 to vector<8x1xf32>
    %125 = arith.divf %123, %124 : vector<8x1xf32>
    %126 = vector.broadcast %118 : vector<8x1xf32> to vector<8x32xf32>
    %127 = arith.subf %112, %126 : vector<8x32xf32>
    %cst_48 = arith.constant 9.99999974E-6 : f32
    %128 = vector.broadcast %cst_48 : f32 to vector<8x1xf32>
    %129 = arith.addf %125, %128 : vector<8x1xf32>
    %130 = math.rsqrt %129 : vector<8x1xf32>
    %131 = vector.broadcast %130 : vector<8x1xf32> to vector<8x32xf32>
    %132 = arith.mulf %127, %131 : vector<8x32xf32>
    %133 = vector.broadcast %113 : vector<1x32xf32> to vector<8x32xf32>
    %134 = arith.mulf %132, %133 : vector<8x32xf32>
    %135 = vector.broadcast %114 : vector<1x32xf32> to vector<8x32xf32>
    %136 = arith.addf %134, %135 : vector<8x32xf32>
    %c0_49 = arith.constant 0 : index
    %c0_50 = arith.constant 0 : index
    %c0_51 = arith.constant 0 : index
    %137 = vector.load %arg2[%c0_49, %c0_50, %c0_51] : memref<1x16x48xf32, #tpu.memory_space<vmem>>, vector<1x16x48xf32>
    %138 = vector.shape_cast %137 : vector<1x16x48xf32> to vector<16x48xf32>
    %c0_52 = arith.constant 0 : index
    %c0_53 = arith.constant 0 : index
    %139 = vector.load %arg6[%c0_52, %c0_53] : memref<1x48xf32, #tpu.memory_space<vmem>>, vector<1x48xf32>
    %c0_54 = arith.constant 0 : index
    %c0_55 = arith.constant 0 : index
    %140 = vector.load %arg7[%c0_54, %c0_55] : memref<1x48xf32, #tpu.memory_space<vmem>>, vector<1x48xf32>
    %cst_56 = arith.constant dense<0.000000e+00> : vector<16xf32>
    %141 = vector.multi_reduction <add>, %138, %cst_56 [1] : vector<16x48xf32> to vector<16xf32>
    %142 = vector.shape_cast %141 : vector<16xf32> to vector<16x1xf32>
    %cst_57 = arith.constant 4.800000e+01 : f32
    %143 = vector.broadcast %cst_57 : f32 to vector<16x1xf32>
    %144 = arith.divf %142, %143 : vector<16x1xf32>
    %145 = vector.broadcast %144 : vector<16x1xf32> to vector<16x48xf32>
    %146 = arith.subf %138, %145 : vector<16x48xf32>
    %147 = arith.mulf %146, %146 : vector<16x48xf32>
    %cst_58 = arith.constant dense<0.000000e+00> : vector<16xf32>
    %148 = vector.multi_reduction <add>, %147, %cst_58 [1] : vector<16x48xf32> to vector<16xf32>
    %149 = vector.shape_cast %148 : vector<16xf32> to vector<16x1xf32>
    %cst_59 = arith.constant 4.800000e+01 : f32
    %150 = vector.broadcast %cst_59 : f32 to vector<16x1xf32>
    %151 = arith.divf %149, %150 : vector<16x1xf32>
    %152 = vector.broadcast %144 : vector<16x1xf32> to vector<16x48xf32>
    %153 = arith.subf %138, %152 : vector<16x48xf32>
    %cst_60 = arith.constant 9.99999974E-6 : f32
    %154 = vector.broadcast %cst_60 : f32 to vector<16x1xf32>
    %155 = arith.addf %151, %154 : vector<16x1xf32>
    %156 = math.rsqrt %155 : vector<16x1xf32>
    %157 = vector.broadcast %156 : vector<16x1xf32> to vector<16x48xf32>
    %158 = arith.mulf %153, %157 : vector<16x48xf32>
    %159 = vector.broadcast %139 : vector<1x48xf32> to vector<16x48xf32>
    %160 = arith.mulf %158, %159 : vector<16x48xf32>
    %161 = vector.broadcast %140 : vector<1x48xf32> to vector<16x48xf32>
    %162 = arith.addf %160, %161 : vector<16x48xf32>
    %c0_61 = arith.constant 0 : index
    %c0_62 = arith.constant 0 : index
    %163 = vector.load %arg14[%c0_61, %c0_62] : memref<32x32xf32, #tpu.memory_space<vmem>>, vector<32x32xf32>
    %cst_63 = arith.constant dense<0.000000e+00> : vector<8x32xf32>
    %164 = tpu.matmul %136, %163, %cst_63 {dimension_numbers = #tpu.dot_dimension_numbers<[1], [0], [0], [1], [0, 0, 1, 1], [], []>} : vector<8x32xf32>, vector<32x32xf32>, vector<8x32xf32> -> vector<8x32xf32>
    %c0_64 = arith.constant 0 : index
    %c0_65 = arith.constant 0 : index
    %165 = vector.load %arg15[%c0_64, %c0_65] : memref<1x32xf32, #tpu.memory_space<vmem>>, vector<1x32xf32>
    %166 = vector.broadcast %165 : vector<1x32xf32> to vector<8x32xf32>
    %167 = arith.addf %164, %166 : vector<8x32xf32>
    %168 = vector.shape_cast %167 : vector<8x32xf32> to vector<1x8x32xf32>
    %c0_66 = arith.constant 0 : index
    %c0_67 = arith.constant 0 : index
    %169 = vector.load %arg16[%c0_66, %c0_67] : memref<48x64xf32, #tpu.memory_space<vmem>>, vector<48x64xf32>
    %cst_68 = arith.constant dense<0.000000e+00> : vector<16x64xf32>
    %170 = tpu.matmul %162, %169, %cst_68 {dimension_numbers = #tpu.dot_dimension_numbers<[1], [0], [0], [1], [0, 0, 1, 1], [], []>} : vector<16x48xf32>, vector<48x64xf32>, vector<16x64xf32> -> vector<16x64xf32>
    %c0_69 = arith.constant 0 : index
    %c0_70 = arith.constant 0 : index
    %171 = vector.load %arg17[%c0_69, %c0_70] : memref<1x64xf32, #tpu.memory_space<vmem>>, vector<1x64xf32>
    %172 = vector.broadcast %171 : vector<1x64xf32> to vector<16x64xf32>
    %173 = arith.addf %170, %172 : vector<16x64xf32>
    %174 = vector.extract_strided_slice %173 {offsets = [0, 0], sizes = [16, 32], strides = [1, 1]} : vector<16x64xf32> to vector<16x32xf32>
    %175 = vector.shape_cast %174 : vector<16x32xf32> to vector<1x16x32xf32>
    %176 = vector.extract_strided_slice %173 {offsets = [0, 32], sizes = [16, 32], strides = [1, 1]} : vector<16x64xf32> to vector<16x32xf32>
    %177 = vector.shape_cast %176 : vector<16x32xf32> to vector<1x16x32xf32>
    %c0_71 = arith.constant 0 : index
    %c0_72 = arith.constant 0 : index
    %c0_73 = arith.constant 0 : index
    %178 = vector.load %arg3[%c0_71, %c0_72, %c0_73] : memref<1x8x16xf32, #tpu.memory_space<vmem>>, vector<1x8x16xf32>
    %179 = vector.extract_strided_slice %168 {offsets = [0, 0, 0], sizes = [1, 8, 8], strides = [1, 1, 1]} : vector<1x8x32xf32> to vector<1x8x8xf32>
    %180 = vector.extract_strided_slice %175 {offsets = [0, 0, 0], sizes = [1, 16, 8], strides = [1, 1, 1]} : vector<1x16x32xf32> to vector<1x16x8xf32>
    "tpu.trace_start"() <{level = 10 : i32, message = "bqd,bkd->bqk"}> : () -> ()
    %cst_74 = arith.constant dense<0.000000e+00> : vector<1x8x16xf32>
    %181 = tpu.matmul %179, %180, %cst_74 {dimension_numbers = #tpu.dot_dimension_numbers<[2], [2], [1], [1], [0, 0, 0, 1, 1, 1], [0], [0]>} : vector<1x8x8xf32>, vector<1x16x8xf32>, vector<1x8x16xf32> -> vector<1x8x16xf32>
    "tpu.trace_stop"() : () -> ()
    %cst_75 = arith.constant 0.353553385 : f32
    %182 = vector.broadcast %cst_75 : f32 to vector<1x8x16xf32>
    %183 = arith.mulf %181, %182 : vector<1x8x16xf32>
    %184 = arith.addf %183, %178 : vector<1x8x16xf32>
    %cst_76 = arith.constant dense<0xFF800000> : vector<1x8xf32>
    %185 = vector.multi_reduction <maximumf>, %184, %cst_76 [2] : vector<1x8x16xf32> to vector<1x8xf32>
    %186 = vector.shape_cast %185 : vector<1x8xf32> to vector<1x8x1xf32>
    %187 = vector.broadcast %186 : vector<1x8x1xf32> to vector<1x8x16xf32>
    %188 = arith.subf %184, %187 : vector<1x8x16xf32>
    %189 = math.exp %188 : vector<1x8x16xf32>
    %cst_77 = arith.constant dense<0.000000e+00> : vector<1x8xf32>
    %190 = vector.multi_reduction <add>, %189, %cst_77 [2] : vector<1x8x16xf32> to vector<1x8xf32>
    %191 = vector.shape_cast %190 : vector<1x8xf32> to vector<1x8x1xf32>
    %192 = tpu.reciprocal %191 : vector<1x8x1xf32> -> vector<1x8x1xf32>
    %193 = vector.broadcast %192 : vector<1x8x1xf32> to vector<1x8x16xf32>
    %194 = arith.mulf %189, %193 : vector<1x8x16xf32>
    %c0_78 = arith.constant 0 : index
    %c0_79 = arith.constant 0 : index
    %c0_80 = arith.constant 0 : index
    %c0_81 = arith.constant 0 : index
    %195 = vector.load %arg25[%c0_78, %c0_79, %c0_80, %c0_81] : memref<1x4x8x16xf32, #tpu.memory_space<vmem>>, vector<1x1x8x16xf32>
    %196 = vector.shape_cast %195 : vector<1x1x8x16xf32> to vector<1x8x16xf32>
    %197 = vector.shape_cast %194 : vector<1x8x16xf32> to vector<1x1x8x16xf32>
    tpu.vector_store %arg25[%c0_78, %c0_79, %c0_80, %c0_81], %197 {strides = array<i32>} : memref<1x4x8x16xf32, #tpu.memory_space<vmem>>, vector<1x1x8x16xf32>,
    %198 = vector.extract_strided_slice %177 {offsets = [0, 0, 0], sizes = [1, 16, 8], strides = [1, 1, 1]} : vector<1x16x32xf32> to vector<1x16x8xf32>
    "tpu.trace_start"() <{level = 10 : i32, message = "bqk,bkd->bqd"}> : () -> ()
    %cst_82 = arith.constant dense<0.000000e+00> : vector<1x8x8xf32>
    %199 = tpu.matmul %194, %198, %cst_82 {dimension_numbers = #tpu.dot_dimension_numbers<[2], [1], [1], [2], [0, 0, 0, 1, 1, 2], [0], [0]>} : vector<1x8x16xf32>, vector<1x16x8xf32>, vector<1x8x8xf32> -> vector<1x8x8xf32>
    "tpu.trace_stop"() : () -> ()
    %200 = vector.extract_strided_slice %168 {offsets = [0, 0, 8], sizes = [1, 8, 8], strides = [1, 1, 1]} : vector<1x8x32xf32> to vector<1x8x8xf32>
    %201 = vector.extract_strided_slice %175 {offsets = [0, 0, 8], sizes = [1, 16, 8], strides = [1, 1, 1]} : vector<1x16x32xf32> to vector<1x16x8xf32>
    "tpu.trace_start"() <{level = 10 : i32, message = "bqd,bkd->bqk"}> : () -> ()
    %cst_83 = arith.constant dense<0.000000e+00> : vector<1x8x16xf32>
    %202 = tpu.matmul %200, %201, %cst_83 {dimension_numbers = #tpu.dot_dimension_numbers<[2], [2], [1], [1], [0, 0, 0, 1, 1, 1], [0], [0]>} : vector<1x8x8xf32>, vector<1x16x8xf32>, vector<1x8x16xf32> -> vector<1x8x16xf32>
    "tpu.trace_stop"() : () -> ()
    %cst_84 = arith.constant 0.353553385 : f32
    %203 = vector.broadcast %cst_84 : f32 to vector<1x8x16xf32>
    %204 = arith.mulf %202, %203 : vector<1x8x16xf32>
    %205 = arith.addf %204, %178 : vector<1x8x16xf32>
    %cst_85 = arith.constant dense<0xFF800000> : vector<1x8xf32>
    %206 = vector.multi_reduction <maximumf>, %205, %cst_85 [2] : vector<1x8x16xf32> to vector<1x8xf32>
    %207 = vector.shape_cast %206 : vector<1x8xf32> to vector<1x8x1xf32>
    %208 = vector.broadcast %207 : vector<1x8x1xf32> to vector<1x8x16xf32>
    %209 = arith.subf %205, %208 : vector<1x8x16xf32>
    %210 = math.exp %209 : vector<1x8x16xf32>
    %cst_86 = arith.constant dense<0.000000e+00> : vector<1x8xf32>
    %211 = vector.multi_reduction <add>, %210, %cst_86 [2] : vector<1x8x16xf32> to vector<1x8xf32>
    %212 = vector.shape_cast %211 : vector<1x8xf32> to vector<1x8x1xf32>
    %213 = tpu.reciprocal %212 : vector<1x8x1xf32> -> vector<1x8x1xf32>
    %214 = vector.broadcast %213 : vector<1x8x1xf32> to vector<1x8x16xf32>
    %215 = arith.mulf %210, %214 : vector<1x8x16xf32>
    %c0_87 = arith.constant 0 : index
    %c1 = arith.constant 1 : index
    %c0_88 = arith.constant 0 : index
    %c0_89 = arith.constant 0 : index
    %216 = vector.load %arg25[%c0_87, %c1, %c0_88, %c0_89] : memref<1x4x8x16xf32, #tpu.memory_space<vmem>>, vector<1x1x8x16xf32>
    %217 = vector.shape_cast %216 : vector<1x1x8x16xf32> to vector<1x8x16xf32>
    %218 = vector.shape_cast %215 : vector<1x8x16xf32> to vector<1x1x8x16xf32>
    tpu.vector_store %arg25[%c0_87, %c1, %c0_88, %c0_89], %218 {strides = array<i32>} : memref<1x4x8x16xf32, #tpu.memory_space<vmem>>, vector<1x1x8x16xf32>,
    %219 = vector.extract_strided_slice %177 {offsets = [0, 0, 8], sizes = [1, 16, 8], strides = [1, 1, 1]} : vector<1x16x32xf32> to vector<1x16x8xf32>
    "tpu.trace_start"() <{level = 10 : i32, message = "bqk,bkd->bqd"}> : () -> ()
    %cst_90 = arith.constant dense<0.000000e+00> : vector<1x8x8xf32>
    %220 = tpu.matmul %215, %219, %cst_90 {dimension_numbers = #tpu.dot_dimension_numbers<[2], [1], [1], [2], [0, 0, 0, 1, 1, 2], [0], [0]>} : vector<1x8x16xf32>, vector<1x16x8xf32>, vector<1x8x8xf32> -> vector<1x8x8xf32>
    "tpu.trace_stop"() : () -> ()
    %221 = vector.extract_strided_slice %168 {offsets = [0, 0, 16], sizes = [1, 8, 8], strides = [1, 1, 1]} : vector<1x8x32xf32> to vector<1x8x8xf32>
    %222 = vector.extract_strided_slice %175 {offsets = [0, 0, 16], sizes = [1, 16, 8], strides = [1, 1, 1]} : vector<1x16x32xf32> to vector<1x16x8xf32>
    "tpu.trace_start"() <{level = 10 : i32, message = "bqd,bkd->bqk"}> : () -> ()
    %cst_91 = arith.constant dense<0.000000e+00> : vector<1x8x16xf32>
    %223 = tpu.matmul %221, %222, %cst_91 {dimension_numbers = #tpu.dot_dimension_numbers<[2], [2], [1], [1], [0, 0, 0, 1, 1, 1], [0], [0]>} : vector<1x8x8xf32>, vector<1x16x8xf32>, vector<1x8x16xf32> -> vector<1x8x16xf32>
    "tpu.trace_stop"() : () -> ()
    %cst_92 = arith.constant 0.353553385 : f32
    %224 = vector.broadcast %cst_92 : f32 to vector<1x8x16xf32>
    %225 = arith.mulf %223, %224 : vector<1x8x16xf32>
    %226 = arith.addf %225, %178 : vector<1x8x16xf32>
    %cst_93 = arith.constant dense<0xFF800000> : vector<1x8xf32>
    %227 = vector.multi_reduction <maximumf>, %226, %cst_93 [2] : vector<1x8x16xf32> to vector<1x8xf32>
    %228 = vector.shape_cast %227 : vector<1x8xf32> to vector<1x8x1xf32>
    %229 = vector.broadcast %228 : vector<1x8x1xf32> to vector<1x8x16xf32>
    %230 = arith.subf %226, %229 : vector<1x8x16xf32>
    %231 = math.exp %230 : vector<1x8x16xf32>
    %cst_94 = arith.constant dense<0.000000e+00> : vector<1x8xf32>
    %232 = vector.multi_reduction <add>, %231, %cst_94 [2] : vector<1x8x16xf32> to vector<1x8xf32>
    %233 = vector.shape_cast %232 : vector<1x8xf32> to vector<1x8x1xf32>
    %234 = tpu.reciprocal %233 : vector<1x8x1xf32> -> vector<1x8x1xf32>
    %235 = vector.broadcast %234 : vector<1x8x1xf32> to vector<1x8x16xf32>
    %236 = arith.mulf %231, %235 : vector<1x8x16xf32>
    %c0_95 = arith.constant 0 : index
    %c2 = arith.constant 2 : index
    %c0_96 = arith.constant 0 : index
    %c0_97 = arith.constant 0 : index
    %237 = vector.load %arg25[%c0_95, %c2, %c0_96, %c0_97] : memref<1x4x8x16xf32, #tpu.memory_space<vmem>>, vector<1x1x8x16xf32>
    %238 = vector.shape_cast %237 : vector<1x1x8x16xf32> to vector<1x8x16xf32>
    %239 = vector.shape_cast %236 : vector<1x8x16xf32> to vector<1x1x8x16xf32>
    tpu.vector_store %arg25[%c0_95, %c2, %c0_96, %c0_97], %239 {strides = array<i32>} : memref<1x4x8x16xf32, #tpu.memory_space<vmem>>, vector<1x1x8x16xf32>,
    %240 = vector.extract_strided_slice %177 {offsets = [0, 0, 16], sizes = [1, 16, 8], strides = [1, 1, 1]} : vector<1x16x32xf32> to vector<1x16x8xf32>
    "tpu.trace_start"() <{level = 10 : i32, message = "bqk,bkd->bqd"}> : () -> ()
    %cst_98 = arith.constant dense<0.000000e+00> : vector<1x8x8xf32>
    %241 = tpu.matmul %236, %240, %cst_98 {dimension_numbers = #tpu.dot_dimension_numbers<[2], [1], [1], [2], [0, 0, 0, 1, 1, 2], [0], [0]>} : vector<1x8x16xf32>, vector<1x16x8xf32>, vector<1x8x8xf32> -> vector<1x8x8xf32>
    "tpu.trace_stop"() : () -> ()
    %242 = vector.extract_strided_slice %168 {offsets = [0, 0, 24], sizes = [1, 8, 8], strides = [1, 1, 1]} : vector<1x8x32xf32> to vector<1x8x8xf32>
    %243 = vector.extract_strided_slice %175 {offsets = [0, 0, 24], sizes = [1, 16, 8], strides = [1, 1, 1]} : vector<1x16x32xf32> to vector<1x16x8xf32>
    "tpu.trace_start"() <{level = 10 : i32, message = "bqd,bkd->bqk"}> : () -> ()
    %cst_99 = arith.constant dense<0.000000e+00> : vector<1x8x16xf32>
    %244 = tpu.matmul %242, %243, %cst_99 {dimension_numbers = #tpu.dot_dimension_numbers<[2], [2], [1], [1], [0, 0, 0, 1, 1, 1], [0], [0]>} : vector<1x8x8xf32>, vector<1x16x8xf32>, vector<1x8x16xf32> -> vector<1x8x16xf32>
    "tpu.trace_stop"() : () -> ()
    %cst_100 = arith.constant 0.353553385 : f32
    %245 = vector.broadcast %cst_100 : f32 to vector<1x8x16xf32>
    %246 = arith.mulf %244, %245 : vector<1x8x16xf32>
    %247 = arith.addf %246, %178 : vector<1x8x16xf32>
    %cst_101 = arith.constant dense<0xFF800000> : vector<1x8xf32>
    %248 = vector.multi_reduction <maximumf>, %247, %cst_101 [2] : vector<1x8x16xf32> to vector<1x8xf32>
    %249 = vector.shape_cast %248 : vector<1x8xf32> to vector<1x8x1xf32>
    %250 = vector.broadcast %249 : vector<1x8x1xf32> to vector<1x8x16xf32>
    %251 = arith.subf %247, %250 : vector<1x8x16xf32>
    %252 = math.exp %251 : vector<1x8x16xf32>
    %cst_102 = arith.constant dense<0.000000e+00> : vector<1x8xf32>
    %253 = vector.multi_reduction <add>, %252, %cst_102 [2] : vector<1x8x16xf32> to vector<1x8xf32>
    %254 = vector.shape_cast %253 : vector<1x8xf32> to vector<1x8x1xf32>
    %255 = tpu.reciprocal %254 : vector<1x8x1xf32> -> vector<1x8x1xf32>
    %256 = vector.broadcast %255 : vector<1x8x1xf32> to vector<1x8x16xf32>
    %257 = arith.mulf %252, %256 : vector<1x8x16xf32>
    %c0_103 = arith.constant 0 : index
    %c3 = arith.constant 3 : index
    %c0_104 = arith.constant 0 : index
    %c0_105 = arith.constant 0 : index
    %258 = vector.load %arg25[%c0_103, %c3, %c0_104, %c0_105] : memref<1x4x8x16xf32, #tpu.memory_space<vmem>>, vector<1x1x8x16xf32>
    %259 = vector.shape_cast %258 : vector<1x1x8x16xf32> to vector<1x8x16xf32>
    %260 = vector.shape_cast %257 : vector<1x8x16xf32> to vector<1x1x8x16xf32>
    tpu.vector_store %arg25[%c0_103, %c3, %c0_104, %c0_105], %260 {strides = array<i32>} : memref<1x4x8x16xf32, #tpu.memory_space<vmem>>, vector<1x1x8x16xf32>,
    %261 = vector.extract_strided_slice %177 {offsets = [0, 0, 24], sizes = [1, 16, 8], strides = [1, 1, 1]} : vector<1x16x32xf32> to vector<1x16x8xf32>
    "tpu.trace_start"() <{level = 10 : i32, message = "bqk,bkd->bqd"}> : () -> ()
    %cst_106 = arith.constant dense<0.000000e+00> : vector<1x8x8xf32>
    %262 = tpu.matmul %257, %261, %cst_106 {dimension_numbers = #tpu.dot_dimension_numbers<[2], [1], [1], [2], [0, 0, 0, 1, 1, 2], [0], [0]>} : vector<1x8x16xf32>, vector<1x16x8xf32>, vector<1x8x8xf32> -> vector<1x8x8xf32>
    "tpu.trace_stop"() : () -> ()
    %263 = tpu.concatenate %199, %220, %241, %262 in 2 : vector<1x8x8xf32>, vector<1x8x8xf32>, vector<1x8x8xf32>, vector<1x8x8xf32> -> vector<1x8x32xf32>
    %264 = vector.shape_cast %263 : vector<1x8x32xf32> to vector<8x32xf32>
    %c0_107 = arith.constant 0 : index
    %c0_108 = arith.constant 0 : index
    %265 = vector.load %arg18[%c0_107, %c0_108] : memref<32x32xf32, #tpu.memory_space<vmem>>, vector<32x32xf32>
    %cst_109 = arith.constant dense<0.000000e+00> : vector<8x32xf32>
    %266 = tpu.matmul %264, %265, %cst_109 {dimension_numbers = #tpu.dot_dimension_numbers<[1], [0], [0], [1], [0, 0, 1, 1], [], []>} : vector<8x32xf32>, vector<32x32xf32>, vector<8x32xf32> -> vector<8x32xf32>
    %c0_110 = arith.constant 0 : index
    %c0_111 = arith.constant 0 : index
    %267 = vector.load %arg19[%c0_110, %c0_111] : memref<1x32xf32, #tpu.memory_space<vmem>>, vector<1x32xf32>
    %268 = vector.broadcast %267 : vector<1x32xf32> to vector<8x32xf32>
    %269 = arith.addf %266, %268 : vector<8x32xf32>
    %270 = arith.addf %112, %269 : vector<8x32xf32>
    %c0_112 = arith.constant 0 : index
    %c0_113 = arith.constant 0 : index
    %271 = vector.load %arg8[%c0_112, %c0_113] : memref<1x32xf32, #tpu.memory_space<vmem>>, vector<1x32xf32>
    %c0_114 = arith.constant 0 : index
    %c0_115 = arith.constant 0 : index
    %272 = vector.load %arg9[%c0_114, %c0_115] : memref<1x32xf32, #tpu.memory_space<vmem>>, vector<1x32xf32>
    %cst_116 = arith.constant dense<0.000000e+00> : vector<8xf32>
    %273 = vector.multi_reduction <add>, %270, %cst_116 [1] : vector<8x32xf32> to vector<8xf32>
    %274 = vector.shape_cast %273 : vector<8xf32> to vector<8x1xf32>
    %cst_117 = arith.constant 3.200000e+01 : f32
    %275 = vector.broadcast %cst_117 : f32 to vector<8x1xf32>
    %276 = arith.divf %274, %275 : vector<8x1xf32>
    %277 = vector.broadcast %276 : vector<8x1xf32> to vector<8x32xf32>
    %278 = arith.subf %270, %277 : vector<8x32xf32>
    %279 = arith.mulf %278, %278 : vector<8x32xf32>
    %cst_118 = arith.constant dense<0.000000e+00> : vector<8xf32>
    %280 = vector.multi_reduction <add>, %279, %cst_118 [1] : vector<8x32xf32> to vector<8xf32>
    %281 = vector.shape_cast %280 : vector<8xf32> to vector<8x1xf32>
    %cst_119 = arith.constant 3.200000e+01 : f32
    %282 = vector.broadcast %cst_119 : f32 to vector<8x1xf32>
    %283 = arith.divf %281, %282 : vector<8x1xf32>
    %284 = vector.broadcast %276 : vector<8x1xf32> to vector<8x32xf32>
    %285 = arith.subf %270, %284 : vector<8x32xf32>
    %cst_120 = arith.constant 9.99999974E-6 : f32
    %286 = vector.broadcast %cst_120 : f32 to vector<8x1xf32>
    %287 = arith.addf %283, %286 : vector<8x1xf32>
    %288 = math.rsqrt %287 : vector<8x1xf32>
    %289 = vector.broadcast %288 : vector<8x1xf32> to vector<8x32xf32>
    %290 = arith.mulf %285, %289 : vector<8x32xf32>
    %291 = vector.broadcast %271 : vector<1x32xf32> to vector<8x32xf32>
    %292 = arith.mulf %290, %291 : vector<8x32xf32>
    %293 = vector.broadcast %272 : vector<1x32xf32> to vector<8x32xf32>
    %294 = arith.addf %292, %293 : vector<8x32xf32>
    %c0_121 = arith.constant 0 : index
    %c0_122 = arith.constant 0 : index
    %295 = vector.load %arg20[%c0_121, %c0_122] : memref<32x128xf32, #tpu.memory_space<vmem>>, vector<32x128xf32>
    %cst_123 = arith.constant dense<0.000000e+00> : vector<8x128xf32>
    %296 = tpu.matmul %294, %295, %cst_123 {dimension_numbers = #tpu.dot_dimension_numbers<[1], [0], [0], [1], [0, 0, 1, 1], [], []>} : vector<8x32xf32>, vector<32x128xf32>, vector<8x128xf32> -> vector<8x128xf32>
    %c0_124 = arith.constant 0 : index
    %c0_125 = arith.constant 0 : index
    %297 = vector.load %arg21[%c0_124, %c0_125] : memref<1x128xf32, #tpu.memory_space<vmem>>, vector<1x128xf32>
    %298 = vector.broadcast %297 : vector<1x128xf32> to vector<8x128xf32>
    %299 = arith.addf %296, %298 : vector<8x128xf32>
    %cst_126 = arith.constant 5.000000e-01 : f32
    %300 = vector.broadcast %cst_126 : f32 to vector<8x128xf32>
    %301 = arith.mulf %300, %299 : vector<8x128xf32>
    %cst_127 = arith.constant 0.707106769 : f32
    %302 = vector.broadcast %cst_127 : f32 to vector<8x128xf32>
    %303 = arith.mulf %299, %302 : vector<8x128xf32>
    %304 = math.erf %303 : vector<8x128xf32>
    %cst_128 = arith.constant 1.000000e+00 : f32
    %305 = vector.broadcast %cst_128 : f32 to vector<8x128xf32>
    %306 = arith.addf %305, %304 : vector<8x128xf32>
    %307 = arith.mulf %301, %306 : vector<8x128xf32>
    %c0_129 = arith.constant 0 : index
    %c0_130 = arith.constant 0 : index
    %308 = vector.load %arg22[%c0_129, %c0_130] : memref<128x32xf32, #tpu.memory_space<vmem>>, vector<128x32xf32>
    %cst_131 = arith.constant dense<0.000000e+00> : vector<8x32xf32>
    %309 = tpu.matmul %307, %308, %cst_131 {dimension_numbers = #tpu.dot_dimension_numbers<[1], [0], [0], [1], [0, 0, 1, 1], [], []>} : vector<8x128xf32>, vector<128x32xf32>, vector<8x32xf32> -> vector<8x32xf32>
    %c0_132 = arith.constant 0 : index
    %c0_133 = arith.constant 0 : index
    %310 = vector.load %arg23[%c0_132, %c0_133] : memref<1x32xf32, #tpu.memory_space<vmem>>, vector<1x32xf32>
    %311 = vector.broadcast %310 : vector<1x32xf32> to vector<8x32xf32>
    %312 = arith.addf %309, %311 : vector<8x32xf32>
    %313 = arith.addf %270, %312 : vector<8x32xf32>
    %314 = vector.shape_cast %313 : vector<8x32xf32> to vector<1x8x32xf32>
    %c0_134 = arith.constant 0 : index
    %c0_135 = arith.constant 0 : index
    %c0_136 = arith.constant 0 : index
    %315 = vector.load %arg24[%c0_134, %c0_135, %c0_136] : memref<1x8x32xf32, #tpu.memory_space<vmem>>, vector<1x8x32xf32>
    tpu.vector_store %arg24[%c0_134, %c0_135, %c0_136], %314 {strides = array<i32>} : memref<1x8x32xf32, #tpu.memory_space<vmem>>, vector<1x8x32xf32>,
    return
  }
  func.func @transform_0(%arg0: i32) -> (i32, i32, i32) {
    %c0_i32 = arith.constant 0 : i32
    %c0_i32_0 = arith.constant 0 : i32
    %c0_i32_1 = arith.constant 0 : i32
    return %arg0, %c0_i32, %c0_i32_0 : i32, i32, i32
  }
  func.func @transform_1(%arg0: i32) -> (i32, i32, i32) {
    %c0_i32 = arith.constant 0 : i32
    %c0_i32_0 = arith.constant 0 : i32
    %c0_i32_1 = arith.constant 0 : i32
    return %arg0, %c0_i32, %c0_i32_0 : i32, i32, i32
  }
  func.func @transform_2(%arg0: i32) -> (i32, i32, i32) {
    %c0_i32 = arith.constant 0 : i32
    %c0_i32_0 = arith.constant 0 : i32
    %c0_i32_1 = arith.constant 0 : i32
    return %arg0, %c0_i32, %c0_i32_0 : i32, i32, i32
  }
  func.func @transform_3(%arg0: i32) -> (i32, i32) {
    %c0_i32 = arith.constant 0 : i32
    %c0_i32_0 = arith.constant 0 : i32
    %c0_i32_1 = arith.constant 0 : i32
    return %c0_i32, %c0_i32_0 : i32, i32
  }
  func.func @transform_4(%arg0: i32) -> (i32, i32) {
    %c0_i32 = arith.constant 0 : i32
    %c0_i32_0 = arith.constant 0 : i32
    %c0_i32_1 = arith.constant 0 : i32
    return %c0_i32, %c0_i32_0 : i32, i32
  }
  func.func @transform_5(%arg0: i32) -> (i32, i32) {
    %c0_i32 = arith.constant 0 : i32
    %c0_i32_0 = arith.constant 0 : i32
    %c0_i32_1 = arith.constant 0 : i32
    return %c0_i32, %c0_i32_0 : i32, i32
  }
  func.func @transform_6(%arg0: i32) -> (i32, i32) {
    %c0_i32 = arith.constant 0 : i32
    %c0_i32_0 = arith.constant 0 : i32
    %c0_i32_1 = arith.constant 0 : i32
    return %c0_i32, %c0_i32_0 : i32, i32
  }
  func.func @transform_7(%arg0: i32) -> (i32, i32) {
    %c0_i32 = arith.constant 0 : i32
    %c0_i32_0 = arith.constant 0 : i32
    %c0_i32_1 = arith.constant 0 : i32
    return %c0_i32, %c0_i32_0 : i32, i32
  }
  func.func @transform_8(%arg0: i32) -> (i32, i32) {
    %c0_i32 = arith.constant 0 : i32
    %c0_i32_0 = arith.constant 0 : i32
    %c0_i32_1 = arith.constant 0 : i32
    return %c0_i32, %c0_i32_0 : i32, i32
  }
  func.func @transform_9(%arg0: i32) -> (i32, i32) {
    %c0_i32 = arith.constant 0 : i32
    %c0_i32_0 = arith.constant 0 : i32
    %c0_i32_1 = arith.constant 0 : i32
    return %c0_i32, %c0_i32_0 : i32, i32
  }
  func.func @transform_10(%arg0: i32) -> (i32, i32) {
    %c0_i32 = arith.constant 0 : i32
    %c0_i32_0 = arith.constant 0 : i32
    %c0_i32_1 = arith.constant 0 : i32
    return %c0_i32, %c0_i32_0 : i32, i32
  }
  func.func @transform_11(%arg0: i32) -> (i32, i32) {
    %c0_i32 = arith.constant 0 : i32
    %c0_i32_0 = arith.constant 0 : i32
    %c0_i32_1 = arith.constant 0 : i32
    return %c0_i32, %c0_i32_0 : i32, i32
  }
  func.func @transform_12(%arg0: i32) -> (i32, i32) {
    %c0_i32 = arith.constant 0 : i32
    %c0_i32_0 = arith.constant 0 : i32
    %c0_i32_1 = arith.constant 0 : i32
    return %c0_i32, %c0_i32_0 : i32, i32
  }
  func.func @transform_13(%arg0: i32) -> (i32, i32) {
    %c0_i32 = arith.constant 0 : i32
    %c0_i32_0 = arith.constant 0 : i32
    %c0_i32_1 = arith.constant 0 : i32
    return %c0_i32, %c0_i32_0 : i32, i32
  }
  func.func @transform_14(%arg0: i32) -> (i32, i32) {
    %c0_i32 = arith.constant 0 : i32
    %c0_i32_0 = arith.constant 0 : i32
    %c0_i32_1 = arith.constant 0 : i32
    return %c0_i32, %c0_i32_0 : i32, i32
  }
  func.func @transform_15(%arg0: i32) -> (i32, i32) {
    %c0_i32 = arith.constant 0 : i32
    %c0_i32_0 = arith.constant 0 : i32
    %c0_i32_1 = arith.constant 0 : i32
    return %c0_i32, %c0_i32_0 : i32, i32
  }
  func.func @transform_16(%arg0: i32) -> (i32, i32) {
    %c0_i32 = arith.constant 0 : i32
    %c0_i32_0 = arith.constant 0 : i32
    %c0_i32_1 = arith.constant 0 : i32
    return %c0_i32, %c0_i32_0 : i32, i32
  }
  func.func @transform_17(%arg0: i32) -> (i32, i32) {
    %c0_i32 = arith.constant 0 : i32
    %c0_i32_0 = arith.constant 0 : i32
    %c0_i32_1 = arith.constant 0 : i32
    return %c0_i32, %c0_i32_0 : i32, i32
  }
  func.func @transform_18(%arg0: i32) -> (i32, i32) {
    %c0_i32 = arith.constant 0 : i32
    %c0_i32_0 = arith.constant 0 : i32
    %c0_i32_1 = arith.constant 0 : i32
    return %c0_i32, %c0_i32_0 : i32, i32
  }
  func.func @transform_19(%arg0: i32) -> (i32, i32) {
    %c0_i32 = arith.constant 0 : i32
    %c0_i32_0 = arith.constant 0 : i32
    %c0_i32_1 = arith.constant 0 : i32
    return %c0_i32, %c0_i32_0 : i32, i32
  }
  func.func @transform_20(%arg0: i32) -> (i32, i32) {
    %c0_i32 = arith.constant 0 : i32
    %c0_i32_0 = arith.constant 0 : i32
    %c0_i32_1 = arith.constant 0 : i32
    return %c0_i32, %c0_i32_0 : i32, i32
  }
  func.func @transform_21(%arg0: i32) -> (i32, i32) {
    %c0_i32 = arith.constant 0 : i32
    %c0_i32_0 = arith.constant 0 : i32
    %c0_i32_1 = arith.constant 0 : i32
    return %c0_i32, %c0_i32_0 : i32, i32
  }
  func.func @transform_22(%arg0: i32) -> (i32, i32) {
    %c0_i32 = arith.constant 0 : i32
    %c0_i32_0 = arith.constant 0 : i32
    %c0_i32_1 = arith.constant 0 : i32
    return %c0_i32, %c0_i32_0 : i32, i32
  }
  func.func @transform_23(%arg0: i32) -> (i32, i32, i32) {
    %c0_i32 = arith.constant 0 : i32
    %c0_i32_0 = arith.constant 0 : i32
    %c0_i32_1 = arith.constant 0 : i32
    return %arg0, %c0_i32, %c0_i32_0 : i32, i32, i32
  }
  func.func @transform_24(%arg0: i32) -> (i32, i32, i32, i32) {
    %c0_i32 = arith.constant 0 : i32
    %c0_i32_0 = arith.constant 0 : i32
    %c0_i32_1 = arith.constant 0 : i32
    %c0_i32_2 = arith.constant 0 : i32
    return %arg0, %c0_i32, %c0_i32_0, %c0_i32_1 : i32, i32, i32, i32
  }
}

module attributes {stable_mosaic.version = 11 : i64} {
  func.func @_qformer_kernel(%arg0: i32, %arg1: memref<1x8x32xf32, #tpu.memory_space<vmem>>, %arg2: memref<1x16x48xf32, #tpu.memory_space<vmem>>, %arg3: memref<1x8x16xf32, #tpu.memory_space<vmem>>, %arg4: memref<1x32xf32, #tpu.memory_space<vmem>>, %arg5: memref<1x32xf32, #tpu.memory_space<vmem>>, %arg6: memref<1x48xf32, #tpu.memory_space<vmem>>, %arg7: memref<1x48xf32, #tpu.memory_space<vmem>>, %arg8: memref<1x32xf32, #tpu.memory_space<vmem>>, %arg9: memref<1x32xf32, #tpu.memory_space<vmem>>, %arg10: memref<32x96xf32, #tpu.memory_space<vmem>>, %arg11: memref<1x96xf32, #tpu.memory_space<vmem>>, %arg12: memref<32x32xf32, #tpu.memory_space<vmem>>, %arg13: memref<1x32xf32, #tpu.memory_space<vmem>>, %arg14: memref<32x32xf32, #tpu.memory_space<vmem>>, %arg15: memref<1x32xf32, #tpu.memory_space<vmem>>, %arg16: memref<48x64xf32, #tpu.memory_space<vmem>>, %arg17: memref<1x64xf32, #tpu.memory_space<vmem>>, %arg18: memref<32x32xf32, #tpu.memory_space<vmem>>, %arg19: memref<1x32xf32, #tpu.memory_space<vmem>>, %arg20: memref<32x128xf32, #tpu.memory_space<vmem>>, %arg21: memref<1x128xf32, #tpu.memory_space<vmem>>, %arg22: memref<128x32xf32, #tpu.memory_space<vmem>>, %arg23: memref<1x32xf32, #tpu.memory_space<vmem>>, %arg24: memref<1x8x32xf32, #tpu.memory_space<vmem>>, %arg25: memref<1x4x8x16xf32, #tpu.memory_space<vmem>>) attributes {dimension_semantics = [#tpu.dimension_semantics<parallel>], iteration_bounds = array<i64: 2>, scalar_prefetch = 0 : i64, scratch_operands = 0 : i64, tpu.core_type = #tpu.core_type<tc>, window_params = [{transform_indices = @transform_0, window_bounds = array<i64: 1, 8, 32>}, {transform_indices = @transform_1, window_bounds = array<i64: 1, 16, 48>}, {transform_indices = @transform_2, window_bounds = array<i64: 1, 8, 16>}, {pipeline_mode = #tpu.pipeline_mode<synchronous>, transform_indices = @transform_3, window_bounds = array<i64: 1, 32>}, {pipeline_mode = #tpu.pipeline_mode<synchronous>, transform_indices = @transform_4, window_bounds = array<i64: 1, 32>}, {pipeline_mode = #tpu.pipeline_mode<synchronous>, transform_indices = @transform_5, window_bounds = array<i64: 1, 48>}, {pipeline_mode = #tpu.pipeline_mode<synchronous>, transform_indices = @transform_6, window_bounds = array<i64: 1, 48>}, {pipeline_mode = #tpu.pipeline_mode<synchronous>, transform_indices = @transform_7, window_bounds = array<i64: 1, 32>}, {pipeline_mode = #tpu.pipeline_mode<synchronous>, transform_indices = @transform_8, window_bounds = array<i64: 1, 32>}, {pipeline_mode = #tpu.pipeline_mode<synchronous>, transform_indices = @transform_9, window_bounds = array<i64: 32, 96>}, {pipeline_mode = #tpu.pipeline_mode<synchronous>, transform_indices = @transform_10, window_bounds = array<i64: 1, 96>}, {pipeline_mode = #tpu.pipeline_mode<synchronous>, transform_indices = @transform_11, window_bounds = array<i64: 32, 32>}, {pipeline_mode = #tpu.pipeline_mode<synchronous>, transform_indices = @transform_12, window_bounds = array<i64: 1, 32>}, {pipeline_mode = #tpu.pipeline_mode<synchronous>, transform_indices = @transform_13, window_bounds = array<i64: 32, 32>}, {pipeline_mode = #tpu.pipeline_mode<synchronous>, transform_indices = @transform_14, window_bounds = array<i64: 1, 32>}, {pipeline_mode = #tpu.pipeline_mode<synchronous>, transform_indices = @transform_15, window_bounds = array<i64: 48, 64>}, {pipeline_mode = #tpu.pipeline_mode<synchronous>, transform_indices = @transform_16, window_bounds = array<i64: 1, 64>}, {pipeline_mode = #tpu.pipeline_mode<synchronous>, transform_indices = @transform_17, window_bounds = array<i64: 32, 32>}, {pipeline_mode = #tpu.pipeline_mode<synchronous>, transform_indices = @transform_18, window_bounds = array<i64: 1, 32>}, {pipeline_mode = #tpu.pipeline_mode<synchronous>, transform_indices = @transform_19, window_bounds = array<i64: 32, 128>}, {pipeline_mode = #tpu.pipeline_mode<synchronous>, transform_indices = @transform_20, window_bounds = array<i64: 1, 128>}, {pipeline_mode = #tpu.pipeline_mode<synchronous>, transform_indices = @transform_21, window_bounds = array<i64: 128, 32>}, {pipeline_mode = #tpu.pipeline_mode<synchronous>, transform_indices = @transform_22, window_bounds = array<i64: 1, 32>}, {transform_indices = @transform_23, window_bounds = array<i64: 1, 8, 32>}, {transform_indices = @transform_24, window_bounds = array<i64: 1, 4, 8, 16>}]} {
    %c0 = arith.constant 0 : index
    %c0_0 = arith.constant 0 : index
    %c0_1 = arith.constant 0 : index
    %0 = vector.load %arg1[%c0, %c0_0, %c0_1] : memref<1x8x32xf32, #tpu.memory_space<vmem>>, vector<1x8x32xf32>
    %1 = vector.shape_cast %0 : vector<1x8x32xf32> to vector<8x32xf32>
    %c0_2 = arith.constant 0 : index
    %c0_3 = arith.constant 0 : index
    %2 = vector.load %arg4[%c0_2, %c0_3] : memref<1x32xf32, #tpu.memory_space<vmem>>, vector<1x32xf32>
    %c0_4 = arith.constant 0 : index
    %c0_5 = arith.constant 0 : index
    %3 = vector.load %arg5[%c0_4, %c0_5] : memref<1x32xf32, #tpu.memory_space<vmem>>, vector<1x32xf32>
    %cst = arith.constant dense<0.000000e+00> : vector<8xf32>
    %4 = vector.multi_reduction <add>, %1, %cst [1] : vector<8x32xf32> to vector<8xf32>
    %5 = vector.shape_cast %4 : vector<8xf32> to vector<8x1xf32>
    %cst_6 = arith.constant 3.200000e+01 : f32
    %6 = vector.broadcast %cst_6 : f32 to vector<8x1xf32>
    %7 = arith.divf %5, %6 : vector<8x1xf32>
    %8 = vector.broadcast %7 : vector<8x1xf32> to vector<8x32xf32>
    %9 = arith.subf %1, %8 : vector<8x32xf32>
    %10 = arith.mulf %9, %9 : vector<8x32xf32>
    %cst_7 = arith.constant dense<0.000000e+00> : vector<8xf32>
    %11 = vector.multi_reduction <add>, %10, %cst_7 [1] : vector<8x32xf32> to vector<8xf32>
    %12 = vector.shape_cast %11 : vector<8xf32> to vector<8x1xf32>
    %cst_8 = arith.constant 3.200000e+01 : f32
    %13 = vector.broadcast %cst_8 : f32 to vector<8x1xf32>
    %14 = arith.divf %12, %13 : vector<8x1xf32>
    %15 = vector.broadcast %7 : vector<8x1xf32> to vector<8x32xf32>
    %16 = arith.subf %1, %15 : vector<8x32xf32>
    %cst_9 = arith.constant 9.99999974E-6 : f32
    %17 = vector.broadcast %cst_9 : f32 to vector<8x1xf32>
    %18 = arith.addf %14, %17 : vector<8x1xf32>
    %19 = math.rsqrt %18 : vector<8x1xf32>
    %20 = vector.broadcast %19 : vector<8x1xf32> to vector<8x32xf32>
    %21 = arith.mulf %16, %20 : vector<8x32xf32>
    %22 = vector.broadcast %2 : vector<1x32xf32> to vector<8x32xf32>
    %23 = arith.mulf %21, %22 : vector<8x32xf32>
    %24 = vector.broadcast %3 : vector<1x32xf32> to vector<8x32xf32>
    %25 = arith.addf %23, %24 : vector<8x32xf32>
    %c0_10 = arith.constant 0 : index
    %c0_11 = arith.constant 0 : index
    %26 = vector.load %arg10[%c0_10, %c0_11] : memref<32x96xf32, #tpu.memory_space<vmem>>, vector<32x96xf32>
    %cst_12 = arith.constant dense<0.000000e+00> : vector<8x96xf32>
    %27 = tpu.matmul %25, %26, %cst_12 {dimension_numbers = #tpu.dot_dimension_numbers<[1], [0], [0], [1], [0, 0, 1, 1], [], []>} : vector<8x32xf32>, vector<32x96xf32>, vector<8x96xf32> -> vector<8x96xf32>
    %c0_13 = arith.constant 0 : index
    %c0_14 = arith.constant 0 : index
    %28 = vector.load %arg11[%c0_13, %c0_14] : memref<1x96xf32, #tpu.memory_space<vmem>>, vector<1x96xf32>
    %29 = vector.broadcast %28 : vector<1x96xf32> to vector<8x96xf32>
    %30 = arith.addf %27, %29 : vector<8x96xf32>
    %31 = vector.extract_strided_slice %30 {offsets = [0, 0], sizes = [8, 32], strides = [1, 1]} : vector<8x96xf32> to vector<8x32xf32>
    %32 = vector.shape_cast %31 : vector<8x32xf32> to vector<1x8x32xf32>
    %33 = vector.extract_strided_slice %30 {offsets = [0, 32], sizes = [8, 32], strides = [1, 1]} : vector<8x96xf32> to vector<8x32xf32>
    %34 = vector.shape_cast %33 : vector<8x32xf32> to vector<1x8x32xf32>
    %35 = vector.extract_strided_slice %30 {offsets = [0, 64], sizes = [8, 32], strides = [1, 1]} : vector<8x96xf32> to vector<8x32xf32>
    %36 = vector.shape_cast %35 : vector<8x32xf32> to vector<1x8x32xf32>
    %37 = vector.extract_strided_slice %32 {offsets = [0, 0, 0], sizes = [1, 8, 8], strides = [1, 1, 1]} : vector<1x8x32xf32> to vector<1x8x8xf32>
    %38 = vector.extract_strided_slice %34 {offsets = [0, 0, 0], sizes = [1, 8, 8], strides = [1, 1, 1]} : vector<1x8x32xf32> to vector<1x8x8xf32>
    "tpu.trace_start"() <{level = 10 : i32, message = "bqd,bkd->bqk"}> : () -> ()
    %cst_15 = arith.constant dense<0.000000e+00> : vector<1x8x8xf32>
    %39 = tpu.matmul %37, %38, %cst_15 {dimension_numbers = #tpu.dot_dimension_numbers<[2], [2], [1], [1], [0, 0, 0, 1, 1, 1], [0], [0]>} : vector<1x8x8xf32>, vector<1x8x8xf32>, vector<1x8x8xf32> -> vector<1x8x8xf32>
    "tpu.trace_stop"() : () -> ()
    %cst_16 = arith.constant 0.353553385 : f32
    %40 = vector.broadcast %cst_16 : f32 to vector<1x8x8xf32>
    %41 = arith.mulf %39, %40 : vector<1x8x8xf32>
    %cst_17 = arith.constant dense<0xFF800000> : vector<1x8xf32>
    %42 = vector.multi_reduction <maximumf>, %41, %cst_17 [2] : vector<1x8x8xf32> to vector<1x8xf32>
    %43 = vector.shape_cast %42 : vector<1x8xf32> to vector<1x8x1xf32>
    %44 = vector.broadcast %43 : vector<1x8x1xf32> to vector<1x8x8xf32>
    %45 = arith.subf %41, %44 : vector<1x8x8xf32>
    %46 = math.exp %45 : vector<1x8x8xf32>
    %cst_18 = arith.constant dense<0.000000e+00> : vector<1x8xf32>
    %47 = vector.multi_reduction <add>, %46, %cst_18 [2] : vector<1x8x8xf32> to vector<1x8xf32>
    %48 = vector.shape_cast %47 : vector<1x8xf32> to vector<1x8x1xf32>
    %49 = tpu.reciprocal %48 : vector<1x8x1xf32> -> vector<1x8x1xf32>
    %50 = vector.broadcast %49 : vector<1x8x1xf32> to vector<1x8x8xf32>
    %51 = arith.mulf %46, %50 : vector<1x8x8xf32>
    %52 = vector.extract_strided_slice %36 {offsets = [0, 0, 0], sizes = [1, 8, 8], strides = [1, 1, 1]} : vector<1x8x32xf32> to vector<1x8x8xf32>
    "tpu.trace_start"() <{level = 10 : i32, message = "bqk,bkd->bqd"}> : () -> ()
    %cst_19 = arith.constant dense<0.000000e+00> : vector<1x8x8xf32>
    %53 = tpu.matmul %51, %52, %cst_19 {dimension_numbers = #tpu.dot_dimension_numbers<[2], [1], [1], [2], [0, 0, 0, 1, 1, 2], [0], [0]>} : vector<1x8x8xf32>, vector<1x8x8xf32>, vector<1x8x8xf32> -> vector<1x8x8xf32>
    "tpu.trace_stop"() : () -> ()
    %54 = vector.extract_strided_slice %32 {offsets = [0, 0, 8], sizes = [1, 8, 8], strides = [1, 1, 1]} : vector<1x8x32xf32> to vector<1x8x8xf32>
    %55 = vector.extract_strided_slice %34 {offsets = [0, 0, 8], sizes = [1, 8, 8], strides = [1, 1, 1]} : vector<1x8x32xf32> to vector<1x8x8xf32>
    "tpu.trace_start"() <{level = 10 : i32, message = "bqd,bkd->bqk"}> : () -> ()
    %cst_20 = arith.constant dense<0.000000e+00> : vector<1x8x8xf32>
    %56 = tpu.matmul %54, %55, %cst_20 {dimension_numbers = #tpu.dot_dimension_numbers<[2], [2], [1], [1], [0, 0, 0, 1, 1, 1], [0], [0]>} : vector<1x8x8xf32>, vector<1x8x8xf32>, vector<1x8x8xf32> -> vector<1x8x8xf32>
    "tpu.trace_stop"() : () -> ()
    %cst_21 = arith.constant 0.353553385 : f32
    %57 = vector.broadcast %cst_21 : f32 to vector<1x8x8xf32>
    %58 = arith.mulf %56, %57 : vector<1x8x8xf32>
    %cst_22 = arith.constant dense<0xFF800000> : vector<1x8xf32>
    %59 = vector.multi_reduction <maximumf>, %58, %cst_22 [2] : vector<1x8x8xf32> to vector<1x8xf32>
    %60 = vector.shape_cast %59 : vector<1x8xf32> to vector<1x8x1xf32>
    %61 = vector.broadcast %60 : vector<1x8x1xf32> to vector<1x8x8xf32>
    %62 = arith.subf %58, %61 : vector<1x8x8xf32>
    %63 = math.exp %62 : vector<1x8x8xf32>
    %cst_23 = arith.constant dense<0.000000e+00> : vector<1x8xf32>
    %64 = vector.multi_reduction <add>, %63, %cst_23 [2] : vector<1x8x8xf32> to vector<1x8xf32>
    %65 = vector.shape_cast %64 : vector<1x8xf32> to vector<1x8x1xf32>
    %66 = tpu.reciprocal %65 : vector<1x8x1xf32> -> vector<1x8x1xf32>
    %67 = vector.broadcast %66 : vector<1x8x1xf32> to vector<1x8x8xf32>
    %68 = arith.mulf %63, %67 : vector<1x8x8xf32>
    %69 = vector.extract_strided_slice %36 {offsets = [0, 0, 8], sizes = [1, 8, 8], strides = [1, 1, 1]} : vector<1x8x32xf32> to vector<1x8x8xf32>
    "tpu.trace_start"() <{level = 10 : i32, message = "bqk,bkd->bqd"}> : () -> ()
    %cst_24 = arith.constant dense<0.000000e+00> : vector<1x8x8xf32>
    %70 = tpu.matmul %68, %69, %cst_24 {dimension_numbers = #tpu.dot_dimension_numbers<[2], [1], [1], [2], [0, 0, 0, 1, 1, 2], [0], [0]>} : vector<1x8x8xf32>, vector<1x8x8xf32>, vector<1x8x8xf32> -> vector<1x8x8xf32>
    "tpu.trace_stop"() : () -> ()
    %71 = vector.extract_strided_slice %32 {offsets = [0, 0, 16], sizes = [1, 8, 8], strides = [1, 1, 1]} : vector<1x8x32xf32> to vector<1x8x8xf32>
    %72 = vector.extract_strided_slice %34 {offsets = [0, 0, 16], sizes = [1, 8, 8], strides = [1, 1, 1]} : vector<1x8x32xf32> to vector<1x8x8xf32>
    "tpu.trace_start"() <{level = 10 : i32, message = "bqd,bkd->bqk"}> : () -> ()
    %cst_25 = arith.constant dense<0.000000e+00> : vector<1x8x8xf32>
    %73 = tpu.matmul %71, %72, %cst_25 {dimension_numbers = #tpu.dot_dimension_numbers<[2], [2], [1], [1], [0, 0, 0, 1, 1, 1], [0], [0]>} : vector<1x8x8xf32>, vector<1x8x8xf32>, vector<1x8x8xf32> -> vector<1x8x8xf32>
    "tpu.trace_stop"() : () -> ()
    %cst_26 = arith.constant 0.353553385 : f32
    %74 = vector.broadcast %cst_26 : f32 to vector<1x8x8xf32>
    %75 = arith.mulf %73, %74 : vector<1x8x8xf32>
    %cst_27 = arith.constant dense<0xFF800000> : vector<1x8xf32>
    %76 = vector.multi_reduction <maximumf>, %75, %cst_27 [2] : vector<1x8x8xf32> to vector<1x8xf32>
    %77 = vector.shape_cast %76 : vector<1x8xf32> to vector<1x8x1xf32>
    %78 = vector.broadcast %77 : vector<1x8x1xf32> to vector<1x8x8xf32>
    %79 = arith.subf %75, %78 : vector<1x8x8xf32>
    %80 = math.exp %79 : vector<1x8x8xf32>
    %cst_28 = arith.constant dense<0.000000e+00> : vector<1x8xf32>
    %81 = vector.multi_reduction <add>, %80, %cst_28 [2] : vector<1x8x8xf32> to vector<1x8xf32>
    %82 = vector.shape_cast %81 : vector<1x8xf32> to vector<1x8x1xf32>
    %83 = tpu.reciprocal %82 : vector<1x8x1xf32> -> vector<1x8x1xf32>
    %84 = vector.broadcast %83 : vector<1x8x1xf32> to vector<1x8x8xf32>
    %85 = arith.mulf %80, %84 : vector<1x8x8xf32>
    %86 = vector.extract_strided_slice %36 {offsets = [0, 0, 16], sizes = [1, 8, 8], strides = [1, 1, 1]} : vector<1x8x32xf32> to vector<1x8x8xf32>
    "tpu.trace_start"() <{level = 10 : i32, message = "bqk,bkd->bqd"}> : () -> ()
    %cst_29 = arith.constant dense<0.000000e+00> : vector<1x8x8xf32>
    %87 = tpu.matmul %85, %86, %cst_29 {dimension_numbers = #tpu.dot_dimension_numbers<[2], [1], [1], [2], [0, 0, 0, 1, 1, 2], [0], [0]>} : vector<1x8x8xf32>, vector<1x8x8xf32>, vector<1x8x8xf32> -> vector<1x8x8xf32>
    "tpu.trace_stop"() : () -> ()
    %88 = vector.extract_strided_slice %32 {offsets = [0, 0, 24], sizes = [1, 8, 8], strides = [1, 1, 1]} : vector<1x8x32xf32> to vector<1x8x8xf32>
    %89 = vector.extract_strided_slice %34 {offsets = [0, 0, 24], sizes = [1, 8, 8], strides = [1, 1, 1]} : vector<1x8x32xf32> to vector<1x8x8xf32>
    "tpu.trace_start"() <{level = 10 : i32, message = "bqd,bkd->bqk"}> : () -> ()
    %cst_30 = arith.constant dense<0.000000e+00> : vector<1x8x8xf32>
    %90 = tpu.matmul %88, %89, %cst_30 {dimension_numbers = #tpu.dot_dimension_numbers<[2], [2], [1], [1], [0, 0, 0, 1, 1, 1], [0], [0]>} : vector<1x8x8xf32>, vector<1x8x8xf32>, vector<1x8x8xf32> -> vector<1x8x8xf32>
    "tpu.trace_stop"() : () -> ()
    %cst_31 = arith.constant 0.353553385 : f32
    %91 = vector.broadcast %cst_31 : f32 to vector<1x8x8xf32>
    %92 = arith.mulf %90, %91 : vector<1x8x8xf32>
    %cst_32 = arith.constant dense<0xFF800000> : vector<1x8xf32>
    %93 = vector.multi_reduction <maximumf>, %92, %cst_32 [2] : vector<1x8x8xf32> to vector<1x8xf32>
    %94 = vector.shape_cast %93 : vector<1x8xf32> to vector<1x8x1xf32>
    %95 = vector.broadcast %94 : vector<1x8x1xf32> to vector<1x8x8xf32>
    %96 = arith.subf %92, %95 : vector<1x8x8xf32>
    %97 = math.exp %96 : vector<1x8x8xf32>
    %cst_33 = arith.constant dense<0.000000e+00> : vector<1x8xf32>
    %98 = vector.multi_reduction <add>, %97, %cst_33 [2] : vector<1x8x8xf32> to vector<1x8xf32>
    %99 = vector.shape_cast %98 : vector<1x8xf32> to vector<1x8x1xf32>
    %100 = tpu.reciprocal %99 : vector<1x8x1xf32> -> vector<1x8x1xf32>
    %101 = vector.broadcast %100 : vector<1x8x1xf32> to vector<1x8x8xf32>
    %102 = arith.mulf %97, %101 : vector<1x8x8xf32>
    %103 = vector.extract_strided_slice %36 {offsets = [0, 0, 24], sizes = [1, 8, 8], strides = [1, 1, 1]} : vector<1x8x32xf32> to vector<1x8x8xf32>
    "tpu.trace_start"() <{level = 10 : i32, message = "bqk,bkd->bqd"}> : () -> ()
    %cst_34 = arith.constant dense<0.000000e+00> : vector<1x8x8xf32>
    %104 = tpu.matmul %102, %103, %cst_34 {dimension_numbers = #tpu.dot_dimension_numbers<[2], [1], [1], [2], [0, 0, 0, 1, 1, 2], [0], [0]>} : vector<1x8x8xf32>, vector<1x8x8xf32>, vector<1x8x8xf32> -> vector<1x8x8xf32>
    "tpu.trace_stop"() : () -> ()
    %105 = tpu.concatenate %53, %70, %87, %104 in 2 : vector<1x8x8xf32>, vector<1x8x8xf32>, vector<1x8x8xf32>, vector<1x8x8xf32> -> vector<1x8x32xf32>
    %106 = vector.shape_cast %105 : vector<1x8x32xf32> to vector<8x32xf32>
    %c0_35 = arith.constant 0 : index
    %c0_36 = arith.constant 0 : index
    %107 = vector.load %arg12[%c0_35, %c0_36] : memref<32x32xf32, #tpu.memory_space<vmem>>, vector<32x32xf32>
    %cst_37 = arith.constant dense<0.000000e+00> : vector<8x32xf32>
    %108 = tpu.matmul %106, %107, %cst_37 {dimension_numbers = #tpu.dot_dimension_numbers<[1], [0], [0], [1], [0, 0, 1, 1], [], []>} : vector<8x32xf32>, vector<32x32xf32>, vector<8x32xf32> -> vector<8x32xf32>
    %c0_38 = arith.constant 0 : index
    %c0_39 = arith.constant 0 : index
    %109 = vector.load %arg13[%c0_38, %c0_39] : memref<1x32xf32, #tpu.memory_space<vmem>>, vector<1x32xf32>
    %110 = vector.broadcast %109 : vector<1x32xf32> to vector<8x32xf32>
    %111 = arith.addf %108, %110 : vector<8x32xf32>
    %112 = arith.addf %1, %111 : vector<8x32xf32>
    %c0_40 = arith.constant 0 : index
    %c0_41 = arith.constant 0 : index
    %113 = vector.load %arg4[%c0_40, %c0_41] : memref<1x32xf32, #tpu.memory_space<vmem>>, vector<1x32xf32>
    %c0_42 = arith.constant 0 : index
    %c0_43 = arith.constant 0 : index
    %114 = vector.load %arg5[%c0_42, %c0_43] : memref<1x32xf32, #tpu.memory_space<vmem>>, vector<1x32xf32>
    %cst_44 = arith.constant dense<0.000000e+00> : vector<8xf32>
    %115 = vector.multi_reduction <add>, %112, %cst_44 [1] : vector<8x32xf32> to vector<8xf32>
    %116 = vector.shape_cast %115 : vector<8xf32> to vector<8x1xf32>
    %cst_45 = arith.constant 3.200000e+01 : f32
    %117 = vector.broadcast %cst_45 : f32 to vector<8x1xf32>
    %118 = arith.divf %116, %117 : vector<8x1xf32>
    %119 = vector.broadcast %118 : vector<8x1xf32> to vector<8x32xf32>
    %120 = arith.subf %112, %119 : vector<8x32xf32>
    %121 = arith.mulf %120, %120 : vector<8x32xf32>
    %cst_46 = arith.constant dense<0.000000e+00> : vector<8xf32>
    %122 = vector.multi_reduction <add>, %121, %cst_46 [1] : vector<8x32xf32> to vector<8xf32>
    %123 = vector.shape_cast %122 : vector<8xf32> to vector<8x1xf32>
    %cst_47 = arith.constant 3.200000e+01 : f32
    %124 = vector.broadcast %cst_47 : f32 to vector<8x1xf32>
    %125 = arith.divf %123, %124 : vector<8x1xf32>
    %126 = vector.broadcast %118 : vector<8x1xf32> to vector<8x32xf32>
    %127 = arith.subf %112, %126 : vector<8x32xf32>
    %cst_48 = arith.constant 9.99999974E-6 : f32
    %128 = vector.broadcast %cst_48 : f32 to vector<8x1xf32>
    %129 = arith.addf %125, %128 : vector<8x1xf32>
    %130 = math.rsqrt %129 : vector<8x1xf32>
    %131 = vector.broadcast %130 : vector<8x1xf32> to vector<8x32xf32>
    %132 = arith.mulf %127, %131 : vector<8x32xf32>
    %133 = vector.broadcast %113 : vector<1x32xf32> to vector<8x32xf32>
    %134 = arith.mulf %132, %133 : vector<8x32xf32>
    %135 = vector.broadcast %114 : vector<1x32xf32> to vector<8x32xf32>
    %136 = arith.addf %134, %135 : vector<8x32xf32>
    %c0_49 = arith.constant 0 : index
    %c0_50 = arith.constant 0 : index
    %c0_51 = arith.constant 0 : index
    %137 = vector.load %arg2[%c0_49, %c0_50, %c0_51] : memref<1x16x48xf32, #tpu.memory_space<vmem>>, vector<1x16x48xf32>
    %138 = vector.shape_cast %137 : vector<1x16x48xf32> to vector<16x48xf32>
    %c0_52 = arith.constant 0 : index
    %c0_53 = arith.constant 0 : index
    %139 = vector.load %arg6[%c0_52, %c0_53] : memref<1x48xf32, #tpu.memory_space<vmem>>, vector<1x48xf32>
    %c0_54 = arith.constant 0 : index
    %c0_55 = arith.constant 0 : index
    %140 = vector.load %arg7[%c0_54, %c0_55] : memref<1x48xf32, #tpu.memory_space<vmem>>, vector<1x48xf32>
    %cst_56 = arith.constant dense<0.000000e+00> : vector<16xf32>
    %141 = vector.multi_reduction <add>, %138, %cst_56 [1] : vector<16x48xf32> to vector<16xf32>
    %142 = vector.shape_cast %141 : vector<16xf32> to vector<16x1xf32>
    %cst_57 = arith.constant 4.800000e+01 : f32
    %143 = vector.broadcast %cst_57 : f32 to vector<16x1xf32>
    %144 = arith.divf %142, %143 : vector<16x1xf32>
    %145 = vector.broadcast %144 : vector<16x1xf32> to vector<16x48xf32>
    %146 = arith.subf %138, %145 : vector<16x48xf32>
    %147 = arith.mulf %146, %146 : vector<16x48xf32>
    %cst_58 = arith.constant dense<0.000000e+00> : vector<16xf32>
    %148 = vector.multi_reduction <add>, %147, %cst_58 [1] : vector<16x48xf32> to vector<16xf32>
    %149 = vector.shape_cast %148 : vector<16xf32> to vector<16x1xf32>
    %cst_59 = arith.constant 4.800000e+01 : f32
    %150 = vector.broadcast %cst_59 : f32 to vector<16x1xf32>
    %151 = arith.divf %149, %150 : vector<16x1xf32>
    %152 = vector.broadcast %144 : vector<16x1xf32> to vector<16x48xf32>
    %153 = arith.subf %138, %152 : vector<16x48xf32>
    %cst_60 = arith.constant 9.99999974E-6 : f32
    %154 = vector.broadcast %cst_60 : f32 to vector<16x1xf32>
    %155 = arith.addf %151, %154 : vector<16x1xf32>
    %156 = math.rsqrt %155 : vector<16x1xf32>
    %157 = vector.broadcast %156 : vector<16x1xf32> to vector<16x48xf32>
    %158 = arith.mulf %153, %157 : vector<16x48xf32>
    %159 = vector.broadcast %139 : vector<1x48xf32> to vector<16x48xf32>
    %160 = arith.mulf %158, %159 : vector<16x48xf32>
    %161 = vector.broadcast %140 : vector<1x48xf32> to vector<16x48xf32>
    %162 = arith.addf %160, %161 : vector<16x48xf32>
    %c0_61 = arith.constant 0 : index
    %c0_62 = arith.constant 0 : index
    %163 = vector.load %arg14[%c0_61, %c0_62] : memref<32x32xf32, #tpu.memory_space<vmem>>, vector<32x32xf32>
    %cst_63 = arith.constant dense<0.000000e+00> : vector<8x32xf32>
    %164 = tpu.matmul %136, %163, %cst_63 {dimension_numbers = #tpu.dot_dimension_numbers<[1], [0], [0], [1], [0, 0, 1, 1], [], []>} : vector<8x32xf32>, vector<32x32xf32>, vector<8x32xf32> -> vector<8x32xf32>
    %c0_64 = arith.constant 0 : index
    %c0_65 = arith.constant 0 : index
    %165 = vector.load %arg15[%c0_64, %c0_65] : memref<1x32xf32, #tpu.memory_space<vmem>>, vector<1x32xf32>
    %166 = vector.broadcast %165 : vector<1x32xf32> to vector<8x32xf32>
    %167 = arith.addf %164, %166 : vector<8x32xf32>
    %168 = vector.shape_cast %167 : vector<8x32xf32> to vector<1x8x32xf32>
    %c0_66 = arith.constant 0 : index
    %c0_67 = arith.constant 0 : index
    %169 = vector.load %arg16[%c0_66, %c0_67] : memref<48x64xf32, #tpu.memory_space<vmem>>, vector<48x64xf32>
    %cst_68 = arith.constant dense<0.000000e+00> : vector<16x64xf32>
    %170 = tpu.matmul %162, %169, %cst_68 {dimension_numbers = #tpu.dot_dimension_numbers<[1], [0], [0], [1], [0, 0, 1, 1], [], []>} : vector<16x48xf32>, vector<48x64xf32>, vector<16x64xf32> -> vector<16x64xf32>
    %c0_69 = arith.constant 0 : index
    %c0_70 = arith.constant 0 : index
    %171 = vector.load %arg17[%c0_69, %c0_70] : memref<1x64xf32, #tpu.memory_space<vmem>>, vector<1x64xf32>
    %172 = vector.broadcast %171 : vector<1x64xf32> to vector<16x64xf32>
    %173 = arith.addf %170, %172 : vector<16x64xf32>
    %174 = vector.extract_strided_slice %173 {offsets = [0, 0], sizes = [16, 32], strides = [1, 1]} : vector<16x64xf32> to vector<16x32xf32>
    %175 = vector.shape_cast %174 : vector<16x32xf32> to vector<1x16x32xf32>
    %176 = vector.extract_strided_slice %173 {offsets = [0, 32], sizes = [16, 32], strides = [1, 1]} : vector<16x64xf32> to vector<16x32xf32>
    %177 = vector.shape_cast %176 : vector<16x32xf32> to vector<1x16x32xf32>
    %c0_71 = arith.constant 0 : index
    %c0_72 = arith.constant 0 : index
    %c0_73 = arith.constant 0 : index
    %178 = vector.load %arg3[%c0_71, %c0_72, %c0_73] : memref<1x8x16xf32, #tpu.memory_space<vmem>>, vector<1x8x16xf32>
    %179 = vector.extract_strided_slice %168 {offsets = [0, 0, 0], sizes = [1, 8, 8], strides = [1, 1, 1]} : vector<1x8x32xf32> to vector<1x8x8xf32>
    %180 = vector.extract_strided_slice %175 {offsets = [0, 0, 0], sizes = [1, 16, 8], strides = [1, 1, 1]} : vector<1x16x32xf32> to vector<1x16x8xf32>
    "tpu.trace_start"() <{level = 10 : i32, message = "bqd,bkd->bqk"}> : () -> ()
    %cst_74 = arith.constant dense<0.000000e+00> : vector<1x8x16xf32>
    %181 = tpu.matmul %179, %180, %cst_74 {dimension_numbers = #tpu.dot_dimension_numbers<[2], [2], [1], [1], [0, 0, 0, 1, 1, 1], [0], [0]>} : vector<1x8x8xf32>, vector<1x16x8xf32>, vector<1x8x16xf32> -> vector<1x8x16xf32>
    "tpu.trace_stop"() : () -> ()
    %cst_75 = arith.constant 0.353553385 : f32
    %182 = vector.broadcast %cst_75 : f32 to vector<1x8x16xf32>
    %183 = arith.mulf %181, %182 : vector<1x8x16xf32>
    %184 = arith.addf %183, %178 : vector<1x8x16xf32>
    %cst_76 = arith.constant dense<0xFF800000> : vector<1x8xf32>
    %185 = vector.multi_reduction <maximumf>, %184, %cst_76 [2] : vector<1x8x16xf32> to vector<1x8xf32>
    %186 = vector.shape_cast %185 : vector<1x8xf32> to vector<1x8x1xf32>
    %187 = vector.broadcast %186 : vector<1x8x1xf32> to vector<1x8x16xf32>
    %188 = arith.subf %184, %187 : vector<1x8x16xf32>
    %189 = math.exp %188 : vector<1x8x16xf32>
    %cst_77 = arith.constant dense<0.000000e+00> : vector<1x8xf32>
    %190 = vector.multi_reduction <add>, %189, %cst_77 [2] : vector<1x8x16xf32> to vector<1x8xf32>
    %191 = vector.shape_cast %190 : vector<1x8xf32> to vector<1x8x1xf32>
    %192 = tpu.reciprocal %191 : vector<1x8x1xf32> -> vector<1x8x1xf32>
    %193 = vector.broadcast %192 : vector<1x8x1xf32> to vector<1x8x16xf32>
    %194 = arith.mulf %189, %193 : vector<1x8x16xf32>
    %c0_78 = arith.constant 0 : index
    %c0_79 = arith.constant 0 : index
    %c0_80 = arith.constant 0 : index
    %c0_81 = arith.constant 0 : index
    %195 = vector.load %arg25[%c0_78, %c0_79, %c0_80, %c0_81] : memref<1x4x8x16xf32, #tpu.memory_space<vmem>>, vector<1x1x8x16xf32>
    %196 = vector.shape_cast %195 : vector<1x1x8x16xf32> to vector<1x8x16xf32>
    %197 = vector.shape_cast %194 : vector<1x8x16xf32> to vector<1x1x8x16xf32>
    tpu.vector_store %arg25[%c0_78, %c0_79, %c0_80, %c0_81], %197 {strides = array<i32>} : memref<1x4x8x16xf32, #tpu.memory_space<vmem>>, vector<1x1x8x16xf32>,
    %198 = vector.extract_strided_slice %177 {offsets = [0, 0, 0], sizes = [1, 16, 8], strides = [1, 1, 1]} : vector<1x16x32xf32> to vector<1x16x8xf32>
    "tpu.trace_start"() <{level = 10 : i32, message = "bqk,bkd->bqd"}> : () -> ()
    %cst_82 = arith.constant dense<0.000000e+00> : vector<1x8x8xf32>
    %199 = tpu.matmul %194, %198, %cst_82 {dimension_numbers = #tpu.dot_dimension_numbers<[2], [1], [1], [2], [0, 0, 0, 1, 1, 2], [0], [0]>} : vector<1x8x16xf32>, vector<1x16x8xf32>, vector<1x8x8xf32> -> vector<1x8x8xf32>
    "tpu.trace_stop"() : () -> ()
    %200 = vector.extract_strided_slice %168 {offsets = [0, 0, 8], sizes = [1, 8, 8], strides = [1, 1, 1]} : vector<1x8x32xf32> to vector<1x8x8xf32>
    %201 = vector.extract_strided_slice %175 {offsets = [0, 0, 8], sizes = [1, 16, 8], strides = [1, 1, 1]} : vector<1x16x32xf32> to vector<1x16x8xf32>
    "tpu.trace_start"() <{level = 10 : i32, message = "bqd,bkd->bqk"}> : () -> ()
    %cst_83 = arith.constant dense<0.000000e+00> : vector<1x8x16xf32>
    %202 = tpu.matmul %200, %201, %cst_83 {dimension_numbers = #tpu.dot_dimension_numbers<[2], [2], [1], [1], [0, 0, 0, 1, 1, 1], [0], [0]>} : vector<1x8x8xf32>, vector<1x16x8xf32>, vector<1x8x16xf32> -> vector<1x8x16xf32>
    "tpu.trace_stop"() : () -> ()
    %cst_84 = arith.constant 0.353553385 : f32
    %203 = vector.broadcast %cst_84 : f32 to vector<1x8x16xf32>
    %204 = arith.mulf %202, %203 : vector<1x8x16xf32>
    %205 = arith.addf %204, %178 : vector<1x8x16xf32>
    %cst_85 = arith.constant dense<0xFF800000> : vector<1x8xf32>
    %206 = vector.multi_reduction <maximumf>, %205, %cst_85 [2] : vector<1x8x16xf32> to vector<1x8xf32>
    %207 = vector.shape_cast %206 : vector<1x8xf32> to vector<1x8x1xf32>
    %208 = vector.broadcast %207 : vector<1x8x1xf32> to vector<1x8x16xf32>
    %209 = arith.subf %205, %208 : vector<1x8x16xf32>
    %210 = math.exp %209 : vector<1x8x16xf32>
    %cst_86 = arith.constant dense<0.000000e+00> : vector<1x8xf32>
    %211 = vector.multi_reduction <add>, %210, %cst_86 [2] : vector<1x8x16xf32> to vector<1x8xf32>
    %212 = vector.shape_cast %211 : vector<1x8xf32> to vector<1x8x1xf32>
    %213 = tpu.reciprocal %212 : vector<1x8x1xf32> -> vector<1x8x1xf32>
    %214 = vector.broadcast %213 : vector<1x8x1xf32> to vector<1x8x16xf32>
    %215 = arith.mulf %210, %214 : vector<1x8x16xf32>
    %c0_87 = arith.constant 0 : index
    %c1 = arith.constant 1 : index
    %c0_88 = arith.constant 0 : index
    %c0_89 = arith.constant 0 : index
    %216 = vector.load %arg25[%c0_87, %c1, %c0_88, %c0_89] : memref<1x4x8x16xf32, #tpu.memory_space<vmem>>, vector<1x1x8x16xf32>
    %217 = vector.shape_cast %216 : vector<1x1x8x16xf32> to vector<1x8x16xf32>
    %218 = vector.shape_cast %215 : vector<1x8x16xf32> to vector<1x1x8x16xf32>
    tpu.vector_store %arg25[%c0_87, %c1, %c0_88, %c0_89], %218 {strides = array<i32>} : memref<1x4x8x16xf32, #tpu.memory_space<vmem>>, vector<1x1x8x16xf32>,
    %219 = vector.extract_strided_slice %177 {offsets = [0, 0, 8], sizes = [1, 16, 8], strides = [1, 1, 1]} : vector<1x16x32xf32> to vector<1x16x8xf32>
    "tpu.trace_start"() <{level = 10 : i32, message = "bqk,bkd->bqd"}> : () -> ()
    %cst_90 = arith.constant dense<0.000000e+00> : vector<1x8x8xf32>
    %220 = tpu.matmul %215, %219, %cst_90 {dimension_numbers = #tpu.dot_dimension_numbers<[2], [1], [1], [2], [0, 0, 0, 1, 1, 2], [0], [0]>} : vector<1x8x16xf32>, vector<1x16x8xf32>, vector<1x8x8xf32> -> vector<1x8x8xf32>
    "tpu.trace_stop"() : () -> ()
    %221 = vector.extract_strided_slice %168 {offsets = [0, 0, 16], sizes = [1, 8, 8], strides = [1, 1, 1]} : vector<1x8x32xf32> to vector<1x8x8xf32>
    %222 = vector.extract_strided_slice %175 {offsets = [0, 0, 16], sizes = [1, 16, 8], strides = [1, 1, 1]} : vector<1x16x32xf32> to vector<1x16x8xf32>
    "tpu.trace_start"() <{level = 10 : i32, message = "bqd,bkd->bqk"}> : () -> ()
    %cst_91 = arith.constant dense<0.000000e+00> : vector<1x8x16xf32>
    %223 = tpu.matmul %221, %222, %cst_91 {dimension_numbers = #tpu.dot_dimension_numbers<[2], [2], [1], [1], [0, 0, 0, 1, 1, 1], [0], [0]>} : vector<1x8x8xf32>, vector<1x16x8xf32>, vector<1x8x16xf32> -> vector<1x8x16xf32>
    "tpu.trace_stop"() : () -> ()
    %cst_92 = arith.constant 0.353553385 : f32
    %224 = vector.broadcast %cst_92 : f32 to vector<1x8x16xf32>
    %225 = arith.mulf %223, %224 : vector<1x8x16xf32>
    %226 = arith.addf %225, %178 : vector<1x8x16xf32>
    %cst_93 = arith.constant dense<0xFF800000> : vector<1x8xf32>
    %227 = vector.multi_reduction <maximumf>, %226, %cst_93 [2] : vector<1x8x16xf32> to vector<1x8xf32>
    %228 = vector.shape_cast %227 : vector<1x8xf32> to vector<1x8x1xf32>
    %229 = vector.broadcast %228 : vector<1x8x1xf32> to vector<1x8x16xf32>
    %230 = arith.subf %226, %229 : vector<1x8x16xf32>
    %231 = math.exp %230 : vector<1x8x16xf32>
    %cst_94 = arith.constant dense<0.000000e+00> : vector<1x8xf32>
    %232 = vector.multi_reduction <add>, %231, %cst_94 [2] : vector<1x8x16xf32> to vector<1x8xf32>
    %233 = vector.shape_cast %232 : vector<1x8xf32> to vector<1x8x1xf32>
    %234 = tpu.reciprocal %233 : vector<1x8x1xf32> -> vector<1x8x1xf32>
    %235 = vector.broadcast %234 : vector<1x8x1xf32> to vector<1x8x16xf32>
    %236 = arith.mulf %231, %235 : vector<1x8x16xf32>
    %c0_95 = arith.constant 0 : index
    %c2 = arith.constant 2 : index
    %c0_96 = arith.constant 0 : index
    %c0_97 = arith.constant 0 : index
    %237 = vector.load %arg25[%c0_95, %c2, %c0_96, %c0_97] : memref<1x4x8x16xf32, #tpu.memory_space<vmem>>, vector<1x1x8x16xf32>
    %238 = vector.shape_cast %237 : vector<1x1x8x16xf32> to vector<1x8x16xf32>
    %239 = vector.shape_cast %236 : vector<1x8x16xf32> to vector<1x1x8x16xf32>
    tpu.vector_store %arg25[%c0_95, %c2, %c0_96, %c0_97], %239 {strides = array<i32>} : memref<1x4x8x16xf32, #tpu.memory_space<vmem>>, vector<1x1x8x16xf32>,
    %240 = vector.extract_strided_slice %177 {offsets = [0, 0, 16], sizes = [1, 16, 8], strides = [1, 1, 1]} : vector<1x16x32xf32> to vector<1x16x8xf32>
    "tpu.trace_start"() <{level = 10 : i32, message = "bqk,bkd->bqd"}> : () -> ()
    %cst_98 = arith.constant dense<0.000000e+00> : vector<1x8x8xf32>
    %241 = tpu.matmul %236, %240, %cst_98 {dimension_numbers = #tpu.dot_dimension_numbers<[2], [1], [1], [2], [0, 0, 0, 1, 1, 2], [0], [0]>} : vector<1x8x16xf32>, vector<1x16x8xf32>, vector<1x8x8xf32> -> vector<1x8x8xf32>
    "tpu.trace_stop"() : () -> ()
    %242 = vector.extract_strided_slice %168 {offsets = [0, 0, 24], sizes = [1, 8, 8], strides = [1, 1, 1]} : vector<1x8x32xf32> to vector<1x8x8xf32>
    %243 = vector.extract_strided_slice %175 {offsets = [0, 0, 24], sizes = [1, 16, 8], strides = [1, 1, 1]} : vector<1x16x32xf32> to vector<1x16x8xf32>
    "tpu.trace_start"() <{level = 10 : i32, message = "bqd,bkd->bqk"}> : () -> ()
    %cst_99 = arith.constant dense<0.000000e+00> : vector<1x8x16xf32>
    %244 = tpu.matmul %242, %243, %cst_99 {dimension_numbers = #tpu.dot_dimension_numbers<[2], [2], [1], [1], [0, 0, 0, 1, 1, 1], [0], [0]>} : vector<1x8x8xf32>, vector<1x16x8xf32>, vector<1x8x16xf32> -> vector<1x8x16xf32>
    "tpu.trace_stop"() : () -> ()
    %cst_100 = arith.constant 0.353553385 : f32
    %245 = vector.broadcast %cst_100 : f32 to vector<1x8x16xf32>
    %246 = arith.mulf %244, %245 : vector<1x8x16xf32>
    %247 = arith.addf %246, %178 : vector<1x8x16xf32>
    %cst_101 = arith.constant dense<0xFF800000> : vector<1x8xf32>
    %248 = vector.multi_reduction <maximumf>, %247, %cst_101 [2] : vector<1x8x16xf32> to vector<1x8xf32>
    %249 = vector.shape_cast %248 : vector<1x8xf32> to vector<1x8x1xf32>
    %250 = vector.broadcast %249 : vector<1x8x1xf32> to vector<1x8x16xf32>
    %251 = arith.subf %247, %250 : vector<1x8x16xf32>
    %252 = math.exp %251 : vector<1x8x16xf32>
    %cst_102 = arith.constant dense<0.000000e+00> : vector<1x8xf32>
    %253 = vector.multi_reduction <add>, %252, %cst_102 [2] : vector<1x8x16xf32> to vector<1x8xf32>
    %254 = vector.shape_cast %253 : vector<1x8xf32> to vector<1x8x1xf32>
    %255 = tpu.reciprocal %254 : vector<1x8x1xf32> -> vector<1x8x1xf32>
    %256 = vector.broadcast %255 : vector<1x8x1xf32> to vector<1x8x16xf32>
    %257 = arith.mulf %252, %256 : vector<1x8x16xf32>
    %c0_103 = arith.constant 0 : index
    %c3 = arith.constant 3 : index
    %c0_104 = arith.constant 0 : index
    %c0_105 = arith.constant 0 : index
    %258 = vector.load %arg25[%c0_103, %c3, %c0_104, %c0_105] : memref<1x4x8x16xf32, #tpu.memory_space<vmem>>, vector<1x1x8x16xf32>
    %259 = vector.shape_cast %258 : vector<1x1x8x16xf32> to vector<1x8x16xf32>
    %260 = vector.shape_cast %257 : vector<1x8x16xf32> to vector<1x1x8x16xf32>
    tpu.vector_store %arg25[%c0_103, %c3, %c0_104, %c0_105], %260 {strides = array<i32>} : memref<1x4x8x16xf32, #tpu.memory_space<vmem>>, vector<1x1x8x16xf32>,
    %261 = vector.extract_strided_slice %177 {offsets = [0, 0, 24], sizes = [1, 16, 8], strides = [1, 1, 1]} : vector<1x16x32xf32> to vector<1x16x8xf32>
    "tpu.trace_start"() <{level = 10 : i32, message = "bqk,bkd->bqd"}> : () -> ()
    %cst_106 = arith.constant dense<0.000000e+00> : vector<1x8x8xf32>
    %262 = tpu.matmul %257, %261, %cst_106 {dimension_numbers = #tpu.dot_dimension_numbers<[2], [1], [1], [2], [0, 0, 0, 1, 1, 2], [0], [0]>} : vector<1x8x16xf32>, vector<1x16x8xf32>, vector<1x8x8xf32> -> vector<1x8x8xf32>
    "tpu.trace_stop"() : () -> ()
    %263 = tpu.concatenate %199, %220, %241, %262 in 2 : vector<1x8x8xf32>, vector<1x8x8xf32>, vector<1x8x8xf32>, vector<1x8x8xf32> -> vector<1x8x32xf32>
    %264 = vector.shape_cast %263 : vector<1x8x32xf32> to vector<8x32xf32>
    %c0_107 = arith.constant 0 : index
    %c0_108 = arith.constant 0 : index
    %265 = vector.load %arg18[%c0_107, %c0_108] : memref<32x32xf32, #tpu.memory_space<vmem>>, vector<32x32xf32>
    %cst_109 = arith.constant dense<0.000000e+00> : vector<8x32xf32>
    %266 = tpu.matmul %264, %265, %cst_109 {dimension_numbers = #tpu.dot_dimension_numbers<[1], [0], [0], [1], [0, 0, 1, 1], [], []>} : vector<8x32xf32>, vector<32x32xf32>, vector<8x32xf32> -> vector<8x32xf32>
    %c0_110 = arith.constant 0 : index
    %c0_111 = arith.constant 0 : index
    %267 = vector.load %arg19[%c0_110, %c0_111] : memref<1x32xf32, #tpu.memory_space<vmem>>, vector<1x32xf32>
    %268 = vector.broadcast %267 : vector<1x32xf32> to vector<8x32xf32>
    %269 = arith.addf %266, %268 : vector<8x32xf32>
    %270 = arith.addf %112, %269 : vector<8x32xf32>
    %c0_112 = arith.constant 0 : index
    %c0_113 = arith.constant 0 : index
    %271 = vector.load %arg8[%c0_112, %c0_113] : memref<1x32xf32, #tpu.memory_space<vmem>>, vector<1x32xf32>
    %c0_114 = arith.constant 0 : index
    %c0_115 = arith.constant 0 : index
    %272 = vector.load %arg9[%c0_114, %c0_115] : memref<1x32xf32, #tpu.memory_space<vmem>>, vector<1x32xf32>
    %cst_116 = arith.constant dense<0.000000e+00> : vector<8xf32>
    %273 = vector.multi_reduction <add>, %270, %cst_116 [1] : vector<8x32xf32> to vector<8xf32>
    %274 = vector.shape_cast %273 : vector<8xf32> to vector<8x1xf32>
    %cst_117 = arith.constant 3.200000e+01 : f32
    %275 = vector.broadcast %cst_117 : f32 to vector<8x1xf32>
    %276 = arith.divf %274, %275 : vector<8x1xf32>
    %277 = vector.broadcast %276 : vector<8x1xf32> to vector<8x32xf32>
    %278 = arith.subf %270, %277 : vector<8x32xf32>
    %279 = arith.mulf %278, %278 : vector<8x32xf32>
    %cst_118 = arith.constant dense<0.000000e+00> : vector<8xf32>
    %280 = vector.multi_reduction <add>, %279, %cst_118 [1] : vector<8x32xf32> to vector<8xf32>
    %281 = vector.shape_cast %280 : vector<8xf32> to vector<8x1xf32>
    %cst_119 = arith.constant 3.200000e+01 : f32
    %282 = vector.broadcast %cst_119 : f32 to vector<8x1xf32>
    %283 = arith.divf %281, %282 : vector<8x1xf32>
    %284 = vector.broadcast %276 : vector<8x1xf32> to vector<8x32xf32>
    %285 = arith.subf %270, %284 : vector<8x32xf32>
    %cst_120 = arith.constant 9.99999974E-6 : f32
    %286 = vector.broadcast %cst_120 : f32 to vector<8x1xf32>
    %287 = arith.addf %283, %286 : vector<8x1xf32>
    %288 = math.rsqrt %287 : vector<8x1xf32>
    %289 = vector.broadcast %288 : vector<8x1xf32> to vector<8x32xf32>
    %290 = arith.mulf %285, %289 : vector<8x32xf32>
    %291 = vector.broadcast %271 : vector<1x32xf32> to vector<8x32xf32>
    %292 = arith.mulf %290, %291 : vector<8x32xf32>
    %293 = vector.broadcast %272 : vector<1x32xf32> to vector<8x32xf32>
    %294 = arith.addf %292, %293 : vector<8x32xf32>
    %c0_121 = arith.constant 0 : index
    %c0_122 = arith.constant 0 : index
    %295 = vector.load %arg20[%c0_121, %c0_122] : memref<32x128xf32, #tpu.memory_space<vmem>>, vector<32x128xf32>
    %cst_123 = arith.constant dense<0.000000e+00> : vector<8x128xf32>
    %296 = tpu.matmul %294, %295, %cst_123 {dimension_numbers = #tpu.dot_dimension_numbers<[1], [0], [0], [1], [0, 0, 1, 1], [], []>} : vector<8x32xf32>, vector<32x128xf32>, vector<8x128xf32> -> vector<8x128xf32>
    %c0_124 = arith.constant 0 : index
    %c0_125 = arith.constant 0 : index
    %297 = vector.load %arg21[%c0_124, %c0_125] : memref<1x128xf32, #tpu.memory_space<vmem>>, vector<1x128xf32>
    %298 = vector.broadcast %297 : vector<1x128xf32> to vector<8x128xf32>
    %299 = arith.addf %296, %298 : vector<8x128xf32>
    %cst_126 = arith.constant 5.000000e-01 : f32
    %300 = vector.broadcast %cst_126 : f32 to vector<8x128xf32>
    %301 = arith.mulf %300, %299 : vector<8x128xf32>
    %cst_127 = arith.constant 0.707106769 : f32
    %302 = vector.broadcast %cst_127 : f32 to vector<8x128xf32>
    %303 = arith.mulf %299, %302 : vector<8x128xf32>
    %304 = math.erf %303 : vector<8x128xf32>
    %cst_128 = arith.constant 1.000000e+00 : f32
    %305 = vector.broadcast %cst_128 : f32 to vector<8x128xf32>
    %306 = arith.addf %305, %304 : vector<8x128xf32>
    %307 = arith.mulf %301, %306 : vector<8x128xf32>
    %c0_129 = arith.constant 0 : index
    %c0_130 = arith.constant 0 : index
    %308 = vector.load %arg22[%c0_129, %c0_130] : memref<128x32xf32, #tpu.memory_space<vmem>>, vector<128x32xf32>
    %cst_131 = arith.constant dense<0.000000e+00> : vector<8x32xf32>
    %309 = tpu.matmul %307, %308, %cst_131 {dimension_numbers = #tpu.dot_dimension_numbers<[1], [0], [0], [1], [0, 0, 1, 1], [], []>} : vector<8x128xf32>, vector<128x32xf32>, vector<8x32xf32> -> vector<8x32xf32>
    %c0_132 = arith.constant 0 : index
    %c0_133 = arith.constant 0 : index
    %310 = vector.load %arg23[%c0_132, %c0_133] : memref<1x32xf32, #tpu.memory_space<vmem>>, vector<1x32xf32>
    %311 = vector.broadcast %310 : vector<1x32xf32> to vector<8x32xf32>
    %312 = arith.addf %309, %311 : vector<8x32xf32>
    %313 = arith.addf %270, %312 : vector<8x32xf32>
    %314 = vector.shape_cast %313 : vector<8x32xf32> to vector<1x8x32xf32>
    %c0_134 = arith.constant 0 : index
    %c0_135 = arith.constant 0 : index
    %c0_136 = arith.constant 0 : index
    %315 = vector.load %arg24[%c0_134, %c0_135, %c0_136] : memref<1x8x32xf32, #tpu.memory_space<vmem>>, vector<1x8x32xf32>
    tpu.vector_store %arg24[%c0_134, %c0_135, %c0_136], %314 {strides = array<i32>} : memref<1x8x32xf32, #tpu.memory_space<vmem>>, vector<1x8x32xf32>,
    return
  }
  func.func @transform_0(%arg0: i32) -> (i32, i32, i32) {
    %c0_i32 = arith.constant 0 : i32
    %c0_i32_0 = arith.constant 0 : i32
    %c0_i32_1 = arith.constant 0 : i32
    return %arg0, %c0_i32, %c0_i32_0 : i32, i32, i32
  }
  func.func @transform_1(%arg0: i32) -> (i32, i32, i32) {
    %c0_i32 = arith.constant 0 : i32
    %c0_i32_0 = arith.constant 0 : i32
    %c0_i32_1 = arith.constant 0 : i32
    return %arg0, %c0_i32, %c0_i32_0 : i32, i32, i32
  }
  func.func @transform_2(%arg0: i32) -> (i32, i32, i32) {
    %c0_i32 = arith.constant 0 : i32
    %c0_i32_0 = arith.constant 0 : i32
    %c0_i32_1 = arith.constant 0 : i32
    return %arg0, %c0_i32, %c0_i32_0 : i32, i32, i32
  }
  func.func @transform_3(%arg0: i32) -> (i32, i32) {
    %c0_i32 = arith.constant 0 : i32
    %c0_i32_0 = arith.constant 0 : i32
    %c0_i32_1 = arith.constant 0 : i32
    return %c0_i32, %c0_i32_0 : i32, i32
  }
  func.func @transform_4(%arg0: i32) -> (i32, i32) {
    %c0_i32 = arith.constant 0 : i32
    %c0_i32_0 = arith.constant 0 : i32
    %c0_i32_1 = arith.constant 0 : i32
    return %c0_i32, %c0_i32_0 : i32, i32
  }
  func.func @transform_5(%arg0: i32) -> (i32, i32) {
    %c0_i32 = arith.constant 0 : i32
    %c0_i32_0 = arith.constant 0 : i32
    %c0_i32_1 = arith.constant 0 : i32
    return %c0_i32, %c0_i32_0 : i32, i32
  }
  func.func @transform_6(%arg0: i32) -> (i32, i32) {
    %c0_i32 = arith.constant 0 : i32
    %c0_i32_0 = arith.constant 0 : i32
    %c0_i32_1 = arith.constant 0 : i32
    return %c0_i32, %c0_i32_0 : i32, i32
  }
  func.func @transform_7(%arg0: i32) -> (i32, i32) {
    %c0_i32 = arith.constant 0 : i32
    %c0_i32_0 = arith.constant 0 : i32
    %c0_i32_1 = arith.constant 0 : i32
    return %c0_i32, %c0_i32_0 : i32, i32
  }
  func.func @transform_8(%arg0: i32) -> (i32, i32) {
    %c0_i32 = arith.constant 0 : i32
    %c0_i32_0 = arith.constant 0 : i32
    %c0_i32_1 = arith.constant 0 : i32
    return %c0_i32, %c0_i32_0 : i32, i32
  }
  func.func @transform_9(%arg0: i32) -> (i32, i32) {
    %c0_i32 = arith.constant 0 : i32
    %c0_i32_0 = arith.constant 0 : i32
    %c0_i32_1 = arith.constant 0 : i32
    return %c0_i32, %c0_i32_0 : i32, i32
  }
  func.func @transform_10(%arg0: i32) -> (i32, i32) {
    %c0_i32 = arith.constant 0 : i32
    %c0_i32_0 = arith.constant 0 : i32
    %c0_i32_1 = arith.constant 0 : i32
    return %c0_i32, %c0_i32_0 : i32, i32
  }
  func.func @transform_11(%arg0: i32) -> (i32, i32) {
    %c0_i32 = arith.constant 0 : i32
    %c0_i32_0 = arith.constant 0 : i32
    %c0_i32_1 = arith.constant 0 : i32
    return %c0_i32, %c0_i32_0 : i32, i32
  }
  func.func @transform_12(%arg0: i32) -> (i32, i32) {
    %c0_i32 = arith.constant 0 : i32
    %c0_i32_0 = arith.constant 0 : i32
    %c0_i32_1 = arith.constant 0 : i32
    return %c0_i32, %c0_i32_0 : i32, i32
  }
  func.func @transform_13(%arg0: i32) -> (i32, i32) {
    %c0_i32 = arith.constant 0 : i32
    %c0_i32_0 = arith.constant 0 : i32
    %c0_i32_1 = arith.constant 0 : i32
    return %c0_i32, %c0_i32_0 : i32, i32
  }
  func.func @transform_14(%arg0: i32) -> (i32, i32) {
    %c0_i32 = arith.constant 0 : i32
    %c0_i32_0 = arith.constant 0 : i32
    %c0_i32_1 = arith.constant 0 : i32
    return %c0_i32, %c0_i32_0 : i32, i32
  }
  func.func @transform_15(%arg0: i32) -> (i32, i32) {
    %c0_i32 = arith.constant 0 : i32
    %c0_i32_0 = arith.constant 0 : i32
    %c0_i32_1 = arith.constant 0 : i32
    return %c0_i32, %c0_i32_0 : i32, i32
  }
  func.func @transform_16(%arg0: i32) -> (i32, i32) {
    %c0_i32 = arith.constant 0 : i32
    %c0_i32_0 = arith.constant 0 : i32
    %c0_i32_1 = arith.constant 0 : i32
    return %c0_i32, %c0_i32_0 : i32, i32
  }
  func.func @transform_17(%arg0: i32) -> (i32, i32) {
    %c0_i32 = arith.constant 0 : i32
    %c0_i32_0 = arith.constant 0 : i32
    %c0_i32_1 = arith.constant 0 : i32
    return %c0_i32, %c0_i32_0 : i32, i32
  }
  func.func @transform_18(%arg0: i32) -> (i32, i32) {
    %c0_i32 = arith.constant 0 : i32
    %c0_i32_0 = arith.constant 0 : i32
    %c0_i32_1 = arith.constant 0 : i32
    return %c0_i32, %c0_i32_0 : i32, i32
  }
  func.func @transform_19(%arg0: i32) -> (i32, i32) {
    %c0_i32 = arith.constant 0 : i32
    %c0_i32_0 = arith.constant 0 : i32
    %c0_i32_1 = arith.constant 0 : i32
    return %c0_i32, %c0_i32_0 : i32, i32
  }
  func.func @transform_20(%arg0: i32) -> (i32, i32) {
    %c0_i32 = arith.constant 0 : i32
    %c0_i32_0 = arith.constant 0 : i32
    %c0_i32_1 = arith.constant 0 : i32
    return %c0_i32, %c0_i32_0 : i32, i32
  }
  func.func @transform_21(%arg0: i32) -> (i32, i32) {
    %c0_i32 = arith.constant 0 : i32
    %c0_i32_0 = arith.constant 0 : i32
    %c0_i32_1 = arith.constant 0 : i32
    return %c0_i32, %c0_i32_0 : i32, i32
  }
  func.func @transform_22(%arg0: i32) -> (i32, i32) {
    %c0_i32 = arith.constant 0 : i32
    %c0_i32_0 = arith.constant 0 : i32
    %c0_i32_1 = arith.constant 0 : i32
    return %c0_i32, %c0_i32_0 : i32, i32
  }
  func.func @transform_23(%arg0: i32) -> (i32, i32, i32) {
    %c0_i32 = arith.constant 0 : i32
    %c0_i32_0 = arith.constant 0 : i32
    %c0_i32_1 = arith.constant 0 : i32
    return %arg0, %c0_i32, %c0_i32_0 : i32, i32, i32
  }
  func.func @transform_24(%arg0: i32) -> (i32, i32, i32, i32) {
    %c0_i32 = arith.constant 0 : i32
    %c0_i32_0 = arith.constant 0 : i32
    %c0_i32_1 = arith.constant 0 : i32
    %c0_i32_2 = arith.constant 0 : i32
    return %arg0, %c0_i32, %c0_i32_0, %c0_i32_1 : i32, i32, i32, i32
  }
}

</mosaic_0001>

<bundles_post_ra>
// kernel: tpu_custom_call.1
= control target key start
LH: loop header
LB: loop body
LE: loop exit
PB: predicated region body
PF: predicated region fallthrough
CT: control target
= control target key end

     0   :  { %s4986_s0 = inlined_call_operand.hbm [shape: f32[2,8,32], index: 0, kind: input, shape index: {}]   ;;  %s4987_s1 = inlined_call_operand.vmem [shape: f32[2,16,48], index: 1, kind: input, shape index: {}]   ;;  %s4988_s2 = inlined_call_operand.hbm [shape: f32[2,8,16], index: 2, kind: input, shape index: {}]   ;;  %s4989_s3 = inlined_call_operand.vmem [shape: f32[1,32], index: 3, kind: input, shape index: {}]   ;;  %s4990_s4 = inlined_call_operand.vmem [shape: f32[1,32], index: 4, kind: input, shape index: {}]   ;;  %s4991_s5 = inlined_call_operand.hbm [shape: f32[1,48], index: 5, kind: input, shape index: {}]   ;;  %s4992_s6 = inlined_call_operand.vmem [shape: f32[1,48], index: 6, kind: input, shape index: {}]   ;;  %s4993_s7 = inlined_call_operand.vmem [shape: f32[1,32], index: 7, kind: input, shape index: {}]   ;;  %s4994_s8 = inlined_call_operand.vmem [shape: f32[1,32], index: 8, kind: input, shape index: {}]   ;;  %s4995_s9 = inlined_call_operand.vmem [shape: f32[32,96], index: 9, kind: input, shape index: {}]   ;;  %s4996_s10 = inlined_call_operand.vmem [shape: f32[1,96], index: 10, kind: input, shape index: {}]   ;;  %s4997_s11 = inlined_call_operand.vmem [shape: f32[32,32], index: 11, kind: input, shape index: {}]   ;;  %s4998_s12 = inlined_call_operand.vmem [shape: f32[1,32], index: 12, kind: input, shape index: {}]   ;;  %s4999_s13 = inlined_call_operand.vmem [shape: f32[32,32], index: 13, kind: input, shape index: {}]   ;;  %s5000_s14 = inlined_call_operand.vmem [shape: f32[1,32], index: 14, kind: input, shape index: {}]   ;;  %s5001_s15 = inlined_call_operand.vmem [shape: f32[48,64], index: 15, kind: input, shape index: {}]   ;;  %s5002_s16 = inlined_call_operand.vmem [shape: f32[1,64], index: 16, kind: input, shape index: {}]   ;;  %s5003_s17 = inlined_call_operand.hbm [shape: f32[32,32], index: 17, kind: input, shape index: {}]   ;;  %s5004_s18 = inlined_call_operand.vmem [shape: f32[1,32], index: 18, kind: input, shape index: {}]   ;;  %s5005_s19 = inlined_call_operand.hbm [shape: f32[32,128], index: 19, kind: input, shape index: {}]   ;;  %s5006_s20 = inlined_call_operand.vmem [shape: f32[1,128], index: 20, kind: input, shape index: {}]   ;;  %s5007_s21 = inlined_call_operand.vmem [shape: f32[128,32], index: 21, kind: input, shape index: {}]   ;;  %s5008_s22 = inlined_call_operand.vmem [shape: f32[1,32], index: 22, kind: input, shape index: {}]   ;;  %s5009_s23 = inlined_call_operand.hbm [shape: f32[2,8,32], index: 23, kind: output, shape index: {0}]   ;;  %s5010_s24 = inlined_call_operand.hbm [shape: f32[2,4,8,16], index: 24, kind: output, shape index: {1}]  }
   0x1   :  { %5035 = sst [smem:[#allocation26_spill]] %s4986_s0 }
   0x2   :  { %5036 = sst [smem:[#allocation27_spill]] %s4987_s1 }
   0x3   :  { %5037 = sst [smem:[#allocation28_spill]] %s4988_s2 }
   0x4   :  { %5038 = sst [smem:[#allocation29_spill]] %s4989_s3 }
   0x5   :  { %5039 = sst [smem:[#allocation30_spill]] %s4990_s4 }
   0x6   :  { %5040 = sst [smem:[#allocation31_spill]] %s4991_s5 }
   0x7   :  { %5041 = sst [smem:[#allocation32_spill]] %s4992_s6 }
   0x8   :  { %5042 = sst [smem:[#allocation33_spill]] %s4993_s7 }
   0x9   :  { %5043 = sst [smem:[#allocation34_spill]] %s4994_s8 }
   0xa   :  { %5044 = sst [smem:[#allocation35_spill]] %s4995_s9 }
   0xb   :  { %5045 = sst [smem:[#allocation36_spill]] %s5003_s17 }
   0xc   :  { %5046 = sst [smem:[#allocation37_spill]] %s5004_s18 }
   0xd   :  { %5047 = sst [smem:[#allocation38_spill]] %s5005_s19 }
   0xe   :  { %5048 = sst [smem:[#allocation39_spill]] %s5006_s20 }
   0xf   :  { %5049 = sst [smem:[#allocation40_spill]] %s5007_s21 }
  0x10   :  { %5050 = sst [smem:[#allocation41_spill]] %s5008_s22 }
  0x11   :  { %5051 = sst [smem:[#allocation42_spill]] %s5009_s23 }
  0x12   :  { %5052 = sst [smem:[#allocation43_spill]] %s5010_s24 }
  0x13   :  { %30 = vsyncpa [#allocation3], 0 }
  0x14   :  { %32 = vsyncpa [#allocation3 + $0x1], 0 }
  0x15   :  { %33 = vsyncpa [#allocation6], 0 }
  0x16   :  { %35 = vsyncpa [#allocation6 + $0x1], 0 }
  0x17   :  { %36 = vsyncpa [#allocation9], 0 }
  0x18   :  { %37 = vsyncpa [#allocation4], 0 }
  0x19   :  { %39 = vsyncpa [#allocation4 + $0x1], 0 }
  0x1a   :  { %40 = vsyncpa [#allocation13], 0 }
  0x1b   :  { %42 = vsyncpa [#allocation13 + $0x1], 0  ;;  %s4274_s5 = smov 0   ;;  %s4276_s26 = smov 0  }
  0x1c   :  { %s4278_s27 = smov 0   ;;  %s4280_s28 = smov 0  }
  0x1d LB: > { %5053 = sst [smem:[#allocation20_spill]] %s4108_s5  ;;  %s4295_s6 = sadd.s32 4294967295, %s4120_s28   ;;  %s4120_s28 = sphi %s4280_s28, %s5103_s28   ;;  %s4116_s27 = sphi %s4278_s27, %s5105_s27   ;;  %s4112_s26 = sphi %s4276_s26, %s5107_s26   ;;  %s4108_s5 = sphi %s4274_s5, %s5106_s5  }
  0x1e   : > { %5054 = sst [smem:[#allocation21_spill]] %s4116_s27  ;;  %s3213_s2 = sadd.s32 4294967294, %s4120_s28  }
  0x1f   : > { %p68_p0 = scmp.ne.s32.totalorder %s4112_s26, %s4108_s5  ;;  %p5018_p1 = scmp.eq.s32.totalorder %s4295_s6, 0 }
  0x20   : > { %p570_p3 = scmp.eq.s32.totalorder %s3213_s2, 1  ;;  %p3214_p5 = scmp.ge.s32.totalorder %s4120_s28, 1 }
  0x21   : > { %p4304_p4 = por %p5018_p1, %p68_p0  ;;  %p603_p7 = scmp.lt.s32.totalorder %s4120_s28, 3 }
  0x22   : > { %p4309_p6 = por %p570_p3, %p68_p0  ;;  %s4122_s30 = smov [#allocation7]  }
  0x23   : > { %s5055_s29 = scalar_select %p4304_p4, 1, 0 }
  0x24   : > { %s5056_s0 = scalar_select %p4309_p6, 1, 0 }
  0x25   : > { %p4314_p8 = pnand %p3214_p5, %p603_p7  ;;  %s622_s3 = sshll.u32 %s4122_s30, 4  ;;  %s623_s3 = int_to_ptr.vmem [resolvable:$true] %s622_s3 }
  0x26   : > { %5057 = sst [smem:[#allocation22_spill]] %s5056_s0  ;;  %s4123_s25 = smov [#allocation8]  }
  0x27   : > { %s5058_s7 = scalar_select %p4314_p8, 1, 0 }
  0x28   : > { %p3700_p10 = pneg %p4314_p8  ;;  %s665_s8 = sshll.u32 %s4123_s25, 4  ;;  %s4327_s8 = int_to_ptr.vmem [resolvable:$true] %s665_s8 }
  0x29   : > { %s4124_s1 = smov [#allocation10]   ;;  %s5060_s30 = sld [smem:[#allocation31_spill]] }
  0x2a   : > { %p4323_p11 = pnand %p3700_p10, %p5018_p1  ;;  %s4329_s2 = sshll.u32 %s4124_s1, 4  ;;  %s682_s2 = int_to_ptr.vmem [resolvable:$true] %s4329_s2 }
  0x2c   : > { %p4339_p13 = pneg %p4323_p11 }
  0x2f   : > { %s3866_s23 = scalar_lea.hbm %s5060_s30, 16 }
  0x30   : > { %p3867_p12 = scmp.ne.s32.totalorder %s5060_s30, %s3866_s23  ;;  %p3873_p5 = scmp.lt.u32.totalorder %s3866_s23, %s5060_s30 }
  0x32   : > { %p3869_p0 = pnand %p4339_p13, %p3867_p12 }
  0x34   : > { %p3870_p3 = pneg %p3869_p0 }
  0x36   : > { %p3875_p7 = pnand %p3873_p5, %p3870_p3 }
  0x38   : > { %3878 = shalt.err (!%p3875_p7)
}
  0x39   : > { %s3879_s5 = scalar_lea.vmem %s623_s3, 16  ;;  %s3886_s22 = scalar_lea.vmem %s623_s3, 32 }
  0x3a   : > { %p3880_p10 = scmp.ne.s32.totalorder %s623_s3, %s3879_s5  ;;  %p3887_p2 = scmp.lt.s32.totalorder %s623_s3, %s623_s3 }
  0x3b   : > { %p3888_p6 = scmp.lt.s32.totalorder %s3886_s22, %s3879_s5 }
  0x3c   : > { %p3882_p9 = pnand %p3880_p10, %p4339_p13 }
  0x3d   : > { %p3889_p4 = por %p3888_p6, %p3887_p2 }
  0x3e   : > { %p3883_p1 = pneg %p3882_p9 }
  0x40   : > { %p3890_p8 = pnand %p3889_p4, %p3883_p1 }
  0x42   : > { %3893 = shalt.err (!%p3890_p8)
}
  0x43   : > { %3703 = dma.hbm_to_vmem [thread:$0]  (!%p4323_p11), %s5060_s30, 16, %s623_s3, [#allocation6]  }
  0x44   : > { %s5062_s17 = sld [smem:[#allocation36_spill]] }
  0x4a   : > { %s3894_s1 = scalar_lea.hbm %s5062_s17, 512 }
  0x4b   : > { %p3895_p9 = scmp.ne.s32.totalorder %s5062_s17, %s3894_s1  ;;  %p3901_p1 = scmp.lt.u32.totalorder %s3894_s1, %s5062_s17 }
  0x4d   : > { %p3897_p12 = pnand %p3895_p9, %p4339_p13 }
  0x4f   : > { %p3898_p2 = pneg %p3897_p12 }
  0x51   : > { %p3903_p4 = pnand %p3901_p1, %p3898_p2 }
  0x53   : > { %3906 = shalt.err (!%p3903_p4)
}
  0x54   : > { %s3907_s3 = scalar_lea.vmem %s4327_s8, 512  ;;  %p3915_p3 = scmp.lt.s32.totalorder %s4327_s8, %s4327_s8 }
  0x55   : > { %p3908_p6 = scmp.ne.s32.totalorder %s4327_s8, %s3907_s3  ;;  %p3916_p5 = scmp.lt.s32.totalorder %s3907_s3, %s3907_s3 }
  0x57   : > { %p3910_p8 = pnand %p3908_p6, %p4339_p13  ;;  %p3917_p7 = por %p3916_p5, %p3915_p3 }
  0x59   : > { %p3911_p0 = pneg %p3910_p8 }
  0x5b   : > { %p3918_p10 = pnand %p3917_p7, %p3911_p0 }
  0x5d   : > { %3921 = shalt.err (!%p3918_p10)
}
  0x5e   : > { %s4125_s18 = smov 128   ;;  %s4126_s21 = smov 8  }
  0x5f   : > { %3706 = dma.hbm_to_vmem [thread:$0]  (!%p4323_p11), %s5062_s17, 512, %s4327_s8, [#allocation9], %s4125_s18, %s4125_s18, %s4126_s21  }
  0x60   : > { %s5063_s19 = sld [smem:[#allocation38_spill]] }
  0x66   : > { %s3922_s1 = scalar_lea.hbm %s5063_s19, 512 }
  0x67   : > { %p3923_p9 = scmp.ne.s32.totalorder %s5063_s19, %s3922_s1  ;;  %p3929_p1 = scmp.lt.u32.totalorder %s3922_s1, %s5063_s19 }
  0x69   : > { %p3925_p12 = pnand %p3923_p9, %p4339_p13 }
  0x6b   : > { %p3926_p2 = pneg %p3925_p12 }
  0x6d   : > { %p3931_p4 = pnand %p3929_p1, %p3926_p2 }
  0x6f   : > { %3934 = shalt.err (!%p3931_p4)
}
  0x70   : > { %s3935_s24 = scalar_lea.vmem %s682_s2, 512  ;;  %p3943_p3 = scmp.lt.s32.totalorder %s682_s2, %s682_s2 }
  0x71   : > { %p3936_p6 = scmp.ne.s32.totalorder %s682_s2, %s3935_s24  ;;  %p3944_p5 = scmp.lt.s32.totalorder %s3935_s24, %s3935_s24 }
  0x73   : > { %p3938_p8 = pnand %p3936_p6, %p4339_p13  ;;  %p3945_p7 = por %p3944_p5, %p3943_p3 }
  0x75   : > { %p3939_p0 = pneg %p3938_p8 }
  0x77   : > { %p3946_p10 = pnand %p3945_p7, %p3939_p0 }
  0x79   : > { %3949 = shalt.err (!%p3946_p10)
}
  0x7a   : > { %3709 = dma.hbm_to_vmem [thread:$0]  (!%p4323_p11), %s5063_s19, 512, %s682_s2, [#allocation9], %s4125_s18, %s4125_s18, %s4126_s21  }
  0x7b   : > { %s4398_s30 = sadd.s32 1, %s4120_s28   ;;  %s55_s4 = sadd.s32 1, %s4116_s27 }
  0x7c   : > { %5064 = sst [smem:[#allocation23_spill]] %s4398_s30  ;;  %s52_s25 = ssub.s32 %s4120_s28, %s4398_s30 }
  0x7d   : > { %p53_p13 = scmp.eq.s32.totalorder %s52_s25, 0  ;;  %p62_p9 = scmp.ne.s32.totalorder %s4116_s27, %s4112_s26 }
  0x7e   : > { %p63_p12 = scmp.eq.s32.totalorder %s4120_s28, 0  ;;  %p3727_p2 = scmp.lt.s32.totalorder %s4120_s28, 2 }
  0x7f   : > { %s4408_s20 = scalar_select %p53_p13, %s4116_s27, %s55_s4  }
  0x80   : > { %p64_p1 = por %p63_p12, %p62_p9  ;;  %p5066_p4 = scmp.eq.s32.totalorder %s4295_s6, 1 }
  0x81   : > { %5065 = sst [smem:[#allocation24_spill]] %s4408_s20  ;;  %s704_s1 = sand.u32 1, %s4116_s27  }
  0x82   : > { %p4412_p6 = por %p5066_p4, %p62_p9  ;;  %s3220_s5 = sshll.u32 %s4120_s28, 7 }
  0x83   : > { %s4418_s2 = sshll.u32 %s704_s1, 3  ;;  %s5069_s22 = sld [smem:[#allocation26_spill]] }
  0x84   : > { %s5067_s23 = scalar_select %p4412_p6, 1, 0 }
  0x85   : > { %s708_s24 = scalar_lea.vmem [#allocation2], %s4418_s2  ;;  %p4426_p11 = pnand %p3727_p2, %p64_p1 }
  0x86   : > { %5068 = sst [smem:[#allocation25_spill]] %s5067_s23  ;;  %s715_s8 = sshll.u32 %s708_s24, 4  ;;  %s4430_s8 = int_to_ptr.vmem [resolvable:$true] %s715_s8 }
  0x87   : > { %s5071_s18 = sld [smem:[#allocation28_spill]]  ;;  %s705_s17 = scalar_lea.sflag [#allocation3], %s704_s1 }
  0x88   : > { %p3952_p0 = pneg %p4426_p11 }
  0x89   : > { %s4423_s3 = scalar_lea.hbm %s5069_s22, %s3220_s5  ;;  %s3955_s27 = scalar_lea.hbm %s5069_s22, 256 }
  0x8a   : > { %s3950_s19 = scalar_lea.hbm %s4423_s3, 128  ;;  %p3956_p7 = scmp.lt.u32.totalorder %s4423_s3, %s5069_s22 }
  0x8b   : > { %p3951_p8 = scmp.ne.s32.totalorder %s4423_s3, %s3950_s19  ;;  %p3957_p10 = scmp.lt.u32.totalorder %s3955_s27, %s3950_s19 }
  0x8c   : > { %p3959_p9 = scmp.lt.u32.totalorder %s3950_s19, %s4423_s3 }
  0x8d   : > { %s4435_s21 = scalar_lea.hbm %s5071_s18, %s3220_s5  ;;  %p3953_p3 = pnand %p3952_p0, %p3951_p8 }
  0x8e   : > { %p3958_p13 = por %p3957_p10, %p3956_p7 }
  0x8f   : > { %p3954_p5 = pneg %p3953_p3 }
  0x90   : > { %p3960_p12 = por %p3959_p9, %p3958_p13 }
  0x92   : > { %p3961_p2 = pnand %p3960_p12, %p3954_p5 }
  0x94   : > { %3964 = shalt.err (!%p3961_p2)
}
  0x95   : > { %s3965_s1 = scalar_lea.vmem %s4430_s8, 128  ;;  %s4127_s20 = smov [#allocation2]  }
  0x96   : > { %p3966_p1 = scmp.ne.s32.totalorder %s4430_s8, %s3965_s1  ;;  %s3970_s5 = sshll.u32 %s4127_s20, 4  ;;  %s3971_s5 = int_to_ptr.vmem [resolvable:$false] %s3970_s5 }
  0x97   : > { %s3972_s30 = scalar_lea.vmem %s3971_s5, 256  ;;  %p3973_p3 = scmp.lt.s32.totalorder %s4430_s8, %s3971_s5 }
  0x98   : > { %p3968_p4 = pnand %p3966_p1, %p3952_p0  ;;  %p3974_p7 = scmp.lt.s32.totalorder %s3972_s30, %s3965_s1 }
  0x9a   : > { %p3969_p8 = pneg %p3968_p4  ;;  %p3975_p10 = por %p3974_p7, %p3973_p3 }
  0x9c   : > { %p3976_p13 = pnand %p3975_p10, %p3969_p8 }
  0x9e   : > { %3979 = shalt.err (!%p3976_p13)
}
  0x9f   : > { %3713 = dma.hbm_to_vmem [thread:$0]  (!%p4426_p11), %s4423_s3, 128, %s4430_s8, %s705_s17  }
  0xa0   : > { %s730_s19 = sand.u32 1, %s4120_s28   ;;  %s734_s27 = scalar_lea.vmem [#allocation5], %s4418_s2 }
  0xa1   : > { %s741_s23 = sshll.u32 %s734_s27, 4  ;;  %s731_s25 = scalar_lea.sflag [#allocation6], %s730_s19  ;;  %s742_s23 = int_to_ptr.vmem [resolvable:$true] %s741_s23 }
  0xa2   : > { %s3980_s4 = scalar_lea.hbm %s4435_s21, 128  ;;  %s3985_s20 = scalar_lea.hbm %s5071_s18, 256 }
  0xa3   : > { %p3981_p5 = scmp.ne.s32.totalorder %s4435_s21, %s3980_s4  ;;  %p3986_p2 = scmp.lt.u32.totalorder %s4435_s21, %s5071_s18 }
  0xa4   : > { %p3987_p1 = scmp.lt.u32.totalorder %s3985_s20, %s3980_s4  ;;  %p3989_p8 = scmp.lt.u32.totalorder %s3980_s4, %s4435_s21 }
  0xa5   : > { %p3983_p9 = pnand %p3981_p5, %p3952_p0 }
  0xa6   : > { %p3988_p4 = por %p3987_p1, %p3986_p2 }
  0xa7   : > { %p3984_p12 = pneg %p3983_p9 }
  0xa8   : > { %p3990_p3 = por %p3989_p8, %p3988_p4 }
  0xaa   : > { %p3991_p7 = pnand %p3990_p3, %p3984_p12 }
  0xac   : > { %3994 = shalt.err (!%p3991_p7)
}
  0xad   : > { %s3995_s17 = scalar_lea.vmem %s742_s23, 128  ;;  %s4128_s2 = smov [#allocation5]  }
  0xae   : > { %p3996_p10 = scmp.ne.s32.totalorder %s742_s23, %s3995_s17  ;;  %s4000_s3 = sshll.u32 %s4128_s2, 4  ;;  %s4001_s3 = int_to_ptr.vmem [resolvable:$false] %s4000_s3 }
  0xaf   : > { %s4002_s8 = scalar_lea.vmem %s4001_s3, 256  ;;  %p4003_p9 = scmp.lt.s32.totalorder %s742_s23, %s4001_s3 }
  0xb0   : > { %p3998_p13 = pnand %p3996_p10, %p3952_p0  ;;  %p4004_p6 = scmp.lt.s32.totalorder %s4002_s8, %s3995_s17 }
  0xb2   : > { %p3999_p5 = pneg %p3998_p13  ;;  %p4005_p1 = por %p4004_p6, %p4003_p9 }
  0xb4   : > { %p4006_p2 = pnand %p4005_p1, %p3999_p5 }
  0xb6   : > { %4009 = shalt.err (!%p4006_p2)
}
  0xb7   : > { %3716 = dma.hbm_to_vmem [thread:$0]  (!%p4426_p11), %s4435_s21, 128, %s742_s23, %s731_s25  }
  0xb8   : > { %p5072_p12 = scmp.ne.s32.totalorder %s5058_s7, 0 }
  0xb9   : > { %s4486_s19 = sand.u32 (!%p5072_p12), 1, %s4112_s26   ;;  %p5073_p6 = scmp.ne.s32.totalorder (!%p5072_p12), %s5055_s29, 0 }
  0xba   : > { %750 = sbr.rel (%p5072_p12) target bundleno = 5534 (0x159e), region = 112  ;;  %s4489_s27 = sshll.u32 (!%p5072_p12), %s4486_s19, 3 }
  0xbb   : > { %s753_s4 = scalar_lea.sflag (!%p5072_p12), [#allocation3], %s4486_s19  ;;  %s756_s24 = scalar_lea.vmem (!%p5072_p12), [#allocation2], %s4489_s27 }
  0xc1   : > { %4083 = dma.done.wait (%p5073_p6), %s753_s4, 128  }
  0xc2   : > { %4085 = vsyncadd (%p5073_p6), %s753_s4, 4294967168  ;;  %s761_s7 = sand.u32 1, %s4295_s6   ;;  %s765_s21 = scalar_lea.vmem [#allocation5], %s4489_s27 }
  0xc3   : > { %s762_s0 = scalar_lea.sflag [#allocation6], %s761_s7 }
  0xc4   : > { %4087 = dma.done.wait (%p5073_p6), %s762_s0, 128  }
  0xc5   : > { %4089 = vsyncadd (%p5073_p6), %s762_s0, 4294967168  ;;  %p5074_p11 = scmp.eq.s32.totalorder %s4295_s6, 0 }
  0xc7   : > { %4091 = dma.done.wait (%p5074_p11), [#allocation6], 16   ;;  %p5075_p0 = pmov %p5074_p11 }
  0xc9   : > { %4093 = vsyncadd (%p5075_p0), [#allocation6], 4294967280  ;;  %p5076_p4 = pmov %p5075_p0 }
  0xca   : > { %p5077_p8 = pmov %p5075_p0 }
  0xcb   : > { %4095 = dma.done.wait (%p5076_p4), [#allocation9], 1024  }
  0xcc   : > { %4097 = vsyncadd (%p5077_p8), [#allocation9], 4294966272  ;;  %vm865_vm0 = vcmask 261120   ;;  %v4511_v0 = vld [vmem:[%s756_s24] sm:$0xff]  ;;  %s5078_s9 = sld [smem:[#allocation35_spill]]  ;;  %v4129_v10 = vmov 0.0|0.0  }
  0xcd   : > { %v866_v1 = vsel %vm865_vm0, %v4511_v0, 0.0  ;;  %3586 = vmatprep.subr.bf16.mxu0 %v4129_v10  ;;  %vm4130_vm1 = vmmov 0   ;;  %v4131_v13 = vmov 0.0   ;;  %s5079_s8 = sld [smem:[#allocation29_spill]]  ;;  %s5080_s7 = sld [smem:[#allocation30_spill]]  ;;  %vm981_vm2 = vcmask 64512  }
  0xce   : > { %867 = vadd.xlane.f32.xlu0 %v866_v1  ;;  %3393 = vmatprep.mubr.msk.f32.mxu0 %vm4130_vm1, %v4131_v13  ;;  %v3235_v24 = vld [vmem:[%s4996_s10] ss:$0 sm:$0xff]  ;;  %s4132_s23 = smov 120   ;;  %s4133_s25 = smov 96   ;;  %vm1777_vm3 = vcmask 392192   ;;  %vm1655_vm4 = vcmask 130048   ;;  %vm4716_vm6 = vmpackc.low %vm981_vm2, %vm981_vm2 }
  0xcf   : > { %3401 = vmatprep.subr.mxu1 %v4131_v13  ;;  %3403 = vmatprep.mubr.msk.f32.mxu1 %vm4130_vm1, %v4131_v13  ;;  %s4134_s1 = smov 88   ;;  %s4135_s20 = smov 80   ;;  %vm1657_vm5 = vcmask 195584  }
  0xd0   : > { %s4136_s5 = smov 112   ;;  %s5029_s30 = smov 72  }
  0xd1   : > { %s4138_s17 = smov 104   ;;  %s4139_s2 = smov 64  }
  0xd2   : > { %v894_v7 = vld [vmem:[%s5078_s9] sm:$0xff]  ;;  %v895_v8 = vld [vmem:[%s5078_s9 + $0x8] sm:$0xff]  ;;  %v896_v9 = vld [vmem:[%s5078_s9 + $0x10] sm:$0xff]  ;;  %s4140_s3 = smov 48   ;;  %s4142_s4 = smov 56  }
  0xd3   : > { %v3587_v11 = vpack.c.bf16 %v895_v8, %v894_v7  ;;  %v897_v12 = vld [vmem:[%s5078_s9 + $0x18] sm:$0xff]  ;;  %v4540_v19 = vld [vmem:[%s5079_s8] ss:$0 sm:$0xff]  ;;  %s4141_s8 = smov 40   ;;  %s5031_s24 = smov 8  }
  0xd4   : > { %v3590_v14 = vpack.c.bf16 %v897_v12, %v896_v9  ;;  %v4545_v21 = vld [vmem:[%s5080_s7] ss:$0 sm:$0xff]  ;;  %s5033_s7 = smov 16   ;;  %s5030_s0 = smov 24  }
  0xd5   : > { %3588 = vmatpush3.bf16.msra.mxu0 %v3587_v11  ;;  %p857_p3 = scmp.lt.s32.totalorder %s4295_s6, 1 }
  0xd6   : > { %3589 = vmatprep.subr.bf16.mxu0 %v4129_v10 }
  0xd7   : > { %s858_s29 = scalar_select %p857_p3, %s4295_s6, 1 }
  0xd9   : > { %3591 = vmatpush3.bf16.msra.mxu0 %v3590_v14 }
  0xda   : > { %3396 = vmatprep.subr.mxu0 %v4131_v13 }
 0x15b   : > { %v868_v2 = vpop.xlane.xlu0 %867 }
 0x15c   : > { %v870_v3 = vmul.f32 0.03125, %v868_v2 }
 0x15e   : > { %v871_v4 = vsub.f32 %v4511_v0, %v870_v3 }
 0x160   : > { %v872_v5 = vmul.f32 %v871_v4, %v871_v4 }
 0x162   : > { %v873_v6 = vsel %vm865_vm0, %v872_v5, 0.0 }
 0x163   : > { %874 = vadd.xlane.f32.xlu0 %v873_v6 }
 0x1f0   : > { %v875_v15 = vpop.xlane.xlu0 %874 }
 0x1f1   : > { %v876_v16 = vmul.f32 0.03125, %v875_v15 }
 0x1f3   : > { %v877_v17 = vadd.f32 1e-05, %v876_v16 }
 0x1f5   : > { %3822 = vrsqrt.f32 %v877_v17 }
 0x1ff   : > { %v3823_v18 = vpop.eup %3822 }
 0x200   : > { %v879_v20 = vmul.f32 %v3823_v18, %v871_v4 }
 0x202   : > { %v886_v22 = vmul.f32 %v4540_v19, %v879_v20 }
 0x204   : > { %v893_v23 = vadd.f32 %v4545_v21, %v886_v22 }
 0x206   : > { %3394 = vmatmul.mubr.msk.f32.vlgmr.msra.gmra.mrb[0].mxu0 %vm865_vm0, %v893_v23 }
 0x207   : > { %3398 = vmatprep.mubr.msk.f32.mxu0 %vm4130_vm1, %v4131_v13 }
 0x2d9   : > { %v974_v25 = vpop.f32.mrb[0].mxu0 }
 0x2da   : > { %v4555_v26 = vadd.f32 %v3235_v24, %v974_v25  ;;  %v3395_v27 = vpop.f32.mrb[1].mxu0 }
 0x2dc   : > { %1144 = vrot.lane.b32.xlu0 %v4555_v26, %s4132_s23  ;;  %979 = vrot.lane.b32.xlu1 %v4555_v26, %s4133_s25 }
 0x2e0   : > { %1146 = vrot.lane.b32.xlu1 %v4555_v26, %s4134_s1 }
 0x2e4   : > { %1312 = vrot.lane.b32.xlu1 %v4555_v26, %s4135_s20 }
 0x2e8   : > { %1310 = vrot.lane.b32.xlu1 %v4555_v26, %s4136_s5 }
 0x2ec   : > { %1478 = vrot.lane.b32.xlu1 %v4555_v26, %s5029_s30 }
 0x2f0   : > { %1476 = vrot.lane.b32.xlu1 %v4555_v26, %s4138_s17 }
 0x34e   : > { %v980_v28 = vpop.permute.xlu1 %979  ;;  %v1145_v30 = vpop.permute.xlu0 %1144 }
 0x34f   : > { %3397 = vmatpush3.xpose.msk.msra.mxu0 %vm981_vm2, %v980_v28  ;;  %v1659_v28 = vld [vmem:[%s4997_s11] sm:$0xff] }
 0x350   : > { %3406 = vmatprep.subr.mxu0 %v4131_v13 }
 0x352   : > { %3399 = vmatmul.mubr.msk.f32.vlgmr.msra.gmra.mrb[2].mxu0 %vm981_vm2, %v4555_v26  ;;  %v1147_v29 = vpop.permute.xlu1 %1146 }
 0x353   : > { %3407 = vmatpush3.xpose.msk.msra.mxu0 %vm981_vm2, %v1147_v29  ;;  %3408 = vmatprep.mubr.msk.f32.mxu0 %vm4130_vm1, %v4131_v13  ;;  %v1660_v29 = vld [vmem:[%s4997_s11 + $0x8] sm:$0xff] }
 0x354   : > { %3416 = vmatprep.subr.mxu0 %v4131_v13 }
 0x356   : > { %3409 = vmatmul.mubr.msk.f32.vlgmr.msra.gmra.mrb[4].mxu0 %vm981_vm2, %v1145_v30  ;;  %v1313_v31 = vpop.permute.xlu1 %1312  ;;  %v3593_v30 = vpack.c.bf16 %v1660_v29, %v1659_v28 }
 0x357   : > { %3417 = vmatpush3.xpose.msk.msra.mxu0 %vm981_vm2, %v1313_v31  ;;  %3418 = vmatprep.mubr.msk.f32.mxu0 %vm4130_vm1, %v4131_v13 }
 0x358   : > { %3426 = vmatprep.subr.mxu0 %v4131_v13 }
 0x35a   : > { %v1311_v32 = vpop.permute.xlu1 %1310 }
 0x35b   : > { %3419 = vmatmul.mubr.msk.f32.vlgmr.msra.gmra.mrb[6].mxu0 %vm981_vm2, %v1311_v32 }
 0x35c   : > { %3428 = vmatprep.mubr.msk.f32.mxu0 %vm4130_vm1, %v4131_v13 }
 0x35e   : > { %v1479_v33 = vpop.permute.xlu1 %1478 }
 0x35f   : > { %3427 = vmatpush3.xpose.msk.msra.mxu0 %vm981_vm2, %v1479_v33  ;;  %v1661_v33 = vld [vmem:[%s4997_s11 + $0x10] sm:$0xff] }
 0x360   : > { %3592 = vmatprep.subr.bf16.mxu0 %v4129_v10 }
 0x362   : > { %v1477_v34 = vpop.permute.xlu1 %1476 }
 0x363   : > { %3429 = vmatmul.mubr.msk.f32.vlgmr.msra.gmra.mrb[8].mxu0 %vm981_vm2, %v1477_v34  ;;  %v1662_v34 = vld [vmem:[%s4997_s11 + $0x18] sm:$0xff] }
 0x364   : > { %3444 = vmatprep.mubr.msk.f32.mxu0 %vm4130_vm1, %v4131_v13  ;;  %3594 = vmatpush3.bf16.msra.mxu0 %v3593_v30 }
 0x365   : > { %3595 = vmatprep.subr.bf16.mxu0 %v4129_v10 }
 0x425   : > { %v1052_v35 = vpop.f32.mrb[2].mxu0 }
 0x426   : > { %v1056_v36 = vmul.f32 0.35355338, %v1052_v35  ;;  %v3400_v37 = vpop.f32.mrb[3].mxu0  ;;  %v3596_v35 = vpack.c.bf16 %v1662_v34, %v1661_v33  ;;  %v3253_v33 = vld [vmem:[#allocation7] ss:$0 sm:$0xff] }
 0x428   : > { %v1057_v38 = vsel %vm981_vm2, %v1056_v36, -inf  ;;  %3597 = vmatpush3.bf16.msra.mxu0 %v3596_v35 }
 0x429   : > { %1058 = vmax.xlane.f32.xlu1 %v1057_v38  ;;  %v1218_v39 = vpop.f32.mrb[4].mxu0  ;;  %3598 = vmatprep.subr.bf16.mxu0 %v4129_v10 }
 0x42a   : > { %v1222_v40 = vmul.f32 0.35355338, %v1218_v39  ;;  %v3410_v41 = vpop.f32.mrb[5].mxu0 }
 0x42c   : > { %v1223_v42 = vsel %vm981_vm2, %v1222_v40, -inf }
 0x42d   : > { %1224 = vmax.xlane.f32.xlu0 %v1223_v42 }
 0x42e   : > { %v1384_v43 = vpop.f32.mrb[6].mxu0 }
 0x42f   : > { %v1388_v44 = vmul.f32 0.35355338, %v1384_v43  ;;  %v3420_v45 = vpop.f32.mrb[7].mxu0 }
 0x431   : > { %v1389_v46 = vsel %vm981_vm2, %v1388_v44, -inf }
 0x432   : > { %1390 = vmax.xlane.f32.xlu1 %v1389_v46 }
 0x436   : > { %v1550_v47 = vpop.f32.mrb[8].mxu0 }
 0x437   : > { %v1554_v48 = vmul.f32 0.35355338, %v1550_v47  ;;  %v3430_v49 = vpop.f32.mrb[9].mxu0 }
 0x439   : > { %v1555_v50 = vsel %vm981_vm2, %v1554_v48, -inf }
 0x43a   : > { %1556 = vmax.xlane.f32.xlu0 %v1555_v50 }
 0x443   : > { %1068 = vrot.lane.b32.xlu1 %v4555_v26, %s4139_s2  ;;  %s3293_s2 = sshll.u32 %s858_s29, 4  ;;  %s3294_s29 = sshll.u32 %s4295_s6, 9 }
 0x4b6   : > { %v1059_v51 = vpop.xlane.xlu1 %1058 }
 0x4b7   : > { %v1060_v52 = vsub.f32 %v1056_v36, %v1059_v51 }
 0x4b9   : > { %v1061_v53 = vmul.f32 1.442695, %v1060_v52 }
 0x4ba   : > { %v1225_v54 = vpop.xlane.xlu0 %1224 }
 0x4bb   : > { %3824 = vpow2.f32 %v1061_v53  ;;  %v1226_v55 = vsub.f32 %v1222_v40, %v1225_v54 }
 0x4bd   : > { %v1227_v56 = vmul.f32 1.442695, %v1226_v55 }
 0x4bf   : > { %3826 = vpow2.f32 %v1227_v56  ;;  %v1391_v57 = vpop.xlane.xlu1 %1390 }
 0x4c0   : > { %v1392_v58 = vsub.f32 %v1388_v44, %v1391_v57  ;;  %v3249_v57 = vld [vmem:[%s4998_s12] ss:$0 sm:$0xff] }
 0x4c2   : > { %v1393_v59 = vmul.f32 1.442695, %v1392_v58 }
 0x4c3   : > { %v1069_v60 = vpop.permute.xlu1 %1068 }
 0x4c4   : > { %3828 = vpow2.f32 %v1393_v59  ;;  %3402 = vmatpush3.msra.mxu1 %v1069_v60 }
 0x4c5   : > { %v3825_v61 = vpop.eup %3824  ;;  %3411 = vmatprep.subr.mxu1 %v4131_v13 }
 0x4c6   : > { %v1063_v62 = vsel %vm981_vm2, %v3825_v61, 0.0 }
 0x4c7   : > { %1064 = vadd.xlane.f32.xlu1 %v1063_v62  ;;  %v1557_v63 = vpop.xlane.xlu0 %1556 }
 0x4c8   : > { %v1558_v1 = vsub.f32 %v1554_v48, %v1557_v63 }
 0x4c9   : > { %v3827_v2 = vpop.eup %3826 }
 0x4ca   : > { %v1559_v3 = vmul.f32 1.442695, %v1558_v1  ;;  %v1229_v4 = vsel %vm981_vm2, %v3827_v2, 0.0 }
 0x4cb   : > { %1230 = vadd.xlane.f32.xlu0 %v1229_v4 }
 0x4cc   : > { %3830 = vpow2.f32 %v1559_v3 }
 0x4ce   : > { %v3829_v5 = vpop.eup %3828 }
 0x4cf   : > { %v1395_v6 = vsel %vm981_vm2, %v3829_v5, 0.0 }
 0x4d0   : > { %1396 = vadd.xlane.f32.xlu1 %v1395_v6 }
 0x4d6   : > { %v3831_v7 = vpop.eup %3830 }
 0x4d7   : > { %v1561_v8 = vsel %vm981_vm2, %v3831_v7, 0.0 }
 0x4d8   : > { %1562 = vadd.xlane.f32.xlu0 %v1561_v8 }
 0x4e1   : > { %1400 = vrot.lane.b32.xlu1 %v4555_v26, %s4140_s3  ;;  %s4146_s3 = smov [#allocation12]  }
 0x4e5   : > { %1566 = vrot.lane.b32.xlu1 %v4555_v26, %s4141_s8  ;;  %s5082_s8 = sld [smem:[#allocation32_spill]] }
 0x4ee   : > { %1234 = vrot.lane.b32.xlu0 %v4555_v26, %s4142_s4  ;;  %s5081_s4 = sld [smem:[#allocation27_spill]] }
 0x4f4   : > { %s861_s30 = scalar_lea.vmem %s5081_s4, %s3293_s2  ;;  %s5092_s2 = sld [smem:[#allocation34_spill]] }
 0x4f5   : > { %v1773_v42 = vld [vmem:[%s861_s30] sm:$0xff]  ;;  %v1774_v53 = vld [vmem:[%s861_s30 + $0x8] sm:$0xff] }
 0x4f6   : > { %v1778_v43 = vsel %vm1777_vm3, %v1773_v42, 0.0  ;;  %v1781_v54 = vsel %vm1777_vm3, %v1774_v53, 0.0 }
 0x554   : > { %v1065_v9 = vpop.xlane.xlu1 %1064 }
 0x555   : > { %3832 = vrcp.f32 %v1065_v9 }
 0x558   : > { %v1231_v11 = vpop.xlane.xlu0 %1230 }
 0x559   : > { %3834 = vrcp.f32 %v1231_v11  ;;  %v1822_v11 = vld [vmem:[%s4999_s13 + $0x8] sm:$0xff] }
 0x55d   : > { %v1397_v12 = vpop.xlane.xlu1 %1396 }
 0x55e   : > { %3836 = vrcp.f32 %v1397_v12 }
 0x55f   : > { %v3833_v14 = vpop.eup %3832 }
 0x560   : > { %v1067_v15 = vmul.f32 %v3833_v14, %v3825_v61  ;;  %v1823_v14 = vld [vmem:[%s4999_s13 + $0x10] sm:$0xff] }
 0x561   : > { %v1401_v20 = vpop.permute.xlu1 %1400 }
 0x562   : > { %3404 = vmatmul.mubr.msk.f32.vlgmr.msra.gmra.mrb[0].mxu1 %vm981_vm2, %v1067_v15  ;;  %v1824_v15 = vld [vmem:[%s4999_s13 + $0x18] sm:$0xff] }
 0x563   : > { %3413 = vmatprep.mubr.msk.f32.mxu1 %vm4130_vm1, %v4131_v13  ;;  %v3835_v17 = vpop.eup %3834 }
 0x564   : > { %v1233_v18 = vmul.f32 %v3835_v17, %v3827_v2  ;;  %v1905_v17 = vld [vmem:[%s5001_s15] sm:$0xff] }
 0x565   : > { %v1563_v16 = vpop.xlane.xlu0 %1562  ;;  %v1567_v25 = vpop.permute.xlu1 %1566 }
 0x566   : > { %3838 = vrcp.f32 %v1563_v16  ;;  %v3602_v16 = vpack.c.bf16 %v1824_v15, %v1823_v14 }
 0x568   : > { %v3837_v23 = vpop.eup %3836 }
 0x569   : > { %v1235_v22 = vpop.permute.xlu0 %1234  ;;  %v1399_v24 = vmul.f32 %v3837_v23, %v3829_v5 }
 0x56a   : > { %3412 = vmatpush3.msra.mxu1 %v1235_v22 }
 0x56b   : > { %3414 = vmatmul.mubr.msk.f32.vlgmr.msra.gmra.mrb[2].mxu1 %vm981_vm2, %v1233_v18  ;;  %3421 = vmatprep.subr.mxu1 %v4131_v13  ;;  %v1906_v18 = vld [vmem:[%s5001_s15 + $0x8] sm:$0xff] }
 0x56c   : > { %3422 = vmatpush3.msra.mxu1 %v1401_v20  ;;  %3423 = vmatprep.mubr.msk.f32.mxu1 %vm4130_vm1, %v4131_v13  ;;  %v3604_v20 = vpack.c.bf16 %v1906_v18, %v1905_v17 }
 0x56d   : > { %3431 = vmatprep.subr.mxu1 %v4131_v13 }
 0x56f   : > { %3424 = vmatmul.mubr.msk.f32.vlgmr.msra.gmra.mrb[4].mxu1 %vm981_vm2, %v1399_v24 }
 0x570   : > { %v3839_v26 = vpop.eup %3838  ;;  %3432 = vmatpush3.msra.mxu1 %v1567_v25  ;;  %3433 = vmatprep.mubr.msk.f32.mxu1 %vm4130_vm1, %v4131_v13 }
 0x571   : > { %v1565_v27 = vmul.f32 %v3839_v26, %v3831_v7  ;;  %3616 = vmatprep.subr.bf16.mxu1 %v4129_v10 }
 0x573   : > { %3434 = vmatmul.mubr.msk.f32.vlgmr.msra.gmra.mrb[6].mxu1 %vm981_vm2, %v1565_v27 }
 0x574   : > { %3477 = vmatprep.mubr.msk.f32.mxu1 %vm4130_vm1, %v4131_v13 }
 0x635   : > { %v1140_v31 = vpop.f32.mrb[0].mxu1 }
 0x636   : > { %v3405_v32 = vpop.f32.mrb[1].mxu1 }
 0x63e   : > { %v1306_v36 = vpop.f32.mrb[2].mxu1 }
 0x63f   : > { %1643 = vrot.lane.b32.xlu0 %v1306_v36, %s5031_s24  ;;  %v3415_v37 = vpop.f32.mrb[3].mxu1  ;;  %s5091_s24 = sld [smem:[#allocation33_spill]] }
 0x640   : > { %v1907_v37 = vld [vmem:[%s5001_s15 + $0x10] sm:$0xff] }
 0x642   : > { %v1472_v38 = vpop.f32.mrb[4].mxu1 }
 0x643   : > { %1647 = vrot.lane.b32.xlu1 %v1472_v38, %s5033_s7  ;;  %v3425_v39 = vpop.f32.mrb[5].mxu1  ;;  %v1908_v38 = vld [vmem:[%s5001_s15 + $0x18] sm:$0xff]  ;;  %s5094_s7 = sld [smem:[#allocation25_spill]] }
 0x646   : > { %v1638_v40 = vpop.f32.mrb[6].mxu1 }
 0x647   : > { %1651 = vrot.lane.b32.xlu0 %v1638_v40, %s5030_s0  ;;  %v3435_v41 = vpop.f32.mrb[7].mxu1  ;;  %v3254_v40 = vld [vmem:[%s5082_s8] ss:$0 sm:$0xff]  ;;  %s5089_s8 = sld [smem:[#allocation37_spill]]  ;;  %s5090_s0 = sld [smem:[#allocation40_spill]] }
 0x649   : > { %p5096_p10 = scmp.ne.s32.totalorder %s5094_s7, 0 }
 0x666   : > { %1779 = vadd.xlane.f32.xlu0 %v1778_v43 }
 0x66a   : > { %1782 = vadd.xlane.f32.xlu0 %v1781_v54 }
 0x6b1   : > { %v1644_v44 = vpop.permute.xlu0 %1643 }
 0x6b2   : > { %v1654_v46 = vsel %vm981_vm2, %v1140_v31, %v1644_v44 }
 0x6b5   : > { %v1648_v45 = vpop.permute.xlu1 %1647 }
 0x6b6   : > { %v1656_v47 = vsel %vm1655_vm4, %v1654_v46, %v1648_v45  ;;  %v1909_v45 = vld [vmem:[%s5001_s15 + $0x20] sm:$0xff]  ;;  %v1910_v46 = vld [vmem:[%s5001_s15 + $0x28] sm:$0xff] }
 0x6b9   : > { %v1652_v48 = vpop.permute.xlu0 %1651 }
 0x6ba   : > { %v1658_v49 = vsel %vm1657_vm5, %v1656_v47, %v1652_v48  ;;  %v3612_v47 = vpack.c.bf16 %v1910_v46, %v1909_v45 }
 0x6bb   : > { %3445 = vmatmul.mubr.msk.f32.vlgmr.msra.gmra.mrb[10].mxu0 %vm865_vm0, %v1658_v49  ;;  %v3255_v49 = vld [vmem:[%s5000_s14] ss:$0 sm:$0xff] }
 0x6bc   : > { %3455 = vmatprep.mubr.msk.f32.mxu0 %vm4130_vm1, %v4131_v13 }
 0x6f3   : > { %v1780_v50 = vpop.xlane.xlu0 %1779 }
 0x6f4   : > { %v1785_v51 = vmul.f32 0.020833334, %v1780_v50 }
 0x6f6   : > { %v1787_v52 = vsub.f32 %v1773_v42, %v1785_v51  ;;  %v3608_v42 = vpack.c.bf16 %v1908_v38, %v1907_v37 }
 0x6f7   : > { %v1783_v63 = vpop.xlane.xlu0 %1782 }
 0x6f8   : > { %v1789_v55 = vmul.f32 %v1787_v52, %v1787_v52  ;;  %v1786_v1 = vmul.f32 0.020833334, %v1783_v63 }
 0x6fa   : > { %v1791_v56 = vsel %vm1777_vm3, %v1789_v55, 0.0  ;;  %v1788_v3 = vsub.f32 %v1774_v53, %v1786_v1  ;;  %v3257_v53 = vld [vmem:[%s5002_s16] ss:$0 sm:$0xff] }
 0x6fb   : > { %1792 = vadd.xlane.f32.xlu0 %v1791_v56 }
 0x6fc   : > { %v1790_v7 = vmul.f32 %v1788_v3, %v1788_v3 }
 0x6fe   : > { %v1794_v9 = vsel %vm1777_vm3, %v1790_v7, 0.0 }
 0x788   : > { %v1793_v22 = vpop.xlane.xlu0 %1792 }
 0x789   : > { %v1797_v23 = vmul.f32 0.020833334, %v1793_v22 }
 0x78b   : > { %v1799_v24 = vadd.f32 1e-05, %v1797_v23 }
 0x78d   : > { %3840 = vrsqrt.f32 %v1799_v24 }
 0x78e   : > { %v1739_v58 = vpop.f32.mrb[10].mxu0 }
 0x78f   : > { %v1740_v59 = vadd.f32 %v3249_v57, %v1739_v58  ;;  %v3446_v60 = vpop.f32.mrb[11].mxu0 }
 0x791   : > { %v4655_v61 = vadd.f32 %v1740_v59, %v4511_v0  ;;  %v1821_v0 = vld [vmem:[%s4999_s13] sm:$0xff] }
 0x792   : > { %v3599_v12 = vpack.c.bf16 %v1822_v11, %v1821_v0 }
 0x793   : > { %v1746_v62 = vsel %vm865_vm0, %v4655_v61, 0.0 }
 0x794   : > { %1747 = vadd.xlane.f32.xlu1 %v1746_v62  ;;  %3600 = vmatpush3.bf16.msra.mxu0 %v3599_v12 }
 0x795   : > { %3601 = vmatprep.subr.bf16.mxu0 %v4129_v10 }
 0x797   : > { %v3841_v31 = vpop.eup %3840 }
 0x798   : > { %3603 = vmatpush3.bf16.msra.mxu0 %v3602_v16  ;;  %v1803_v32 = vmul.f32 %v3841_v31, %v1787_v52 }
 0x799   : > { %3605 = vmatprep.subr.bf16.mxu0 %v3604_v20 }
 0x79a   : > { %v1811_v36 = vmul.f32 %v3253_v33, %v1803_v32 }
 0x79c   : > { %v1819_v44 = vadd.f32 %v3254_v40, %v1811_v36 }
 0x821   : > { %v1748_v2 = vpop.xlane.xlu1 %1747 }
 0x822   : > { %v1749_v4 = vmul.f32 0.03125, %v1748_v2 }
 0x824   : > { %v1750_v5 = vsub.f32 %v4655_v61, %v1749_v4 }
 0x826   : > { %v1751_v6 = vmul.f32 %v1750_v5, %v1750_v5 }
 0x828   : > { %v1752_v8 = vsel %vm865_vm0, %v1751_v6, 0.0 }
 0x829   : > { %1753 = vadd.xlane.f32.xlu1 %v1752_v8 }
 0x82d   : > { %1795 = vadd.xlane.f32.xlu1 %v1794_v9 }
 0x8b6   : > { %v1754_v25 = vpop.xlane.xlu1 %1753 }
 0x8b7   : > { %v1755_v26 = vmul.f32 0.03125, %v1754_v25 }
 0x8b9   : > { %v1756_v27 = vadd.f32 1e-05, %v1755_v26 }
 0x8ba   : > { %v1796_v28 = vpop.xlane.xlu1 %1795 }
 0x8bb   : > { %3842 = vrsqrt.f32 %v1756_v27  ;;  %v1798_v29 = vmul.f32 0.020833334, %v1796_v28 }
 0x8bd   : > { %v1800_v30 = vadd.f32 1e-05, %v1798_v29 }
 0x8bf   : > { %3844 = vrsqrt.f32 %v1800_v30 }
 0x8c5   : > { %v3843_v34 = vpop.eup %3842 }
 0x8c6   : > { %v1758_v35 = vmul.f32 %v3843_v34, %v1750_v5  ;;  %v4739_v5 = vld [vmem:[%s765_s21] sm:$0xff]  ;;  %s3230_s21 = sshll.u32 %s4486_s19, 5 }
 0x8c8   : > { %v1765_v39 = vmul.f32 %v4540_v19, %v1758_v35 }
 0x8c9   : > { %v3845_v43 = vpop.eup %3844 }
 0x8ca   : > { %v1772_v41 = vadd.f32 %v4545_v21, %v1765_v39  ;;  %v1804_v19 = vmul.f32 %v3845_v43, %v1788_v3 }
 0x8cc   : > { %3456 = vmatmul.mubr.msk.f32.vlgmr.msra.gmra.mrb[12].mxu0 %vm865_vm0, %v1772_v41  ;;  %v1812_v21 = vmul.f32 %v3253_v33, %v1804_v19 }
 0x8cd   : > { %3607 = vmatpush3.bf16.msra.mxu0 %v3604_v20  ;;  %3470 = vmatprep.mubr.msk.f32.mxu0 %vm1777_vm3, %v1819_v44 }
 0x8ce   : > { %3609 = vmatprep.subr.bf16.mxu0 %v3608_v42  ;;  %v1820_v48 = vadd.f32 %v3254_v40, %v1812_v21 }
 0x8d1   : > { %3611 = vmatpush3.bf16.msra.mxu0 %v3608_v42 }
 0x8d2   : > { %3613 = vmatprep.subr.bf16.mxu0 %v3612_v47 }
 0x8d5   : > { %3615 = vmatpush3.bf16.msra.mxu0 %v3612_v47 }
 0x8d6   : > { %3623 = vmatprep.subr.bf16.mxu0 %v4129_v10 }
 0x8d8   : > { %3471 = vmatmul.mubr.msk.f32.vlgmr.msra.gmra.mrb[14].mxu0 %vm1777_vm3, %v1820_v48 }
 0x8d9   : > { %3491 = vmatprep.mubr.msk.f32.mxu0 %vm4130_vm1, %v4131_v13 }
 0x99f   : > { %v1901_v50 = vpop.f32.mrb[12].mxu0 }
 0x9a0   : > { %v4707_v51 = vadd.f32 %v3255_v49, %v1901_v50  ;;  %v3457_v52 = vpop.f32.mrb[13].mxu0 }
 0x9a2   : > { %2172 = vrot.lane.b32.xlu1 %v4707_v51, %s4132_s23 }
 0x9ab   : > { %v3472_v54 = vpop.f32.mrb[14].mxu0 }
 0x9ac   : > { %v1996_v55 = vadd.f32 %v3472_v54, %v3257_v53  ;;  %v1990_v56 = vpop.f32.mrb[15].mxu0 }
 0x9ad   : > { %v1991_v57 = vadd.f32 %v3257_v53, %v1990_v56 }
 0x9af   : > { %v4720_v59 = vpack.i.bf16 %v1996_v55, %v1991_v57  ;;  %v3617_v60 = vpack.c.bf16 %v1996_v55, %v1991_v57 }
 0x9b1   : > { %3788 = vrot.lane.b32.xlu0 %v4720_v59, %s4132_s23  ;;  %3619 = vmatpush3.bf16.xpose.msk.msra.mxu1 %vm4716_vm6, %v3617_v60  ;;  %s4757_s23 = scalar_lea.vmem [#allocation12], %s3230_s21 }
 0x9b2   : > { %3620 = vmatprep.subr.bf16.mxu1 %v4129_v10 }
 0x9b8   : > { %3478 = vmatmul.mubr.msk.f32.vlgmr.msra.gmra.mrb[8].mxu1 %vm981_vm2, %v4707_v51 }
 0x9b9   : > { %3484 = vmatprep.mubr.msk.f32.mxu1 %vm4130_vm1, %v4131_v13 }
 0xa14   : > { %v2173_v3 = vpop.permute.xlu1 %2172 }
 0xa23   : > { %v3789_v62 = vpop.permute.xlu0 %3788 }
 0xa24   : > { %v3791_v63 = vunpack.i.h.bf16 %v3789_v62  ;;  %v3790_v1 = vunpack.i.l.bf16 %v3789_v62 }
 0xa26   : > { %v3624_v2 = vpack.c.bf16 %v3791_v63, %v3790_v1 }
 0xa28   : > { %3626 = vmatpush3.bf16.xpose.msk.msra.mxu0 %vm4716_vm6, %v3624_v2 }
 0xa29   : > { %3634 = vmatprep.subr.bf16.mxu0 %v4129_v10 }
 0xa2f   : > { %3492 = vmatmul.mubr.msk.f32.vlgmr.msra.gmra.mrb[16].mxu0 %vm981_vm2, %v2173_v3 }
 0xa30   : > { %3512 = vmatprep.mubr.msk.f32.mxu0 %vm4130_vm1, %v4131_v13 }
 0xa8b   : > { %v2075_v4 = vpop.f32.mrb[8].mxu1 }
 0xa8c   : > { %v2079_v6 = vmul.f32 0.35355338, %v2075_v4  ;;  %v3479_v7 = vpop.f32.mrb[9].mxu1 }
 0xa8e   : > { %v2080_v8 = vadd.f32 %v2079_v6, %v4739_v5 }
 0xa90   : > { %v2081_v9 = vsel %vm1655_vm4, %v2080_v8, -inf }
 0xa91   : > { %2082 = vmax.xlane.f32.xlu1 %v2081_v9 }
 0xaa2   : > { %3798 = vrot.lane.b32.xlu1 %v4720_v59, %s4134_s1  ;;  %s5086_s1 = smov 16  }
 0xb02   : > { %v2250_v0 = vpop.f32.mrb[16].mxu0 }
 0xb03   : > { %v2254_v11 = vmul.f32 0.35355338, %v2250_v0  ;;  %v3493_v12 = vpop.f32.mrb[17].mxu0 }
 0xb05   : > { %v2255_v14 = vadd.f32 %v2254_v11, %v4739_v5 }
 0xb07   : > { %v2256_v15 = vsel %vm1655_vm4, %v2255_v14, -inf }
 0xb08   : > { %2257 = vmax.xlane.f32.xlu0 %v2256_v15 }
 0xb1e   : > { %v2083_v16 = vpop.xlane.xlu1 %2082 }
 0xb1f   : > { %v2084_v17 = vsub.f32 %v2080_v8, %v2083_v16 }
 0xb21   : > { %v2085_v18 = vmul.f32 1.442695, %v2084_v17 }
 0xb22   : > { %v3799_v32 = vpop.permute.xlu1 %3798 }
 0xb23   : > { %3846 = vpow2.f32 %v2085_v18  ;;  %v3801_v34 = vunpack.i.h.bf16 %v3799_v32  ;;  %v3800_v35 = vunpack.i.l.bf16 %v3799_v32  ;;  %v2716_v32 = vld [vmem:[#allocation8 + $0x8] sm:$0xff] }
 0xb25   : > { %v3628_v38 = vpack.c.bf16 %v3801_v34, %v3800_v35  ;;  %v2718_v35 = vld [vmem:[#allocation8 + $0x18] sm:$0xff] }
 0xb2d   : > { %v3847_v20 = vpop.eup %3846 }
 0xb2e   : > { %v2087_v22 = vsel %vm1655_vm4, %v3847_v20, 0.0 }
 0xb2f   : > { %2088 = vadd.xlane.f32.xlu0 %v2087_v22 }
 0xb45   : > { %3793 = vrot.lane.b32.xlu0 %v4720_v59, %s4133_s25  ;;  %s5085_s25 = smov 72  }
 0xb49   : > { %2348 = vrot.lane.b32.xlu0 %v4707_v51, %s4136_s5 }
 0xb95   : > { %v2258_v23 = vpop.xlane.xlu0 %2257 }
 0xb96   : > { %v2259_v24 = vsub.f32 %v2255_v14, %v2258_v23 }
 0xb98   : > { %v2260_v25 = vmul.f32 1.442695, %v2259_v24 }
 0xb9a   : > { %3848 = vpow2.f32 %v2260_v25 }
 0xba4   : > { %v3849_v26 = vpop.eup %3848 }
 0xba5   : > { %v2262_v27 = vsel %vm1655_vm4, %v3849_v26, 0.0 }
 0xba6   : > { %2263 = vadd.xlane.f32.xlu1 %v2262_v27 }
 0xbb7   : > { %3803 = vrot.lane.b32.xlu1 %v4720_v59, %s4136_s5  ;;  %s5088_s5 = smov 24  }
 0xbbc   : > { %v2089_v28 = vpop.xlane.xlu0 %2088 }
 0xbbd   : > { %3850 = vrcp.f32 %v2089_v28 }
 0xbc0   : > { %v3794_v29 = vpop.permute.xlu0 %3793 }
 0xbc1   : > { %v3796_v30 = vunpack.i.h.bf16 %v3794_v29  ;;  %v3795_v31 = vunpack.i.l.bf16 %v3794_v29 }
 0xbc3   : > { %v3621_v33 = vpack.c.bf16 %v3796_v30, %v3795_v31  ;;  %v2715_v31 = vld [vmem:[#allocation8] sm:$0xff] }
 0xbc4   : > { %v2349_v46 = vpop.permute.xlu0 %2348  ;;  %v3645_v34 = vpack.c.bf16 %v2716_v32, %v2715_v31 }
 0xbc5   : > { %3622 = vmatpush3.bf16.msra.mxu1 %v3621_v33  ;;  %v2717_v33 = vld [vmem:[#allocation8 + $0x10] sm:$0xff] }
 0xbc6   : > { %3627 = vmatprep.subr.bf16.mxu1 %v4129_v10 }
 0xbc7   : > { %v3851_v36 = vpop.eup %3850 }
 0xbc8   : > { %v2091_v37 = vmul.f32 %v3851_v36, %v3847_v20  ;;  %v3648_v36 = vpack.c.bf16 %v2718_v35, %v2717_v33 }
 0xbca   : > { %2092 = vst.msk [vmem:[%s4757_s23] sm:$0xff] %vm1655_vm4, %v2091_v37  ;;  %3485 = vmatmul.mubr.msk.f32.vlgmr.msra.gmra.mrb[10].mxu1 %vm1655_vm4, %v2091_v37 }
 0xbcb   : > { %3629 = vmatpush3.bf16.msra.mxu1 %v3628_v38  ;;  %3498 = vmatprep.mubr.msk.f32.mxu1 %vm4130_vm1, %v4131_v13 }
 0xbcc   : > { %3630 = vmatprep.subr.bf16.mxu1 %v4129_v10 }
 0xc33   : > { %v2264_v39 = vpop.xlane.xlu1 %2263 }
 0xc34   : > { %3852 = vrcp.f32 %v2264_v39 }
 0xc37   : > { %v3804_v40 = vpop.permute.xlu1 %3803 }
 0xc38   : > { %v3806_v41 = vunpack.i.h.bf16 %v3804_v40  ;;  %v3805_v42 = vunpack.i.l.bf16 %v3804_v40 }
 0xc3a   : > { %v3631_v45 = vpack.c.bf16 %v3806_v41, %v3805_v42 }
 0xc3e   : > { %v3853_v43 = vpop.eup %3852 }
 0xc3f   : > { %v2266_v44 = vmul.f32 %v3853_v43, %v3849_v26 }
 0xc41   : > { %3267 = vst.msk [vmem:[%s4757_s23 + $0x8] sm:$0xff] %vm1655_vm4, %v2266_v44  ;;  %3499 = vmatmul.mubr.msk.f32.vlgmr.msra.gmra.mrb[12].mxu1 %vm1655_vm4, %v2266_v44 }
 0xc42   : > { %3633 = vmatpush3.bf16.xpose.msk.msra.mxu1 %vm4716_vm6, %v3631_v45  ;;  %3505 = vmatprep.mubr.msk.f32.mxu1 %vm4130_vm1, %v4131_v13  ;;  %v3279_v45 = vld [vmem:[%s5089_s8] ss:$0 sm:$0xff]  ;;  %s4014_s8 = sshll.u32 %s4146_s3, 4  ;;  %s4015_s8 = int_to_ptr.vmem [resolvable:$false] %s4014_s8 }
 0xc43   : > { %3641 = vmatprep.subr.bf16.mxu1 %v4129_v10 }
 0xc49   : > { %3506 = vmatmul.mubr.msk.f32.vlgmr.msra.gmra.mrb[14].mxu1 %vm981_vm2, %v2349_v46 }
 0xc4a   : > { %3526 = vmatprep.mubr.msk.f32.mxu1 %vm4130_vm1, %v4131_v13 }
 0xc9d   : > { %v4776_v19 = vpop.f32.mrb[10].mxu1 }
 0xc9e   : > { %v3486_v47 = vpop.f32.mrb[11].mxu1 }
 0xd14   : > { %v2344_v21 = vpop.f32.mrb[12].mxu1 }
 0xd15   : > { %v3500_v48 = vpop.f32.mrb[13].mxu1 }
 0xd1c   : > { %v2426_v49 = vpop.f32.mrb[14].mxu1 }
 0xd1d   : > { %v2430_v50 = vmul.f32 0.35355338, %v2426_v49  ;;  %v3507_v52 = vpop.f32.mrb[15].mxu1 }
 0xd1f   : > { %v2431_v53 = vadd.f32 %v2430_v50, %v4739_v5 }
 0xd21   : > { %v2432_v54 = vsel %vm1655_vm4, %v2431_v53, -inf }
 0xd22   : > { %2433 = vmax.xlane.f32.xlu1 %v2432_v54  ;;  %v2829_v54 = vld [vmem:[#allocation10] sm:$0xff] }
 0xd33   : > { %3813 = vrot.lane.b32.xlu1 %v4720_v59, %s4138_s17 }
 0xd37   : > { %2524 = vrot.lane.b32.xlu1 %v4707_v51, %s4138_s17 }
 0xdaf   : > { %v2434_v55 = vpop.xlane.xlu1 %2433 }
 0xdb0   : > { %v2435_v56 = vsub.f32 %v2431_v53, %v2434_v55  ;;  %v2830_v55 = vld [vmem:[#allocation10 + $0x8] sm:$0xff] }
 0xdb2   : > { %v2436_v57 = vmul.f32 1.442695, %v2435_v56  ;;  %v3651_v56 = vpack.c.bf16 %v2830_v55, %v2829_v54 }
 0xdb3   : > { %v3814_v6 = vpop.permute.xlu1 %3813 }
 0xdb4   : > { %3854 = vpow2.f32 %v2436_v57  ;;  %v3816_v7 = vunpack.i.h.bf16 %v3814_v6  ;;  %v3815_v8 = vunpack.i.l.bf16 %v3814_v6  ;;  %v2832_v57 = vld [vmem:[#allocation10 + $0x18] sm:$0xff] }
 0xdb5   : > { %v2922_v6 = vld [vmem:[%s5090_s0 + $0x20] sm:$0xff] }
 0xdb6   : > { %v3638_v0 = vpack.c.bf16 %v3816_v7, %v3815_v8 }
 0xdb7   : > { %v2525_v11 = vpop.permute.xlu1 %2524 }
 0xdbe   : > { %v3855_v60 = vpop.eup %3854 }
 0xdbf   : > { %v2438_v62 = vsel %vm1655_vm4, %v3855_v60, 0.0 }
 0xdc0   : > { %2439 = vadd.xlane.f32.xlu0 %v2438_v62  ;;  %v2918_v62 = vld [vmem:[%s5090_s0] sm:$0xff] }
 0xdd6   : > { %3808 = vrot.lane.b32.xlu0 %v4720_v59, %s4135_s20  ;;  %s5087_s20 = smov 8  }
 0xe4d   : > { %v2440_v63 = vpop.xlane.xlu0 %2439 }
 0xe4e   : > { %3856 = vrcp.f32 %v2440_v63  ;;  %v2919_v63 = vld [vmem:[%s5090_s0 + $0x8] sm:$0xff] }
 0xe51   : > { %v3809_v1 = vpop.permute.xlu0 %3808 }
 0xe52   : > { %v3811_v2 = vunpack.i.h.bf16 %v3809_v1  ;;  %v3810_v3 = vunpack.i.l.bf16 %v3809_v1  ;;  %v2920_v1 = vld [vmem:[%s5090_s0 + $0x10] sm:$0xff] }
 0xe54   : > { %v3635_v4 = vpack.c.bf16 %v3811_v2, %v3810_v3  ;;  %v3657_v2 = vpack.c.bf16 %v2919_v63, %v2918_v62  ;;  %v2921_v3 = vld [vmem:[%s5090_s0 + $0x18] sm:$0xff] }
 0xe56   : > { %3636 = vmatpush3.bf16.msra.mxu0 %v3635_v4  ;;  %v3660_v4 = vpack.c.bf16 %v2921_v3, %v2920_v1 }
 0xe57   : > { %3637 = vmatprep.subr.bf16.mxu0 %v4129_v10 }
 0xe58   : > { %v3857_v51 = vpop.eup %3856 }
 0xe59   : > { %v2442_v9 = vmul.f32 %v3857_v51, %v3855_v60  ;;  %v2923_v51 = vld [vmem:[%s5090_s0 + $0x28] sm:$0xff] }
 0xe5a   : > { %v3663_v7 = vpack.c.bf16 %v2923_v51, %v2922_v6 }
 0xe5b   : > { %3272 = vst.msk [vmem:[%s4757_s23 + $0x10] sm:$0xff] %vm1655_vm4, %v2442_v9  ;;  %3513 = vmatmul.mubr.msk.f32.vlgmr.msra.gmra.mrb[18].mxu0 %vm1655_vm4, %v2442_v9 }
 0xe5c   : > { %3519 = vmatprep.mubr.msk.f32.mxu0 %vm4130_vm1, %v4131_v13 }
 0xe5f   : > { %3640 = vmatpush3.bf16.xpose.msk.msra.mxu0 %vm4716_vm6, %v3638_v0 }
 0xe60   : > { %3650 = vmatprep.subr.bf16.mxu0 %v4129_v10 }
 0xe66   : > { %3520 = vmatmul.mubr.msk.f32.vlgmr.msra.gmra.mrb[20].mxu0 %vm981_vm2, %v2525_v11 }
 0xe67   : > { %3548 = vmatprep.mubr.msk.f32.mxu0 %vm4130_vm1, %v4131_v13  ;;  %3652 = vmatpush3.bf16.msra.mxu0 %v3651_v56 }
 0xe68   : > { %3653 = vmatprep.subr.bf16.mxu0 %v4129_v10 }
 0xf2e   : > { %v2520_v12 = vpop.f32.mrb[18].mxu0 }
 0xf2f   : > { %v3514_v14 = vpop.f32.mrb[19].mxu0 }
 0xf39   : > { %v2602_v15 = vpop.f32.mrb[20].mxu0 }
 0xf3a   : > { %v2606_v16 = vmul.f32 0.35355338, %v2602_v15  ;;  %v3521_v17 = vpop.f32.mrb[21].mxu0  ;;  %v3282_v15 = vld [vmem:[%s5092_s2] ss:$0 sm:$0xff]  ;;  %s3045_s2 = sshll.u32 %s4757_s23, 4  ;;  %s4905_s2 = int_to_ptr.vmem [resolvable:$true] %s3045_s2 }
 0xf3b   : > { %s4010_s17 = scalar_lea.vmem %s4905_s2, 512  ;;  %p4017_p9 = scmp.lt.s32.totalorder %s4905_s2, %s4015_s8 }
 0xf3c   : > { %v2607_v18 = vadd.f32 %v2606_v16, %v4739_v5  ;;  %p4011_p7 = scmp.ne.s32.totalorder %s4905_s2, %s4010_s17 }
 0xf3e   : > { %v2608_v20 = vsel %vm1655_vm4, %v2607_v18, -inf  ;;  %p4012_p13 = pnand %p4011_p7, %p5096_p10 }
 0xf3f   : > { %2609 = vmax.xlane.f32.xlu0 %v2608_v20  ;;  %v2925_v20 = vld [vmem:[%s5090_s0 + $0x38] sm:$0xff] }
 0xf40   : > { %p4013_p5 = pneg %p4012_p13 }
 0xf55   : > { %3818 = vrot.lane.b32.xlu0 %v4720_v59, %s5085_s25  ;;  %s5095_s25 = sld [smem:[#allocation43_spill]] }
 0xf59   : > { %2705 = vrot.lane.b32.xlu0 %v2520_v12, %s5086_s1  ;;  %v3281_v12 = vld [vmem:[%s5091_s24] ss:$0 sm:$0xff]  ;;  %s5093_s24 = sld [smem:[#allocation39_spill]] }
 0xf5b   : > { %s4903_s1 = scalar_lea.hbm %s5095_s25, %s3294_s29 }
 0xf5f   : > { %v3283_v32 = vld [vmem:[%s5093_s24] ss:$0 sm:$0xff] }
 0xfcc   : > { %v2610_v58 = vpop.xlane.xlu0 %2609 }
 0xfcd   : > { %v2611_v22 = vsub.f32 %v2607_v18, %v2610_v58  ;;  %v2924_v18 = vld [vmem:[%s5090_s0 + $0x30] sm:$0xff] }
 0xfce   : > { %v3666_v58 = vpack.c.bf16 %v2925_v20, %v2924_v18 }
 0xfcf   : > { %v2612_v23 = vmul.f32 1.442695, %v2611_v22  ;;  %v2926_v22 = vld [vmem:[%s5090_s0 + $0x40] sm:$0xff] }
 0xfd0   : > { %v3819_v24 = vpop.permute.xlu0 %3818 }
 0xfd1   : > { %3858 = vpow2.f32 %v2612_v23  ;;  %v3821_v25 = vunpack.i.h.bf16 %v3819_v24  ;;  %v3820_v26 = vunpack.i.l.bf16 %v3819_v24  ;;  %v2927_v23 = vld [vmem:[%s5090_s0 + $0x48] sm:$0xff] }
 0xfd2   : > { %v3669_v24 = vpack.c.bf16 %v2927_v23, %v2926_v22 }
 0xfd3   : > { %v3642_v27 = vpack.c.bf16 %v3821_v25, %v3820_v26  ;;  %v2928_v25 = vld [vmem:[%s5090_s0 + $0x50] sm:$0xff]  ;;  %v2929_v26 = vld [vmem:[%s5090_s0 + $0x58] sm:$0xff] }
 0xfd4   : > { %v2706_v41 = vpop.permute.xlu0 %2705 }
 0xfd5   : > { %3643 = vmatpush3.bf16.msra.mxu1 %v3642_v27  ;;  %v3672_v27 = vpack.c.bf16 %v2929_v26, %v2928_v25 }
 0xfd6   : > { %3644 = vmatprep.subr.bf16.mxu1 %v4129_v10 }
 0xfdb   : > { %v3859_v5 = vpop.eup %3858 }
 0xfdc   : > { %v2614_v28 = vsel %vm1655_vm4, %v3859_v5, 0.0 }
 0xfdd   : > { %2615 = vadd.xlane.f32.xlu1 %v2614_v28  ;;  %v2931_v28 = vld [vmem:[%s5090_s0 + $0x68] sm:$0xff] }
 0xfee   : > { %2701 = vrot.lane.b32.xlu1 %v2344_v21, %s5087_s20 }
0x106a   : > { %v2616_v59 = vpop.xlane.xlu1 %2615 }
0x106b   : > { %3860 = vrcp.f32 %v2616_v59 }
0x106e   : > { %v2702_v39 = vpop.permute.xlu1 %2701 }
0x106f   : > { %v2712_v40 = vsel %vm981_vm2, %v4776_v19, %v2702_v39 }
0x1070   : > { %v2713_v42 = vsel %vm1655_vm4, %v2712_v40, %v2706_v41 }
0x1075   : > { %v3861_v29 = vpop.eup %3860 }
0x1076   : > { %v2618_v30 = vmul.f32 %v3861_v29, %v3859_v5  ;;  %v2930_v5 = vld [vmem:[%s5090_s0 + $0x60] sm:$0xff]  ;;  %v2932_v29 = vld [vmem:[%s5090_s0 + $0x70] sm:$0xff] }
0x1077   : > { %v3675_v59 = vpack.c.bf16 %v2931_v28, %v2930_v5 }
0x1078   : > { %3277 = vst.msk [vmem:[%s4757_s23 + $0x18] sm:$0xff] %vm1655_vm4, %v2618_v30  ;;  %3527 = vmatmul.mubr.msk.f32.vlgmr.msra.gmra.mrb[16].mxu1 %vm1655_vm4, %v2618_v30  ;;  %v2933_v30 = vld [vmem:[%s5090_s0 + $0x78] sm:$0xff]  ;;  %s4016_s23 = scalar_lea.vmem %s4015_s8, 1024 }
0x1079   : > { %3537 = vmatprep.mubr.msk.f32.mxu1 %vm4130_vm1, %v4131_v13  ;;  %3646 = vmatpush3.bf16.msra.mxu1 %v3645_v34  ;;  %v3678_v31 = vpack.c.bf16 %v2933_v30, %v2932_v29  ;;  %p4018_p1 = scmp.lt.s32.totalorder %s4016_s23, %s4010_s17 }
0x107a   : > { %3647 = vmatprep.subr.bf16.mxu1 %v4129_v10 }
0x107b   : > { %p4019_p2 = por %p4018_p1, %p4017_p9 }
0x107d   : > { %3649 = vmatpush3.bf16.msra.mxu1 %v3648_v36  ;;  %p4020_p12 = pnand %p4019_p2, %p4013_p5 }
0x107e   : > { %3656 = vmatprep.subr.bf16.mxu1 %v4129_v10 }
0x114b   : > { %v2696_v37 = vpop.f32.mrb[16].mxu1 }
0x114c   : > { %2709 = vrot.lane.b32.xlu1 %v2696_v37, %s5088_s5  ;;  %v3528_v38 = vpop.f32.mrb[17].mxu1  ;;  %s3019_s5 = scalar_lea.sflag [#allocation13], %s4486_s19 }
0x11be   : > { %v2710_v43 = vpop.permute.xlu1 %2709 }
0x11bf   : > { %v2714_v44 = vsel %vm1657_vm5, %v2713_v42, %v2710_v43 }
0x11c0   : > { %3538 = vmatmul.mubr.msk.f32.vlgmr.msra.gmra.mrb[18].mxu1 %vm865_vm0, %v2714_v44 }
0x11c1   : > { %3583 = vmatprep.mubr.msk.f32.mxu1 %vm4130_vm1, %v4131_v13  ;;  %3658 = vmatpush3.bf16.msra.mxu1 %v3657_v2 }
0x11c2   : > { %3659 = vmatprep.subr.bf16.mxu1 %v4129_v10 }
0x11c5   : > { %3661 = vmatpush3.bf16.msra.mxu1 %v3660_v4 }
0x11c6   : > { %3662 = vmatprep.subr.bf16.mxu1 %v4129_v10 }
0x11c9   : > { %3664 = vmatpush3.bf16.msra.mxu1 %v3663_v7 }
0x11ca   : > { %3665 = vmatprep.subr.bf16.mxu1 %v4129_v10 }
0x11cd   : > { %3667 = vmatpush3.bf16.msra.mxu1 %v3666_v58 }
0x11ce   : > { %3668 = vmatprep.subr.bf16.mxu1 %v4129_v10 }
0x11d1   : > { %3670 = vmatpush3.bf16.msra.mxu1 %v3669_v24 }
0x11d2   : > { %3671 = vmatprep.subr.bf16.mxu1 %v4129_v10 }
0x11d5   : > { %3673 = vmatpush3.bf16.msra.mxu1 %v3672_v27 }
0x11d6   : > { %3674 = vmatprep.subr.bf16.mxu1 %v4129_v10 }
0x11d9   : > { %3676 = vmatpush3.bf16.msra.mxu1 %v3675_v59 }
0x11da   : > { %3677 = vmatprep.subr.bf16.mxu1 %v4129_v10 }
0x11dd   : > { %3679 = vmatpush3.bf16.msra.mxu1 %v3678_v31 }
0x1293   : > { %v2795_v46 = vpop.f32.mrb[18].mxu1 }
0x1294   : > { %v2796_v47 = vadd.f32 %v3279_v45, %v2795_v46  ;;  %v3539_v21 = vpop.f32.mrb[19].mxu1 }
0x1296   : > { %v4826_v19 = vadd.f32 %v2796_v47, %v4655_v61  ;;  %v2831_v61 = vld [vmem:[#allocation10 + $0x10] sm:$0xff] }
0x1297   : > { %v3654_v60 = vpack.c.bf16 %v2832_v57, %v2831_v61 }
0x1298   : > { %v2802_v48 = vsel %vm865_vm0, %v4826_v19, 0.0 }
0x1299   : > { %2803 = vadd.xlane.f32.xlu0 %v2802_v48  ;;  %3655 = vmatpush3.bf16.msra.mxu0 %v3654_v60 }
0x1326   : > { %v2804_v49 = vpop.xlane.xlu0 %2803 }
0x1327   : > { %v2805_v50 = vmul.f32 0.03125, %v2804_v49 }
0x1329   : > { %v2806_v52 = vsub.f32 %v4826_v19, %v2805_v50 }
0x132b   : > { %v2807_v53 = vmul.f32 %v2806_v52, %v2806_v52 }
0x132d   : > { %v2808_v13 = vsel %vm865_vm0, %v2807_v53, 0.0 }
0x132e   : > { %2809 = vadd.xlane.f32.xlu1 %v2808_v13 }
0x13bb   : > { %v2810_v8 = vpop.xlane.xlu1 %2809 }
0x13bc   : > { %v2811_v9 = vmul.f32 0.03125, %v2810_v8 }
0x13be   : > { %v2812_v0 = vadd.f32 1e-05, %v2811_v9 }
0x13c0   : > { %3862 = vrsqrt.f32 %v2812_v0 }
0x13ca   : > { %v3863_v11 = vpop.eup %3862 }
0x13cb   : > { %v2814_v14 = vmul.f32 %v3863_v11, %v2806_v52 }
0x13cd   : > { %v2821_v16 = vmul.f32 %v3281_v12, %v2814_v14 }
0x13cf   : > { %v2828_v17 = vadd.f32 %v3282_v15, %v2821_v16 }
0x13d1   : > { %3549 = vmatmul.mubr.msk.f32.vlgmr.msra.gmra.mrb[22].mxu0 %vm865_vm0, %v2828_v17 }
0x14a4   : > { %v2909_v33 = vpop.f32.mrb[22].mxu0 }
0x14a5   : > { %v2910_v34 = vadd.f32 %v3283_v32, %v2909_v33  ;;  %v3550_v10 = vpop.f32.mrb[23].mxu0 }
0x14a7   : > { %v2914_v35 = vmul.f32 0.70710677, %v2910_v34  ;;  %v2913_v37 = vmul.f32 0.5, %v2910_v34 }
0x14a9   : > { %3864 = verf.f32 %v2914_v35 }
0x14b3   : > { %v3865_v36 = vpop.eup %3864 }
0x14b4   : > { %v2916_v38 = vadd.f32 1.0, %v3865_v36 }
0x14b6   : > { %v2917_v39 = vmul.f32 %v2916_v38, %v2913_v37 }
0x14b8   : > { %3584 = vmatmul.mubr.f32.vlgmr.msra.gmra.mrb[20].mxu1 %v2917_v39 }
0x14b9   : > { %4023 = shalt.err (!%p4020_p12)
}
0x14ba   : > { %s4024_s4 = scalar_lea.hbm %s4903_s1, 512  ;;  %s4028_s30 = scalar_lea.hbm %s5095_s25, 1024 }
0x14bb   : > { %p4025_p6 = scmp.ne.s32.totalorder %s4903_s1, %s4024_s4  ;;  %p4029_p4 = scmp.lt.u32.totalorder %s4903_s1, %s5095_s25 }
0x14bc   : > { %p4030_p8 = scmp.lt.u32.totalorder %s4028_s30, %s4024_s4  ;;  %p4032_p7 = scmp.lt.u32.totalorder %s4024_s4, %s4903_s1 }
0x14bd   : > { %p4026_p11 = pnand %p4025_p6, %p5096_p10 }
0x14be   : > { %p4031_p3 = por %p4030_p8, %p4029_p4 }
0x14bf   : > { %p4027_p0 = pneg %p4026_p11 }
0x14c0   : > { %p4033_p13 = por %p4032_p7, %p4031_p3 }
0x14c2   : > { %p4034_p5 = pnand %p4033_p13, %p4027_p0 }
0x14c4   : > { %4037 = shalt.err (!%p4034_p5)
}
0x14c5   : > { %s4147_s17 = smov 128   ;;  %s5097_s24 = sld [smem:[#allocation41_spill]] }
0x14c6   : > { %3697 = dma.vmem_to_hbm [thread:$0]  (%p5096_p10), %s4905_s2, 512, %s4903_s1, %s3019_s5, %s4147_s17, %s4147_s17, %s5087_s20  }
0x14c7   : > { %s3288_s4 = sshll.u32 %s4295_s6, 7  ;;  %s849_s29 = scalar_lea.vmem [#allocation11], %s4489_s27 }
0x14c8   : > { %s3032_s30 = sshll.u32 %s849_s29, 4  ;;  %s5098_s0 = sld [smem:[#allocation42_spill]]  ;;  %s4943_s30 = int_to_ptr.vmem [resolvable:$true] %s3032_s30 }
0x14c9   : > { %s3014_s20 = scalar_lea.sflag [#allocation4], %s4486_s19  ;;  %s4038_s6 = scalar_lea.vmem %s4943_s30, 128 }
0x14ca   : > { %p4039_p9 = scmp.ne.s32.totalorder %s4943_s30, %s4038_s6  ;;  %s4148_s27 = smov [#allocation11]  }
0x14cb   : > { %v3285_v40 = vld [vmem:[%s5097_s24] ss:$0 sm:$0xff]  ;;  %s4042_s2 = sshll.u32 %s4148_s27, 4  ;;  %s4043_s2 = int_to_ptr.vmem [resolvable:$false] %s4042_s2 }
0x14cc   : > { %p4040_p1 = pnand %p4039_p9, %p5096_p10  ;;  %s4044_s1 = scalar_lea.vmem %s4043_s2, 256 }
0x14cd   : > { %p4045_p12 = scmp.lt.s32.totalorder %s4943_s30, %s4043_s2  ;;  %p4046_p6 = scmp.lt.s32.totalorder %s4044_s1, %s4038_s6 }
0x14ce   : > { %s4941_s9 = scalar_lea.hbm %s5098_s0, %s3288_s4  ;;  %p4041_p2 = pneg %p4040_p1 }
0x14cf   : > { %p4047_p11 = por %p4046_p6, %p4045_p12 }
0x14d1   : > { %p4048_p0 = pnand %p4047_p11, %p4041_p2 }
0x158b   : > { %v3007_v41 = vpop.f32.mrb[20].mxu1 }
0x158c   : > { %v3008_v42 = vadd.f32 %v3285_v40, %v3007_v41  ;;  %v3585_v43 = vpop.f32.mrb[21].mxu1 }
0x158e   : > { %v3011_v44 = vadd.f32 %v3008_v42, %v4826_v19 }
0x1590   : > { %3012 = vst.msk [vmem:[%s849_s29] sm:$0xff] %vm865_vm0, %v3011_v44 }
0x1591   : > { %4051 = shalt.err (!%p4048_p0)
}
0x1592   : > { %s4052_s19 = scalar_lea.hbm %s4941_s9, 128  ;;  %s4056_s8 = scalar_lea.hbm %s5098_s0, 256 }
0x1593   : > { %p4053_p4 = scmp.ne.s32.totalorder %s4941_s9, %s4052_s19  ;;  %p4057_p7 = scmp.lt.u32.totalorder %s4941_s9, %s5098_s0 }
0x1594   : > { %p4058_p13 = scmp.lt.u32.totalorder %s4056_s8, %s4052_s19  ;;  %p4060_p9 = scmp.lt.u32.totalorder %s4052_s19, %s4941_s9 }
0x1595   : > { %p4054_p8 = pnand %p4053_p4, %p5096_p10 }
0x1596   : > { %p4059_p5 = por %p4058_p13, %p4057_p7 }
0x1597   : > { %p4055_p3 = pneg %p4054_p8 }
0x1598   : > { %p4061_p1 = por %p4060_p9, %p4059_p5 }
0x159a   : > { %p4062_p2 = pnand %p4061_p1, %p4055_p3 }
0x159c   : > { %4065 = shalt.err (!%p4062_p2)
}
0x159d   : > { %3696 = dma.vmem_to_hbm [thread:$0]  (%p5096_p10), %s4943_s30, 128, %s4941_s9, %s3014_s20  }
0x159e PF: > { %s5099_s4 = sld [smem:[#allocation20_spill]]  ;;  %s5100_s29 = sld [smem:[#allocation22_spill]] }
0x159f   : > { %p5102_p6 = scmp.ge.s32.totalorder %s4120_s28, 2 }
0x15a4   : > { %s3060_s21 = sand.u32 1, %s5099_s4   ;;  %p5101_p12 = scmp.ne.s32.totalorder %s5100_s29, 0 }
0x15a5   : > { %s3061_s3 = scalar_lea.sflag [#allocation4], %s3060_s21 }
0x15a6   : > { %p3718_p11 = pnand %p5102_p6, %p5101_p12 }
0x15a8   : > { %4099 = dma.done.wait (!%p3718_p11), %s3061_s3, 128  }
0x15a9   : > { %4101 = vsyncadd (!%p3718_p11), %s3061_s3, 4294967168  ;;  %s3070_s6 = scalar_lea.sflag [#allocation13], %s3060_s21 }
0x15aa   : > { %4103 = dma.done.wait (!%p3718_p11), %s3070_s6, 512  }
0x15ab   : > { %4105 = vsyncadd (!%p3718_p11), %s3070_s6, 4294966784  ;;  %s5103_s28 = sld [smem:[#allocation23_spill]]  ;;  %s5104_s7 = sld [smem:[#allocation21_spill]] }
0x15ac   : > { %s5105_s27 = sld [smem:[#allocation24_spill]]  ;;  %s5106_s5 = smov %s4112_s26 }
0x15b1   : > { %p45_p10 = scmp.ge.s32.totalorder %s5103_s28, 4   ;;  %s5107_s26 = smov %s5104_s7 }
0x15b3   :  { %47 = sbr.rel (!%p45_p10) target bundleno = 29 (0x1d), region = 205 }
0x15ba   :  { %3075 = vsyncpa [#allocation3], 1 }
0x15bb   :  { %3077 = vsyncpa [#allocation3 + $0x1], 1 }
0x15bc   :  { %3078 = vsyncpa [#allocation6], 1 }
0x15bd   :  { %3080 = vsyncpa [#allocation6 + $0x1], 1 }
0x15be   :  { %3081 = vsyncpa [#allocation9], 1 }
0x15bf   :  { %3082 = vsyncpa [#allocation4], 1 }
0x15c0   :  { %3084 = vsyncpa [#allocation4 + $0x1], 1 }
0x15c1   :  { %3085 = vsyncpa [#allocation13], 1 }
0x15c2   :  { %3087 = vsyncpa [#allocation13 + $0x1], 1 }

// kernel: tpu_custom_call.1
= control target key start
LH: loop header
LB: loop body
LE: loop exit
PB: predicated region body
PF: predicated region fallthrough
CT: control target
= control target key end

     0   :  { %s4986_s0 = inlined_call_operand.hbm [shape: f32[2,8,32], index: 0, kind: input, shape index: {}]   ;;  %s4987_s1 = inlined_call_operand.vmem [shape: f32[2,16,48], index: 1, kind: input, shape index: {}]   ;;  %s4988_s2 = inlined_call_operand.hbm [shape: f32[2,8,16], index: 2, kind: input, shape index: {}]   ;;  %s4989_s3 = inlined_call_operand.vmem [shape: f32[1,32], index: 3, kind: input, shape index: {}]   ;;  %s4990_s4 = inlined_call_operand.vmem [shape: f32[1,32], index: 4, kind: input, shape index: {}]   ;;  %s4991_s5 = inlined_call_operand.hbm [shape: f32[1,48], index: 5, kind: input, shape index: {}]   ;;  %s4992_s6 = inlined_call_operand.vmem [shape: f32[1,48], index: 6, kind: input, shape index: {}]   ;;  %s4993_s7 = inlined_call_operand.vmem [shape: f32[1,32], index: 7, kind: input, shape index: {}]   ;;  %s4994_s8 = inlined_call_operand.vmem [shape: f32[1,32], index: 8, kind: input, shape index: {}]   ;;  %s4995_s9 = inlined_call_operand.vmem [shape: f32[32,96], index: 9, kind: input, shape index: {}]   ;;  %s4996_s10 = inlined_call_operand.vmem [shape: f32[1,96], index: 10, kind: input, shape index: {}]   ;;  %s4997_s11 = inlined_call_operand.vmem [shape: f32[32,32], index: 11, kind: input, shape index: {}]   ;;  %s4998_s12 = inlined_call_operand.vmem [shape: f32[1,32], index: 12, kind: input, shape index: {}]   ;;  %s4999_s13 = inlined_call_operand.vmem [shape: f32[32,32], index: 13, kind: input, shape index: {}]   ;;  %s5000_s14 = inlined_call_operand.vmem [shape: f32[1,32], index: 14, kind: input, shape index: {}]   ;;  %s5001_s15 = inlined_call_operand.vmem [shape: f32[48,64], index: 15, kind: input, shape index: {}]   ;;  %s5002_s16 = inlined_call_operand.vmem [shape: f32[1,64], index: 16, kind: input, shape index: {}]   ;;  %s5003_s17 = inlined_call_operand.hbm [shape: f32[32,32], index: 17, kind: input, shape index: {}]   ;;  %s5004_s18 = inlined_call_operand.vmem [shape: f32[1,32], index: 18, kind: input, shape index: {}]   ;;  %s5005_s19 = inlined_call_operand.hbm [shape: f32[32,128], index: 19, kind: input, shape index: {}]   ;;  %s5006_s20 = inlined_call_operand.vmem [shape: f32[1,128], index: 20, kind: input, shape index: {}]   ;;  %s5007_s21 = inlined_call_operand.vmem [shape: f32[128,32], index: 21, kind: input, shape index: {}]   ;;  %s5008_s22 = inlined_call_operand.vmem [shape: f32[1,32], index: 22, kind: input, shape index: {}]   ;;  %s5009_s23 = inlined_call_operand.hbm [shape: f32[2,8,32], index: 23, kind: output, shape index: {0}]   ;;  %s5010_s24 = inlined_call_operand.hbm [shape: f32[2,4,8,16], index: 24, kind: output, shape index: {1}]  }
   0x1   :  { %5035 = sst [smem:[#allocation26_spill]] %s4986_s0 }
   0x2   :  { %5036 = sst [smem:[#allocation27_spill]] %s4987_s1 }
   0x3   :  { %5037 = sst [smem:[#allocation28_spill]] %s4988_s2 }
   0x4   :  { %5038 = sst [smem:[#allocation29_spill]] %s4989_s3 }
   0x5   :  { %5039 = sst [smem:[#allocation30_spill]] %s4990_s4 }
   0x6   :  { %5040 = sst [smem:[#allocation31_spill]] %s4991_s5 }
   0x7   :  { %5041 = sst [smem:[#allocation32_spill]] %s4992_s6 }
   0x8   :  { %5042 = sst [smem:[#allocation33_spill]] %s4993_s7 }
   0x9   :  { %5043 = sst [smem:[#allocation34_spill]] %s4994_s8 }
   0xa   :  { %5044 = sst [smem:[#allocation35_spill]] %s4995_s9 }
   0xb   :  { %5045 = sst [smem:[#allocation36_spill]] %s5003_s17 }
   0xc   :  { %5046 = sst [smem:[#allocation37_spill]] %s5004_s18 }
   0xd   :  { %5047 = sst [smem:[#allocation38_spill]] %s5005_s19 }
   0xe   :  { %5048 = sst [smem:[#allocation39_spill]] %s5006_s20 }
   0xf   :  { %5049 = sst [smem:[#allocation40_spill]] %s5007_s21 }
  0x10   :  { %5050 = sst [smem:[#allocation41_spill]] %s5008_s22 }
  0x11   :  { %5051 = sst [smem:[#allocation42_spill]] %s5009_s23 }
  0x12   :  { %5052 = sst [smem:[#allocation43_spill]] %s5010_s24 }
  0x13   :  { %30 = vsyncpa [#allocation3], 0 }
  0x14   :  { %32 = vsyncpa [#allocation3 + $0x1], 0 }
  0x15   :  { %33 = vsyncpa [#allocation6], 0 }
  0x16   :  { %35 = vsyncpa [#allocation6 + $0x1], 0 }
  0x17   :  { %36 = vsyncpa [#allocation9], 0 }
  0x18   :  { %37 = vsyncpa [#allocation4], 0 }
  0x19   :  { %39 = vsyncpa [#allocation4 + $0x1], 0 }
  0x1a   :  { %40 = vsyncpa [#allocation13], 0 }
  0x1b   :  { %42 = vsyncpa [#allocation13 + $0x1], 0  ;;  %s4274_s5 = smov 0   ;;  %s4276_s26 = smov 0  }
  0x1c   :  { %s4278_s27 = smov 0   ;;  %s4280_s28 = smov 0  }
  0x1d LB: > { %5053 = sst [smem:[#allocation20_spill]] %s4108_s5  ;;  %s4295_s6 = sadd.s32 4294967295, %s4120_s28   ;;  %s4120_s28 = sphi %s4280_s28, %s5103_s28   ;;  %s4116_s27 = sphi %s4278_s27, %s5105_s27   ;;  %s4112_s26 = sphi %s4276_s26, %s5107_s26   ;;  %s4108_s5 = sphi %s4274_s5, %s5106_s5  }
  0x1e   : > { %5054 = sst [smem:[#allocation21_spill]] %s4116_s27  ;;  %s3213_s2 = sadd.s32 4294967294, %s4120_s28  }
  0x1f   : > { %p68_p0 = scmp.ne.s32.totalorder %s4112_s26, %s4108_s5  ;;  %p5018_p1 = scmp.eq.s32.totalorder %s4295_s6, 0 }
  0x20   : > { %p570_p3 = scmp.eq.s32.totalorder %s3213_s2, 1  ;;  %p3214_p5 = scmp.ge.s32.totalorder %s4120_s28, 1 }
  0x21   : > { %p4304_p4 = por %p5018_p1, %p68_p0  ;;  %p603_p7 = scmp.lt.s32.totalorder %s4120_s28, 3 }
  0x22   : > { %p4309_p6 = por %p570_p3, %p68_p0  ;;  %s4122_s30 = smov [#allocation7]  }
  0x23   : > { %s5055_s29 = scalar_select %p4304_p4, 1, 0 }
  0x24   : > { %s5056_s0 = scalar_select %p4309_p6, 1, 0 }
  0x25   : > { %p4314_p8 = pnand %p3214_p5, %p603_p7  ;;  %s622_s3 = sshll.u32 %s4122_s30, 4  ;;  %s623_s3 = int_to_ptr.vmem [resolvable:$true] %s622_s3 }
  0x26   : > { %5057 = sst [smem:[#allocation22_spill]] %s5056_s0  ;;  %s4123_s25 = smov [#allocation8]  }
  0x27   : > { %s5058_s7 = scalar_select %p4314_p8, 1, 0 }
  0x28   : > { %p3700_p10 = pneg %p4314_p8  ;;  %s665_s8 = sshll.u32 %s4123_s25, 4  ;;  %s4327_s8 = int_to_ptr.vmem [resolvable:$true] %s665_s8 }
  0x29   : > { %s4124_s1 = smov [#allocation10]   ;;  %s5060_s30 = sld [smem:[#allocation31_spill]] }
  0x2a   : > { %p4323_p11 = pnand %p3700_p10, %p5018_p1  ;;  %s4329_s2 = sshll.u32 %s4124_s1, 4  ;;  %s682_s2 = int_to_ptr.vmem [resolvable:$true] %s4329_s2 }
  0x2c   : > { %p4339_p13 = pneg %p4323_p11 }
  0x2f   : > { %s3866_s23 = scalar_lea.hbm %s5060_s30, 16 }
  0x30   : > { %p3867_p12 = scmp.ne.s32.totalorder %s5060_s30, %s3866_s23  ;;  %p3873_p5 = scmp.lt.u32.totalorder %s3866_s23, %s5060_s30 }
  0x32   : > { %p3869_p0 = pnand %p4339_p13, %p3867_p12 }
  0x34   : > { %p3870_p3 = pneg %p3869_p0 }
  0x36   : > { %p3875_p7 = pnand %p3873_p5, %p3870_p3 }
  0x38   : > { %3878 = shalt.err (!%p3875_p7)
}
  0x39   : > { %s3879_s5 = scalar_lea.vmem %s623_s3, 16  ;;  %s3886_s22 = scalar_lea.vmem %s623_s3, 32 }
  0x3a   : > { %p3880_p10 = scmp.ne.s32.totalorder %s623_s3, %s3879_s5  ;;  %p3887_p2 = scmp.lt.s32.totalorder %s623_s3, %s623_s3 }
  0x3b   : > { %p3888_p6 = scmp.lt.s32.totalorder %s3886_s22, %s3879_s5 }
  0x3c   : > { %p3882_p9 = pnand %p3880_p10, %p4339_p13 }
  0x3d   : > { %p3889_p4 = por %p3888_p6, %p3887_p2 }
  0x3e   : > { %p3883_p1 = pneg %p3882_p9 }
  0x40   : > { %p3890_p8 = pnand %p3889_p4, %p3883_p1 }
  0x42   : > { %3893 = shalt.err (!%p3890_p8)
}
  0x43   : > { %3703 = dma.hbm_to_vmem [thread:$0]  (!%p4323_p11), %s5060_s30, 16, %s623_s3, [#allocation6]  }
  0x44   : > { %s5062_s17 = sld [smem:[#allocation36_spill]] }
  0x4a   : > { %s3894_s1 = scalar_lea.hbm %s5062_s17, 512 }
  0x4b   : > { %p3895_p9 = scmp.ne.s32.totalorder %s5062_s17, %s3894_s1  ;;  %p3901_p1 = scmp.lt.u32.totalorder %s3894_s1, %s5062_s17 }
  0x4d   : > { %p3897_p12 = pnand %p3895_p9, %p4339_p13 }
  0x4f   : > { %p3898_p2 = pneg %p3897_p12 }
  0x51   : > { %p3903_p4 = pnand %p3901_p1, %p3898_p2 }
  0x53   : > { %3906 = shalt.err (!%p3903_p4)
}
  0x54   : > { %s3907_s3 = scalar_lea.vmem %s4327_s8, 512  ;;  %p3915_p3 = scmp.lt.s32.totalorder %s4327_s8, %s4327_s8 }
  0x55   : > { %p3908_p6 = scmp.ne.s32.totalorder %s4327_s8, %s3907_s3  ;;  %p3916_p5 = scmp.lt.s32.totalorder %s3907_s3, %s3907_s3 }
  0x57   : > { %p3910_p8 = pnand %p3908_p6, %p4339_p13  ;;  %p3917_p7 = por %p3916_p5, %p3915_p3 }
  0x59   : > { %p3911_p0 = pneg %p3910_p8 }
  0x5b   : > { %p3918_p10 = pnand %p3917_p7, %p3911_p0 }
  0x5d   : > { %3921 = shalt.err (!%p3918_p10)
}
  0x5e   : > { %s4125_s18 = smov 128   ;;  %s4126_s21 = smov 8  }
  0x5f   : > { %3706 = dma.hbm_to_vmem [thread:$0]  (!%p4323_p11), %s5062_s17, 512, %s4327_s8, [#allocation9], %s4125_s18, %s4125_s18, %s4126_s21  }
  0x60   : > { %s5063_s19 = sld [smem:[#allocation38_spill]] }
  0x66   : > { %s3922_s1 = scalar_lea.hbm %s5063_s19, 512 }
  0x67   : > { %p3923_p9 = scmp.ne.s32.totalorder %s5063_s19, %s3922_s1  ;;  %p3929_p1 = scmp.lt.u32.totalorder %s3922_s1, %s5063_s19 }
  0x69   : > { %p3925_p12 = pnand %p3923_p9, %p4339_p13 }
  0x6b   : > { %p3926_p2 = pneg %p3925_p12 }
  0x6d   : > { %p3931_p4 = pnand %p3929_p1, %p3926_p2 }
  0x6f   : > { %3934 = shalt.err (!%p3931_p4)
}
  0x70   : > { %s3935_s24 = scalar_lea.vmem %s682_s2, 512  ;;  %p3943_p3 = scmp.lt.s32.totalorder %s682_s2, %s682_s2 }
  0x71   : > { %p3936_p6 = scmp.ne.s32.totalorder %s682_s2, %s3935_s24  ;;  %p3944_p5 = scmp.lt.s32.totalorder %s3935_s24, %s3935_s24 }
  0x73   : > { %p3938_p8 = pnand %p3936_p6, %p4339_p13  ;;  %p3945_p7 = por %p3944_p5, %p3943_p3 }
  0x75   : > { %p3939_p0 = pneg %p3938_p8 }
  0x77   : > { %p3946_p10 = pnand %p3945_p7, %p3939_p0 }
  0x79   : > { %3949 = shalt.err (!%p3946_p10)
}
  0x7a   : > { %3709 = dma.hbm_to_vmem [thread:$0]  (!%p4323_p11), %s5063_s19, 512, %s682_s2, [#allocation9], %s4125_s18, %s4125_s18, %s4126_s21  }
  0x7b   : > { %s4398_s30 = sadd.s32 1, %s4120_s28   ;;  %s55_s4 = sadd.s32 1, %s4116_s27 }
  0x7c   : > { %5064 = sst [smem:[#allocation23_spill]] %s4398_s30  ;;  %s52_s25 = ssub.s32 %s4120_s28, %s4398_s30 }
  0x7d   : > { %p53_p13 = scmp.eq.s32.totalorder %s52_s25, 0  ;;  %p62_p9 = scmp.ne.s32.totalorder %s4116_s27, %s4112_s26 }
  0x7e   : > { %p63_p12 = scmp.eq.s32.totalorder %s4120_s28, 0  ;;  %p3727_p2 = scmp.lt.s32.totalorder %s4120_s28, 2 }
  0x7f   : > { %s4408_s20 = scalar_select %p53_p13, %s4116_s27, %s55_s4  }
  0x80   : > { %p64_p1 = por %p63_p12, %p62_p9  ;;  %p5066_p4 = scmp.eq.s32.totalorder %s4295_s6, 1 }
  0x81   : > { %5065 = sst [smem:[#allocation24_spill]] %s4408_s20  ;;  %s704_s1 = sand.u32 1, %s4116_s27  }
  0x82   : > { %p4412_p6 = por %p5066_p4, %p62_p9  ;;  %s3220_s5 = sshll.u32 %s4120_s28, 7 }
  0x83   : > { %s4418_s2 = sshll.u32 %s704_s1, 3  ;;  %s5069_s22 = sld [smem:[#allocation26_spill]] }
  0x84   : > { %s5067_s23 = scalar_select %p4412_p6, 1, 0 }
  0x85   : > { %s708_s24 = scalar_lea.vmem [#allocation2], %s4418_s2  ;;  %p4426_p11 = pnand %p3727_p2, %p64_p1 }
  0x86   : > { %5068 = sst [smem:[#allocation25_spill]] %s5067_s23  ;;  %s715_s8 = sshll.u32 %s708_s24, 4  ;;  %s4430_s8 = int_to_ptr.vmem [resolvable:$true] %s715_s8 }
  0x87   : > { %s5071_s18 = sld [smem:[#allocation28_spill]]  ;;  %s705_s17 = scalar_lea.sflag [#allocation3], %s704_s1 }
  0x88   : > { %p3952_p0 = pneg %p4426_p11 }
  0x89   : > { %s4423_s3 = scalar_lea.hbm %s5069_s22, %s3220_s5  ;;  %s3955_s27 = scalar_lea.hbm %s5069_s22, 256 }
  0x8a   : > { %s3950_s19 = scalar_lea.hbm %s4423_s3, 128  ;;  %p3956_p7 = scmp.lt.u32.totalorder %s4423_s3, %s5069_s22 }
  0x8b   : > { %p3951_p8 = scmp.ne.s32.totalorder %s4423_s3, %s3950_s19  ;;  %p3957_p10 = scmp.lt.u32.totalorder %s3955_s27, %s3950_s19 }
  0x8c   : > { %p3959_p9 = scmp.lt.u32.totalorder %s3950_s19, %s4423_s3 }
  0x8d   : > { %s4435_s21 = scalar_lea.hbm %s5071_s18, %s3220_s5  ;;  %p3953_p3 = pnand %p3952_p0, %p3951_p8 }
  0x8e   : > { %p3958_p13 = por %p3957_p10, %p3956_p7 }
  0x8f   : > { %p3954_p5 = pneg %p3953_p3 }
  0x90   : > { %p3960_p12 = por %p3959_p9, %p3958_p13 }
  0x92   : > { %p3961_p2 = pnand %p3960_p12, %p3954_p5 }
  0x94   : > { %3964 = shalt.err (!%p3961_p2)
}
  0x95   : > { %s3965_s1 = scalar_lea.vmem %s4430_s8, 128  ;;  %s4127_s20 = smov [#allocation2]  }
  0x96   : > { %p3966_p1 = scmp.ne.s32.totalorder %s4430_s8, %s3965_s1  ;;  %s3970_s5 = sshll.u32 %s4127_s20, 4  ;;  %s3971_s5 = int_to_ptr.vmem [resolvable:$false] %s3970_s5 }
  0x97   : > { %s3972_s30 = scalar_lea.vmem %s3971_s5, 256  ;;  %p3973_p3 = scmp.lt.s32.totalorder %s4430_s8, %s3971_s5 }
  0x98   : > { %p3968_p4 = pnand %p3966_p1, %p3952_p0  ;;  %p3974_p7 = scmp.lt.s32.totalorder %s3972_s30, %s3965_s1 }
  0x9a   : > { %p3969_p8 = pneg %p3968_p4  ;;  %p3975_p10 = por %p3974_p7, %p3973_p3 }
  0x9c   : > { %p3976_p13 = pnand %p3975_p10, %p3969_p8 }
  0x9e   : > { %3979 = shalt.err (!%p3976_p13)
}
  0x9f   : > { %3713 = dma.hbm_to_vmem [thread:$0]  (!%p4426_p11), %s4423_s3, 128, %s4430_s8, %s705_s17  }
  0xa0   : > { %s730_s19 = sand.u32 1, %s4120_s28   ;;  %s734_s27 = scalar_lea.vmem [#allocation5], %s4418_s2 }
  0xa1   : > { %s741_s23 = sshll.u32 %s734_s27, 4  ;;  %s731_s25 = scalar_lea.sflag [#allocation6], %s730_s19  ;;  %s742_s23 = int_to_ptr.vmem [resolvable:$true] %s741_s23 }
  0xa2   : > { %s3980_s4 = scalar_lea.hbm %s4435_s21, 128  ;;  %s3985_s20 = scalar_lea.hbm %s5071_s18, 256 }
  0xa3   : > { %p3981_p5 = scmp.ne.s32.totalorder %s4435_s21, %s3980_s4  ;;  %p3986_p2 = scmp.lt.u32.totalorder %s4435_s21, %s5071_s18 }
  0xa4   : > { %p3987_p1 = scmp.lt.u32.totalorder %s3985_s20, %s3980_s4  ;;  %p3989_p8 = scmp.lt.u32.totalorder %s3980_s4, %s4435_s21 }
  0xa5   : > { %p3983_p9 = pnand %p3981_p5, %p3952_p0 }
  0xa6   : > { %p3988_p4 = por %p3987_p1, %p3986_p2 }
  0xa7   : > { %p3984_p12 = pneg %p3983_p9 }
  0xa8   : > { %p3990_p3 = por %p3989_p8, %p3988_p4 }
  0xaa   : > { %p3991_p7 = pnand %p3990_p3, %p3984_p12 }
  0xac   : > { %3994 = shalt.err (!%p3991_p7)
}
  0xad   : > { %s3995_s17 = scalar_lea.vmem %s742_s23, 128  ;;  %s4128_s2 = smov [#allocation5]  }
  0xae   : > { %p3996_p10 = scmp.ne.s32.totalorder %s742_s23, %s3995_s17  ;;  %s4000_s3 = sshll.u32 %s4128_s2, 4  ;;  %s4001_s3 = int_to_ptr.vmem [resolvable:$false] %s4000_s3 }
  0xaf   : > { %s4002_s8 = scalar_lea.vmem %s4001_s3, 256  ;;  %p4003_p9 = scmp.lt.s32.totalorder %s742_s23, %s4001_s3 }
  0xb0   : > { %p3998_p13 = pnand %p3996_p10, %p3952_p0  ;;  %p4004_p6 = scmp.lt.s32.totalorder %s4002_s8, %s3995_s17 }
  0xb2   : > { %p3999_p5 = pneg %p3998_p13  ;;  %p4005_p1 = por %p4004_p6, %p4003_p9 }
  0xb4   : > { %p4006_p2 = pnand %p4005_p1, %p3999_p5 }
  0xb6   : > { %4009 = shalt.err (!%p4006_p2)
}
  0xb7   : > { %3716 = dma.hbm_to_vmem [thread:$0]  (!%p4426_p11), %s4435_s21, 128, %s742_s23, %s731_s25  }
  0xb8   : > { %p5072_p12 = scmp.ne.s32.totalorder %s5058_s7, 0 }
  0xb9   : > { %s4486_s19 = sand.u32 (!%p5072_p12), 1, %s4112_s26   ;;  %p5073_p6 = scmp.ne.s32.totalorder (!%p5072_p12), %s5055_s29, 0 }
  0xba   : > { %750 = sbr.rel (%p5072_p12) target bundleno = 5534 (0x159e), region = 112  ;;  %s4489_s27 = sshll.u32 (!%p5072_p12), %s4486_s19, 3 }
  0xbb   : > { %s753_s4 = scalar_lea.sflag (!%p5072_p12), [#allocation3], %s4486_s19  ;;  %s756_s24 = scalar_lea.vmem (!%p5072_p12), [#allocation2], %s4489_s27 }
  0xc1   : > { %4083 = dma.done.wait (%p5073_p6), %s753_s4, 128  }
  0xc2   : > { %4085 = vsyncadd (%p5073_p6), %s753_s4, 4294967168  ;;  %s761_s7 = sand.u32 1, %s4295_s6   ;;  %s765_s21 = scalar_lea.vmem [#allocation5], %s4489_s27 }
  0xc3   : > { %s762_s0 = scalar_lea.sflag [#allocation6], %s761_s7 }
  0xc4   : > { %4087 = dma.done.wait (%p5073_p6), %s762_s0, 128  }
  0xc5   : > { %4089 = vsyncadd (%p5073_p6), %s762_s0, 4294967168  ;;  %p5074_p11 = scmp.eq.s32.totalorder %s4295_s6, 0 }
  0xc7   : > { %4091 = dma.done.wait (%p5074_p11), [#allocation6], 16   ;;  %p5075_p0 = pmov %p5074_p11 }
  0xc9   : > { %4093 = vsyncadd (%p5075_p0), [#allocation6], 4294967280  ;;  %p5076_p4 = pmov %p5075_p0 }
  0xca   : > { %p5077_p8 = pmov %p5075_p0 }
  0xcb   : > { %4095 = dma.done.wait (%p5076_p4), [#allocation9], 1024  }
  0xcc   : > { %4097 = vsyncadd (%p5077_p8), [#allocation9], 4294966272  ;;  %vm865_vm0 = vcmask 261120   ;;  %v4511_v0 = vld [vmem:[%s756_s24] sm:$0xff]  ;;  %s5078_s9 = sld [smem:[#allocation35_spill]]  ;;  %v4129_v10 = vmov 0.0|0.0  }
  0xcd   : > { %v866_v1 = vsel %vm865_vm0, %v4511_v0, 0.0  ;;  %3586 = vmatprep.subr.bf16.mxu0 %v4129_v10  ;;  %vm4130_vm1 = vmmov 0   ;;  %v4131_v13 = vmov 0.0   ;;  %s5079_s8 = sld [smem:[#allocation29_spill]]  ;;  %s5080_s7 = sld [smem:[#allocation30_spill]]  ;;  %vm981_vm2 = vcmask 64512  }
  0xce   : > { %867 = vadd.xlane.f32.xlu0 %v866_v1  ;;  %3393 = vmatprep.mubr.msk.f32.mxu0 %vm4130_vm1, %v4131_v13  ;;  %v3235_v24 = vld [vmem:[%s4996_s10] ss:$0 sm:$0xff]  ;;  %s4132_s23 = smov 120   ;;  %s4133_s25 = smov 96   ;;  %vm1777_vm3 = vcmask 392192   ;;  %vm1655_vm4 = vcmask 130048   ;;  %vm4716_vm6 = vmpackc.low %vm981_vm2, %vm981_vm2 }
  0xcf   : > { %3401 = vmatprep.subr.mxu1 %v4131_v13  ;;  %3403 = vmatprep.mubr.msk.f32.mxu1 %vm4130_vm1, %v4131_v13  ;;  %s4134_s1 = smov 88   ;;  %s4135_s20 = smov 80   ;;  %vm1657_vm5 = vcmask 195584  }
  0xd0   : > { %s4136_s5 = smov 112   ;;  %s5029_s30 = smov 72  }
  0xd1   : > { %s4138_s17 = smov 104   ;;  %s4139_s2 = smov 64  }
  0xd2   : > { %v894_v7 = vld [vmem:[%s5078_s9] sm:$0xff]  ;;  %v895_v8 = vld [vmem:[%s5078_s9 + $0x8] sm:$0xff]  ;;  %v896_v9 = vld [vmem:[%s5078_s9 + $0x10] sm:$0xff]  ;;  %s4140_s3 = smov 48   ;;  %s4142_s4 = smov 56  }
  0xd3   : > { %v3587_v11 = vpack.c.bf16 %v895_v8, %v894_v7  ;;  %v897_v12 = vld [vmem:[%s5078_s9 + $0x18] sm:$0xff]  ;;  %v4540_v19 = vld [vmem:[%s5079_s8] ss:$0 sm:$0xff]  ;;  %s4141_s8 = smov 40   ;;  %s5031_s24 = smov 8  }
  0xd4   : > { %v3590_v14 = vpack.c.bf16 %v897_v12, %v896_v9  ;;  %v4545_v21 = vld [vmem:[%s5080_s7] ss:$0 sm:$0xff]  ;;  %s5033_s7 = smov 16   ;;  %s5030_s0 = smov 24  }
  0xd5   : > { %3588 = vmatpush3.bf16.msra.mxu0 %v3587_v11  ;;  %p857_p3 = scmp.lt.s32.totalorder %s4295_s6, 1 }
  0xd6   : > { %3589 = vmatprep.subr.bf16.mxu0 %v4129_v10 }
  0xd7   : > { %s858_s29 = scalar_select %p857_p3, %s4295_s6, 1 }
  0xd9   : > { %3591 = vmatpush3.bf16.msra.mxu0 %v3590_v14 }
  0xda   : > { %3396 = vmatprep.subr.mxu0 %v4131_v13 }
 0x15b   : > { %v868_v2 = vpop.xlane.xlu0 %867 }
 0x15c   : > { %v870_v3 = vmul.f32 0.03125, %v868_v2 }
 0x15e   : > { %v871_v4 = vsub.f32 %v4511_v0, %v870_v3 }
 0x160   : > { %v872_v5 = vmul.f32 %v871_v4, %v871_v4 }
 0x162   : > { %v873_v6 = vsel %vm865_vm0, %v872_v5, 0.0 }
 0x163   : > { %874 = vadd.xlane.f32.xlu0 %v873_v6 }
 0x1f0   : > { %v875_v15 = vpop.xlane.xlu0 %874 }
 0x1f1   : > { %v876_v16 = vmul.f32 0.03125, %v875_v15 }
 0x1f3   : > { %v877_v17 = vadd.f32 1e-05, %v876_v16 }
 0x1f5   : > { %3822 = vrsqrt.f32 %v877_v17 }
 0x1ff   : > { %v3823_v18 = vpop.eup %3822 }
 0x200   : > { %v879_v20 = vmul.f32 %v3823_v18, %v871_v4 }
 0x202   : > { %v886_v22 = vmul.f32 %v4540_v19, %v879_v20 }
 0x204   : > { %v893_v23 = vadd.f32 %v4545_v21, %v886_v22 }
 0x206   : > { %3394 = vmatmul.mubr.msk.f32.vlgmr.msra.gmra.mrb[0].mxu0 %vm865_vm0, %v893_v23 }
 0x207   : > { %3398 = vmatprep.mubr.msk.f32.mxu0 %vm4130_vm1, %v4131_v13 }
 0x2d9   : > { %v974_v25 = vpop.f32.mrb[0].mxu0 }
 0x2da   : > { %v4555_v26 = vadd.f32 %v3235_v24, %v974_v25  ;;  %v3395_v27 = vpop.f32.mrb[1].mxu0 }
 0x2dc   : > { %1144 = vrot.lane.b32.xlu0 %v4555_v26, %s4132_s23  ;;  %979 = vrot.lane.b32.xlu1 %v4555_v26, %s4133_s25 }
 0x2e0   : > { %1146 = vrot.lane.b32.xlu1 %v4555_v26, %s4134_s1 }
 0x2e4   : > { %1312 = vrot.lane.b32.xlu1 %v4555_v26, %s4135_s20 }
 0x2e8   : > { %1310 = vrot.lane.b32.xlu1 %v4555_v26, %s4136_s5 }
 0x2ec   : > { %1478 = vrot.lane.b32.xlu1 %v4555_v26, %s5029_s30 }
 0x2f0   : > { %1476 = vrot.lane.b32.xlu1 %v4555_v26, %s4138_s17 }
 0x34e   : > { %v980_v28 = vpop.permute.xlu1 %979  ;;  %v1145_v30 = vpop.permute.xlu0 %1144 }
 0x34f   : > { %3397 = vmatpush3.xpose.msk.msra.mxu0 %vm981_vm2, %v980_v28  ;;  %v1659_v28 = vld [vmem:[%s4997_s11] sm:$0xff] }
 0x350   : > { %3406 = vmatprep.subr.mxu0 %v4131_v13 }
 0x352   : > { %3399 = vmatmul.mubr.msk.f32.vlgmr.msra.gmra.mrb[2].mxu0 %vm981_vm2, %v4555_v26  ;;  %v1147_v29 = vpop.permute.xlu1 %1146 }
 0x353   : > { %3407 = vmatpush3.xpose.msk.msra.mxu0 %vm981_vm2, %v1147_v29  ;;  %3408 = vmatprep.mubr.msk.f32.mxu0 %vm4130_vm1, %v4131_v13  ;;  %v1660_v29 = vld [vmem:[%s4997_s11 + $0x8] sm:$0xff] }
 0x354   : > { %3416 = vmatprep.subr.mxu0 %v4131_v13 }
 0x356   : > { %3409 = vmatmul.mubr.msk.f32.vlgmr.msra.gmra.mrb[4].mxu0 %vm981_vm2, %v1145_v30  ;;  %v1313_v31 = vpop.permute.xlu1 %1312  ;;  %v3593_v30 = vpack.c.bf16 %v1660_v29, %v1659_v28 }
 0x357   : > { %3417 = vmatpush3.xpose.msk.msra.mxu0 %vm981_vm2, %v1313_v31  ;;  %3418 = vmatprep.mubr.msk.f32.mxu0 %vm4130_vm1, %v4131_v13 }
 0x358   : > { %3426 = vmatprep.subr.mxu0 %v4131_v13 }
 0x35a   : > { %v1311_v32 = vpop.permute.xlu1 %1310 }
 0x35b   : > { %3419 = vmatmul.mubr.msk.f32.vlgmr.msra.gmra.mrb[6].mxu0 %vm981_vm2, %v1311_v32 }
 0x35c   : > { %3428 = vmatprep.mubr.msk.f32.mxu0 %vm4130_vm1, %v4131_v13 }
 0x35e   : > { %v1479_v33 = vpop.permute.xlu1 %1478 }
 0x35f   : > { %3427 = vmatpush3.xpose.msk.msra.mxu0 %vm981_vm2, %v1479_v33  ;;  %v1661_v33 = vld [vmem:[%s4997_s11 + $0x10] sm:$0xff] }
 0x360   : > { %3592 = vmatprep.subr.bf16.mxu0 %v4129_v10 }
 0x362   : > { %v1477_v34 = vpop.permute.xlu1 %1476 }
 0x363   : > { %3429 = vmatmul.mubr.msk.f32.vlgmr.msra.gmra.mrb[8].mxu0 %vm981_vm2, %v1477_v34  ;;  %v1662_v34 = vld [vmem:[%s4997_s11 + $0x18] sm:$0xff] }
 0x364   : > { %3444 = vmatprep.mubr.msk.f32.mxu0 %vm4130_vm1, %v4131_v13  ;;  %3594 = vmatpush3.bf16.msra.mxu0 %v3593_v30 }
 0x365   : > { %3595 = vmatprep.subr.bf16.mxu0 %v4129_v10 }
 0x425   : > { %v1052_v35 = vpop.f32.mrb[2].mxu0 }
 0x426   : > { %v1056_v36 = vmul.f32 0.35355338, %v1052_v35  ;;  %v3400_v37 = vpop.f32.mrb[3].mxu0  ;;  %v3596_v35 = vpack.c.bf16 %v1662_v34, %v1661_v33  ;;  %v3253_v33 = vld [vmem:[#allocation7] ss:$0 sm:$0xff] }
 0x428   : > { %v1057_v38 = vsel %vm981_vm2, %v1056_v36, -inf  ;;  %3597 = vmatpush3.bf16.msra.mxu0 %v3596_v35 }
 0x429   : > { %1058 = vmax.xlane.f32.xlu1 %v1057_v38  ;;  %v1218_v39 = vpop.f32.mrb[4].mxu0  ;;  %3598 = vmatprep.subr.bf16.mxu0 %v4129_v10 }
 0x42a   : > { %v1222_v40 = vmul.f32 0.35355338, %v1218_v39  ;;  %v3410_v41 = vpop.f32.mrb[5].mxu0 }
 0x42c   : > { %v1223_v42 = vsel %vm981_vm2, %v1222_v40, -inf }
 0x42d   : > { %1224 = vmax.xlane.f32.xlu0 %v1223_v42 }
 0x42e   : > { %v1384_v43 = vpop.f32.mrb[6].mxu0 }
 0x42f   : > { %v1388_v44 = vmul.f32 0.35355338, %v1384_v43  ;;  %v3420_v45 = vpop.f32.mrb[7].mxu0 }
 0x431   : > { %v1389_v46 = vsel %vm981_vm2, %v1388_v44, -inf }
 0x432   : > { %1390 = vmax.xlane.f32.xlu1 %v1389_v46 }
 0x436   : > { %v1550_v47 = vpop.f32.mrb[8].mxu0 }
 0x437   : > { %v1554_v48 = vmul.f32 0.35355338, %v1550_v47  ;;  %v3430_v49 = vpop.f32.mrb[9].mxu0 }
 0x439   : > { %v1555_v50 = vsel %vm981_vm2, %v1554_v48, -inf }
 0x43a   : > { %1556 = vmax.xlane.f32.xlu0 %v1555_v50 }
 0x443   : > { %1068 = vrot.lane.b32.xlu1 %v4555_v26, %s4139_s2  ;;  %s3293_s2 = sshll.u32 %s858_s29, 4  ;;  %s3294_s29 = sshll.u32 %s4295_s6, 9 }
 0x4b6   : > { %v1059_v51 = vpop.xlane.xlu1 %1058 }
 0x4b7   : > { %v1060_v52 = vsub.f32 %v1056_v36, %v1059_v51 }
 0x4b9   : > { %v1061_v53 = vmul.f32 1.442695, %v1060_v52 }
 0x4ba   : > { %v1225_v54 = vpop.xlane.xlu0 %1224 }
 0x4bb   : > { %3824 = vpow2.f32 %v1061_v53  ;;  %v1226_v55 = vsub.f32 %v1222_v40, %v1225_v54 }
 0x4bd   : > { %v1227_v56 = vmul.f32 1.442695, %v1226_v55 }
 0x4bf   : > { %3826 = vpow2.f32 %v1227_v56  ;;  %v1391_v57 = vpop.xlane.xlu1 %1390 }
 0x4c0   : > { %v1392_v58 = vsub.f32 %v1388_v44, %v1391_v57  ;;  %v3249_v57 = vld [vmem:[%s4998_s12] ss:$0 sm:$0xff] }
 0x4c2   : > { %v1393_v59 = vmul.f32 1.442695, %v1392_v58 }
 0x4c3   : > { %v1069_v60 = vpop.permute.xlu1 %1068 }
 0x4c4   : > { %3828 = vpow2.f32 %v1393_v59  ;;  %3402 = vmatpush3.msra.mxu1 %v1069_v60 }
 0x4c5   : > { %v3825_v61 = vpop.eup %3824  ;;  %3411 = vmatprep.subr.mxu1 %v4131_v13 }
 0x4c6   : > { %v1063_v62 = vsel %vm981_vm2, %v3825_v61, 0.0 }
 0x4c7   : > { %1064 = vadd.xlane.f32.xlu1 %v1063_v62  ;;  %v1557_v63 = vpop.xlane.xlu0 %1556 }
 0x4c8   : > { %v1558_v1 = vsub.f32 %v1554_v48, %v1557_v63 }
 0x4c9   : > { %v3827_v2 = vpop.eup %3826 }
 0x4ca   : > { %v1559_v3 = vmul.f32 1.442695, %v1558_v1  ;;  %v1229_v4 = vsel %vm981_vm2, %v3827_v2, 0.0 }
 0x4cb   : > { %1230 = vadd.xlane.f32.xlu0 %v1229_v4 }
 0x4cc   : > { %3830 = vpow2.f32 %v1559_v3 }
 0x4ce   : > { %v3829_v5 = vpop.eup %3828 }
 0x4cf   : > { %v1395_v6 = vsel %vm981_vm2, %v3829_v5, 0.0 }
 0x4d0   : > { %1396 = vadd.xlane.f32.xlu1 %v1395_v6 }
 0x4d6   : > { %v3831_v7 = vpop.eup %3830 }
 0x4d7   : > { %v1561_v8 = vsel %vm981_vm2, %v3831_v7, 0.0 }
 0x4d8   : > { %1562 = vadd.xlane.f32.xlu0 %v1561_v8 }
 0x4e1   : > { %1400 = vrot.lane.b32.xlu1 %v4555_v26, %s4140_s3  ;;  %s4146_s3 = smov [#allocation12]  }
 0x4e5   : > { %1566 = vrot.lane.b32.xlu1 %v4555_v26, %s4141_s8  ;;  %s5082_s8 = sld [smem:[#allocation32_spill]] }
 0x4ee   : > { %1234 = vrot.lane.b32.xlu0 %v4555_v26, %s4142_s4  ;;  %s5081_s4 = sld [smem:[#allocation27_spill]] }
 0x4f4   : > { %s861_s30 = scalar_lea.vmem %s5081_s4, %s3293_s2  ;;  %s5092_s2 = sld [smem:[#allocation34_spill]] }
 0x4f5   : > { %v1773_v42 = vld [vmem:[%s861_s30] sm:$0xff]  ;;  %v1774_v53 = vld [vmem:[%s861_s30 + $0x8] sm:$0xff] }
 0x4f6   : > { %v1778_v43 = vsel %vm1777_vm3, %v1773_v42, 0.0  ;;  %v1781_v54 = vsel %vm1777_vm3, %v1774_v53, 0.0 }
 0x554   : > { %v1065_v9 = vpop.xlane.xlu1 %1064 }
 0x555   : > { %3832 = vrcp.f32 %v1065_v9 }
 0x558   : > { %v1231_v11 = vpop.xlane.xlu0 %1230 }
 0x559   : > { %3834 = vrcp.f32 %v1231_v11  ;;  %v1822_v11 = vld [vmem:[%s4999_s13 + $0x8] sm:$0xff] }
 0x55d   : > { %v1397_v12 = vpop.xlane.xlu1 %1396 }
 0x55e   : > { %3836 = vrcp.f32 %v1397_v12 }
 0x55f   : > { %v3833_v14 = vpop.eup %3832 }
 0x560   : > { %v1067_v15 = vmul.f32 %v3833_v14, %v3825_v61  ;;  %v1823_v14 = vld [vmem:[%s4999_s13 + $0x10] sm:$0xff] }
 0x561   : > { %v1401_v20 = vpop.permute.xlu1 %1400 }
 0x562   : > { %3404 = vmatmul.mubr.msk.f32.vlgmr.msra.gmra.mrb[0].mxu1 %vm981_vm2, %v1067_v15  ;;  %v1824_v15 = vld [vmem:[%s4999_s13 + $0x18] sm:$0xff] }
 0x563   : > { %3413 = vmatprep.mubr.msk.f32.mxu1 %vm4130_vm1, %v4131_v13  ;;  %v3835_v17 = vpop.eup %3834 }
 0x564   : > { %v1233_v18 = vmul.f32 %v3835_v17, %v3827_v2  ;;  %v1905_v17 = vld [vmem:[%s5001_s15] sm:$0xff] }
 0x565   : > { %v1563_v16 = vpop.xlane.xlu0 %1562  ;;  %v1567_v25 = vpop.permute.xlu1 %1566 }
 0x566   : > { %3838 = vrcp.f32 %v1563_v16  ;;  %v3602_v16 = vpack.c.bf16 %v1824_v15, %v1823_v14 }
 0x568   : > { %v3837_v23 = vpop.eup %3836 }
 0x569   : > { %v1235_v22 = vpop.permute.xlu0 %1234  ;;  %v1399_v24 = vmul.f32 %v3837_v23, %v3829_v5 }
 0x56a   : > { %3412 = vmatpush3.msra.mxu1 %v1235_v22 }
 0x56b   : > { %3414 = vmatmul.mubr.msk.f32.vlgmr.msra.gmra.mrb[2].mxu1 %vm981_vm2, %v1233_v18  ;;  %3421 = vmatprep.subr.mxu1 %v4131_v13  ;;  %v1906_v18 = vld [vmem:[%s5001_s15 + $0x8] sm:$0xff] }
 0x56c   : > { %3422 = vmatpush3.msra.mxu1 %v1401_v20  ;;  %3423 = vmatprep.mubr.msk.f32.mxu1 %vm4130_vm1, %v4131_v13  ;;  %v3604_v20 = vpack.c.bf16 %v1906_v18, %v1905_v17 }
 0x56d   : > { %3431 = vmatprep.subr.mxu1 %v4131_v13 }
 0x56f   : > { %3424 = vmatmul.mubr.msk.f32.vlgmr.msra.gmra.mrb[4].mxu1 %vm981_vm2, %v1399_v24 }
 0x570   : > { %v3839_v26 = vpop.eup %3838  ;;  %3432 = vmatpush3.msra.mxu1 %v1567_v25  ;;  %3433 = vmatprep.mubr.msk.f32.mxu1 %vm4130_vm1, %v4131_v13 }
 0x571   : > { %v1565_v27 = vmul.f32 %v3839_v26, %v3831_v7  ;;  %3616 = vmatprep.subr.bf16.mxu1 %v4129_v10 }
 0x573   : > { %3434 = vmatmul.mubr.msk.f32.vlgmr.msra.gmra.mrb[6].mxu1 %vm981_vm2, %v1565_v27 }
 0x574   : > { %3477 = vmatprep.mubr.msk.f32.mxu1 %vm4130_vm1, %v4131_v13 }
 0x635   : > { %v1140_v31 = vpop.f32.mrb[0].mxu1 }
 0x636   : > { %v3405_v32 = vpop.f32.mrb[1].mxu1 }
 0x63e   : > { %v1306_v36 = vpop.f32.mrb[2].mxu1 }
 0x63f   : > { %1643 = vrot.lane.b32.xlu0 %v1306_v36, %s5031_s24  ;;  %v3415_v37 = vpop.f32.mrb[3].mxu1  ;;  %s5091_s24 = sld [smem:[#allocation33_spill]] }
 0x640   : > { %v1907_v37 = vld [vmem:[%s5001_s15 + $0x10] sm:$0xff] }
 0x642   : > { %v1472_v38 = vpop.f32.mrb[4].mxu1 }
 0x643   : > { %1647 = vrot.lane.b32.xlu1 %v1472_v38, %s5033_s7  ;;  %v3425_v39 = vpop.f32.mrb[5].mxu1  ;;  %v1908_v38 = vld [vmem:[%s5001_s15 + $0x18] sm:$0xff]  ;;  %s5094_s7 = sld [smem:[#allocation25_spill]] }
 0x646   : > { %v1638_v40 = vpop.f32.mrb[6].mxu1 }
 0x647   : > { %1651 = vrot.lane.b32.xlu0 %v1638_v40, %s5030_s0  ;;  %v3435_v41 = vpop.f32.mrb[7].mxu1  ;;  %v3254_v40 = vld [vmem:[%s5082_s8] ss:$0 sm:$0xff]  ;;  %s5089_s8 = sld [smem:[#allocation37_spill]]  ;;  %s5090_s0 = sld [smem:[#allocation40_spill]] }
 0x649   : > { %p5096_p10 = scmp.ne.s32.totalorder %s5094_s7, 0 }
 0x666   : > { %1779 = vadd.xlane.f32.xlu0 %v1778_v43 }
 0x66a   : > { %1782 = vadd.xlane.f32.xlu0 %v1781_v54 }
 0x6b1   : > { %v1644_v44 = vpop.permute.xlu0 %1643 }
 0x6b2   : > { %v1654_v46 = vsel %vm981_vm2, %v1140_v31, %v1644_v44 }
 0x6b5   : > { %v1648_v45 = vpop.permute.xlu1 %1647 }
 0x6b6   : > { %v1656_v47 = vsel %vm1655_vm4, %v1654_v46, %v1648_v45  ;;  %v1909_v45 = vld [vmem:[%s5001_s15 + $0x20] sm:$0xff]  ;;  %v1910_v46 = vld [vmem:[%s5001_s15 + $0x28] sm:$0xff] }
 0x6b9   : > { %v1652_v48 = vpop.permute.xlu0 %1651 }
 0x6ba   : > { %v1658_v49 = vsel %vm1657_vm5, %v1656_v47, %v1652_v48  ;;  %v3612_v47 = vpack.c.bf16 %v1910_v46, %v1909_v45 }
 0x6bb   : > { %3445 = vmatmul.mubr.msk.f32.vlgmr.msra.gmra.mrb[10].mxu0 %vm865_vm0, %v1658_v49  ;;  %v3255_v49 = vld [vmem:[%s5000_s14] ss:$0 sm:$0xff] }
 0x6bc   : > { %3455 = vmatprep.mubr.msk.f32.mxu0 %vm4130_vm1, %v4131_v13 }
 0x6f3   : > { %v1780_v50 = vpop.xlane.xlu0 %1779 }
 0x6f4   : > { %v1785_v51 = vmul.f32 0.020833334, %v1780_v50 }
 0x6f6   : > { %v1787_v52 = vsub.f32 %v1773_v42, %v1785_v51  ;;  %v3608_v42 = vpack.c.bf16 %v1908_v38, %v1907_v37 }
 0x6f7   : > { %v1783_v63 = vpop.xlane.xlu0 %1782 }
 0x6f8   : > { %v1789_v55 = vmul.f32 %v1787_v52, %v1787_v52  ;;  %v1786_v1 = vmul.f32 0.020833334, %v1783_v63 }
 0x6fa   : > { %v1791_v56 = vsel %vm1777_vm3, %v1789_v55, 0.0  ;;  %v1788_v3 = vsub.f32 %v1774_v53, %v1786_v1  ;;  %v3257_v53 = vld [vmem:[%s5002_s16] ss:$0 sm:$0xff] }
 0x6fb   : > { %1792 = vadd.xlane.f32.xlu0 %v1791_v56 }
 0x6fc   : > { %v1790_v7 = vmul.f32 %v1788_v3, %v1788_v3 }
 0x6fe   : > { %v1794_v9 = vsel %vm1777_vm3, %v1790_v7, 0.0 }
 0x788   : > { %v1793_v22 = vpop.xlane.xlu0 %1792 }
 0x789   : > { %v1797_v23 = vmul.f32 0.020833334, %v1793_v22 }
 0x78b   : > { %v1799_v24 = vadd.f32 1e-05, %v1797_v23 }
 0x78d   : > { %3840 = vrsqrt.f32 %v1799_v24 }
 0x78e   : > { %v1739_v58 = vpop.f32.mrb[10].mxu0 }
 0x78f   : > { %v1740_v59 = vadd.f32 %v3249_v57, %v1739_v58  ;;  %v3446_v60 = vpop.f32.mrb[11].mxu0 }
 0x791   : > { %v4655_v61 = vadd.f32 %v1740_v59, %v4511_v0  ;;  %v1821_v0 = vld [vmem:[%s4999_s13] sm:$0xff] }
 0x792   : > { %v3599_v12 = vpack.c.bf16 %v1822_v11, %v1821_v0 }
 0x793   : > { %v1746_v62 = vsel %vm865_vm0, %v4655_v61, 0.0 }
 0x794   : > { %1747 = vadd.xlane.f32.xlu1 %v1746_v62  ;;  %3600 = vmatpush3.bf16.msra.mxu0 %v3599_v12 }
 0x795   : > { %3601 = vmatprep.subr.bf16.mxu0 %v4129_v10 }
 0x797   : > { %v3841_v31 = vpop.eup %3840 }
 0x798   : > { %3603 = vmatpush3.bf16.msra.mxu0 %v3602_v16  ;;  %v1803_v32 = vmul.f32 %v3841_v31, %v1787_v52 }
 0x799   : > { %3605 = vmatprep.subr.bf16.mxu0 %v3604_v20 }
 0x79a   : > { %v1811_v36 = vmul.f32 %v3253_v33, %v1803_v32 }
 0x79c   : > { %v1819_v44 = vadd.f32 %v3254_v40, %v1811_v36 }
 0x821   : > { %v1748_v2 = vpop.xlane.xlu1 %1747 }
 0x822   : > { %v1749_v4 = vmul.f32 0.03125, %v1748_v2 }
 0x824   : > { %v1750_v5 = vsub.f32 %v4655_v61, %v1749_v4 }
 0x826   : > { %v1751_v6 = vmul.f32 %v1750_v5, %v1750_v5 }
 0x828   : > { %v1752_v8 = vsel %vm865_vm0, %v1751_v6, 0.0 }
 0x829   : > { %1753 = vadd.xlane.f32.xlu1 %v1752_v8 }
 0x82d   : > { %1795 = vadd.xlane.f32.xlu1 %v1794_v9 }
 0x8b6   : > { %v1754_v25 = vpop.xlane.xlu1 %1753 }
 0x8b7   : > { %v1755_v26 = vmul.f32 0.03125, %v1754_v25 }
 0x8b9   : > { %v1756_v27 = vadd.f32 1e-05, %v1755_v26 }
 0x8ba   : > { %v1796_v28 = vpop.xlane.xlu1 %1795 }
 0x8bb   : > { %3842 = vrsqrt.f32 %v1756_v27  ;;  %v1798_v29 = vmul.f32 0.020833334, %v1796_v28 }
 0x8bd   : > { %v1800_v30 = vadd.f32 1e-05, %v1798_v29 }
 0x8bf   : > { %3844 = vrsqrt.f32 %v1800_v30 }
 0x8c5   : > { %v3843_v34 = vpop.eup %3842 }
 0x8c6   : > { %v1758_v35 = vmul.f32 %v3843_v34, %v1750_v5  ;;  %v4739_v5 = vld [vmem:[%s765_s21] sm:$0xff]  ;;  %s3230_s21 = sshll.u32 %s4486_s19, 5 }
 0x8c8   : > { %v1765_v39 = vmul.f32 %v4540_v19, %v1758_v35 }
 0x8c9   : > { %v3845_v43 = vpop.eup %3844 }
 0x8ca   : > { %v1772_v41 = vadd.f32 %v4545_v21, %v1765_v39  ;;  %v1804_v19 = vmul.f32 %v3845_v43, %v1788_v3 }
 0x8cc   : > { %3456 = vmatmul.mubr.msk.f32.vlgmr.msra.gmra.mrb[12].mxu0 %vm865_vm0, %v1772_v41  ;;  %v1812_v21 = vmul.f32 %v3253_v33, %v1804_v19 }
 0x8cd   : > { %3607 = vmatpush3.bf16.msra.mxu0 %v3604_v20  ;;  %3470 = vmatprep.mubr.msk.f32.mxu0 %vm1777_vm3, %v1819_v44 }
 0x8ce   : > { %3609 = vmatprep.subr.bf16.mxu0 %v3608_v42  ;;  %v1820_v48 = vadd.f32 %v3254_v40, %v1812_v21 }
 0x8d1   : > { %3611 = vmatpush3.bf16.msra.mxu0 %v3608_v42 }
 0x8d2   : > { %3613 = vmatprep.subr.bf16.mxu0 %v3612_v47 }
 0x8d5   : > { %3615 = vmatpush3.bf16.msra.mxu0 %v3612_v47 }
 0x8d6   : > { %3623 = vmatprep.subr.bf16.mxu0 %v4129_v10 }
 0x8d8   : > { %3471 = vmatmul.mubr.msk.f32.vlgmr.msra.gmra.mrb[14].mxu0 %vm1777_vm3, %v1820_v48 }
 0x8d9   : > { %3491 = vmatprep.mubr.msk.f32.mxu0 %vm4130_vm1, %v4131_v13 }
 0x99f   : > { %v1901_v50 = vpop.f32.mrb[12].mxu0 }
 0x9a0   : > { %v4707_v51 = vadd.f32 %v3255_v49, %v1901_v50  ;;  %v3457_v52 = vpop.f32.mrb[13].mxu0 }
 0x9a2   : > { %2172 = vrot.lane.b32.xlu1 %v4707_v51, %s4132_s23 }
 0x9ab   : > { %v3472_v54 = vpop.f32.mrb[14].mxu0 }
 0x9ac   : > { %v1996_v55 = vadd.f32 %v3472_v54, %v3257_v53  ;;  %v1990_v56 = vpop.f32.mrb[15].mxu0 }
 0x9ad   : > { %v1991_v57 = vadd.f32 %v3257_v53, %v1990_v56 }
 0x9af   : > { %v4720_v59 = vpack.i.bf16 %v1996_v55, %v1991_v57  ;;  %v3617_v60 = vpack.c.bf16 %v1996_v55, %v1991_v57 }
 0x9b1   : > { %3788 = vrot.lane.b32.xlu0 %v4720_v59, %s4132_s23  ;;  %3619 = vmatpush3.bf16.xpose.msk.msra.mxu1 %vm4716_vm6, %v3617_v60  ;;  %s4757_s23 = scalar_lea.vmem [#allocation12], %s3230_s21 }
 0x9b2   : > { %3620 = vmatprep.subr.bf16.mxu1 %v4129_v10 }
 0x9b8   : > { %3478 = vmatmul.mubr.msk.f32.vlgmr.msra.gmra.mrb[8].mxu1 %vm981_vm2, %v4707_v51 }
 0x9b9   : > { %3484 = vmatprep.mubr.msk.f32.mxu1 %vm4130_vm1, %v4131_v13 }
 0xa14   : > { %v2173_v3 = vpop.permute.xlu1 %2172 }
 0xa23   : > { %v3789_v62 = vpop.permute.xlu0 %3788 }
 0xa24   : > { %v3791_v63 = vunpack.i.h.bf16 %v3789_v62  ;;  %v3790_v1 = vunpack.i.l.bf16 %v3789_v62 }
 0xa26   : > { %v3624_v2 = vpack.c.bf16 %v3791_v63, %v3790_v1 }
 0xa28   : > { %3626 = vmatpush3.bf16.xpose.msk.msra.mxu0 %vm4716_vm6, %v3624_v2 }
 0xa29   : > { %3634 = vmatprep.subr.bf16.mxu0 %v4129_v10 }
 0xa2f   : > { %3492 = vmatmul.mubr.msk.f32.vlgmr.msra.gmra.mrb[16].mxu0 %vm981_vm2, %v2173_v3 }
 0xa30   : > { %3512 = vmatprep.mubr.msk.f32.mxu0 %vm4130_vm1, %v4131_v13 }
 0xa8b   : > { %v2075_v4 = vpop.f32.mrb[8].mxu1 }
 0xa8c   : > { %v2079_v6 = vmul.f32 0.35355338, %v2075_v4  ;;  %v3479_v7 = vpop.f32.mrb[9].mxu1 }
 0xa8e   : > { %v2080_v8 = vadd.f32 %v2079_v6, %v4739_v5 }
 0xa90   : > { %v2081_v9 = vsel %vm1655_vm4, %v2080_v8, -inf }
 0xa91   : > { %2082 = vmax.xlane.f32.xlu1 %v2081_v9 }
 0xaa2   : > { %3798 = vrot.lane.b32.xlu1 %v4720_v59, %s4134_s1  ;;  %s5086_s1 = smov 16  }
 0xb02   : > { %v2250_v0 = vpop.f32.mrb[16].mxu0 }
 0xb03   : > { %v2254_v11 = vmul.f32 0.35355338, %v2250_v0  ;;  %v3493_v12 = vpop.f32.mrb[17].mxu0 }
 0xb05   : > { %v2255_v14 = vadd.f32 %v2254_v11, %v4739_v5 }
 0xb07   : > { %v2256_v15 = vsel %vm1655_vm4, %v2255_v14, -inf }
 0xb08   : > { %2257 = vmax.xlane.f32.xlu0 %v2256_v15 }
 0xb1e   : > { %v2083_v16 = vpop.xlane.xlu1 %2082 }
 0xb1f   : > { %v2084_v17 = vsub.f32 %v2080_v8, %v2083_v16 }
 0xb21   : > { %v2085_v18 = vmul.f32 1.442695, %v2084_v17 }
 0xb22   : > { %v3799_v32 = vpop.permute.xlu1 %3798 }
 0xb23   : > { %3846 = vpow2.f32 %v2085_v18  ;;  %v3801_v34 = vunpack.i.h.bf16 %v3799_v32  ;;  %v3800_v35 = vunpack.i.l.bf16 %v3799_v32  ;;  %v2716_v32 = vld [vmem:[#allocation8 + $0x8] sm:$0xff] }
 0xb25   : > { %v3628_v38 = vpack.c.bf16 %v3801_v34, %v3800_v35  ;;  %v2718_v35 = vld [vmem:[#allocation8 + $0x18] sm:$0xff] }
 0xb2d   : > { %v3847_v20 = vpop.eup %3846 }
 0xb2e   : > { %v2087_v22 = vsel %vm1655_vm4, %v3847_v20, 0.0 }
 0xb2f   : > { %2088 = vadd.xlane.f32.xlu0 %v2087_v22 }
 0xb45   : > { %3793 = vrot.lane.b32.xlu0 %v4720_v59, %s4133_s25  ;;  %s5085_s25 = smov 72  }
 0xb49   : > { %2348 = vrot.lane.b32.xlu0 %v4707_v51, %s4136_s5 }
 0xb95   : > { %v2258_v23 = vpop.xlane.xlu0 %2257 }
 0xb96   : > { %v2259_v24 = vsub.f32 %v2255_v14, %v2258_v23 }
 0xb98   : > { %v2260_v25 = vmul.f32 1.442695, %v2259_v24 }
 0xb9a   : > { %3848 = vpow2.f32 %v2260_v25 }
 0xba4   : > { %v3849_v26 = vpop.eup %3848 }
 0xba5   : > { %v2262_v27 = vsel %vm1655_vm4, %v3849_v26, 0.0 }
 0xba6   : > { %2263 = vadd.xlane.f32.xlu1 %v2262_v27 }
 0xbb7   : > { %3803 = vrot.lane.b32.xlu1 %v4720_v59, %s4136_s5  ;;  %s5088_s5 = smov 24  }
 0xbbc   : > { %v2089_v28 = vpop.xlane.xlu0 %2088 }
 0xbbd   : > { %3850 = vrcp.f32 %v2089_v28 }
 0xbc0   : > { %v3794_v29 = vpop.permute.xlu0 %3793 }
 0xbc1   : > { %v3796_v30 = vunpack.i.h.bf16 %v3794_v29  ;;  %v3795_v31 = vunpack.i.l.bf16 %v3794_v29 }
 0xbc3   : > { %v3621_v33 = vpack.c.bf16 %v3796_v30, %v3795_v31  ;;  %v2715_v31 = vld [vmem:[#allocation8] sm:$0xff] }
 0xbc4   : > { %v2349_v46 = vpop.permute.xlu0 %2348  ;;  %v3645_v34 = vpack.c.bf16 %v2716_v32, %v2715_v31 }
 0xbc5   : > { %3622 = vmatpush3.bf16.msra.mxu1 %v3621_v33  ;;  %v2717_v33 = vld [vmem:[#allocation8 + $0x10] sm:$0xff] }
 0xbc6   : > { %3627 = vmatprep.subr.bf16.mxu1 %v4129_v10 }
 0xbc7   : > { %v3851_v36 = vpop.eup %3850 }
 0xbc8   : > { %v2091_v37 = vmul.f32 %v3851_v36, %v3847_v20  ;;  %v3648_v36 = vpack.c.bf16 %v2718_v35, %v2717_v33 }
 0xbca   : > { %2092 = vst.msk [vmem:[%s4757_s23] sm:$0xff] %vm1655_vm4, %v2091_v37  ;;  %3485 = vmatmul.mubr.msk.f32.vlgmr.msra.gmra.mrb[10].mxu1 %vm1655_vm4, %v2091_v37 }
 0xbcb   : > { %3629 = vmatpush3.bf16.msra.mxu1 %v3628_v38  ;;  %3498 = vmatprep.mubr.msk.f32.mxu1 %vm4130_vm1, %v4131_v13 }
 0xbcc   : > { %3630 = vmatprep.subr.bf16.mxu1 %v4129_v10 }
 0xc33   : > { %v2264_v39 = vpop.xlane.xlu1 %2263 }
 0xc34   : > { %3852 = vrcp.f32 %v2264_v39 }
 0xc37   : > { %v3804_v40 = vpop.permute.xlu1 %3803 }
 0xc38   : > { %v3806_v41 = vunpack.i.h.bf16 %v3804_v40  ;;  %v3805_v42 = vunpack.i.l.bf16 %v3804_v40 }
 0xc3a   : > { %v3631_v45 = vpack.c.bf16 %v3806_v41, %v3805_v42 }
 0xc3e   : > { %v3853_v43 = vpop.eup %3852 }
 0xc3f   : > { %v2266_v44 = vmul.f32 %v3853_v43, %v3849_v26 }
 0xc41   : > { %3267 = vst.msk [vmem:[%s4757_s23 + $0x8] sm:$0xff] %vm1655_vm4, %v2266_v44  ;;  %3499 = vmatmul.mubr.msk.f32.vlgmr.msra.gmra.mrb[12].mxu1 %vm1655_vm4, %v2266_v44 }
 0xc42   : > { %3633 = vmatpush3.bf16.xpose.msk.msra.mxu1 %vm4716_vm6, %v3631_v45  ;;  %3505 = vmatprep.mubr.msk.f32.mxu1 %vm4130_vm1, %v4131_v13  ;;  %v3279_v45 = vld [vmem:[%s5089_s8] ss:$0 sm:$0xff]  ;;  %s4014_s8 = sshll.u32 %s4146_s3, 4  ;;  %s4015_s8 = int_to_ptr.vmem [resolvable:$false] %s4014_s8 }
 0xc43   : > { %3641 = vmatprep.subr.bf16.mxu1 %v4129_v10 }
 0xc49   : > { %3506 = vmatmul.mubr.msk.f32.vlgmr.msra.gmra.mrb[14].mxu1 %vm981_vm2, %v2349_v46 }
 0xc4a   : > { %3526 = vmatprep.mubr.msk.f32.mxu1 %vm4130_vm1, %v4131_v13 }
 0xc9d   : > { %v4776_v19 = vpop.f32.mrb[10].mxu1 }
 0xc9e   : > { %v3486_v47 = vpop.f32.mrb[11].mxu1 }
 0xd14   : > { %v2344_v21 = vpop.f32.mrb[12].mxu1 }
 0xd15   : > { %v3500_v48 = vpop.f32.mrb[13].mxu1 }
 0xd1c   : > { %v2426_v49 = vpop.f32.mrb[14].mxu1 }
 0xd1d   : > { %v2430_v50 = vmul.f32 0.35355338, %v2426_v49  ;;  %v3507_v52 = vpop.f32.mrb[15].mxu1 }
 0xd1f   : > { %v2431_v53 = vadd.f32 %v2430_v50, %v4739_v5 }
 0xd21   : > { %v2432_v54 = vsel %vm1655_vm4, %v2431_v53, -inf }
 0xd22   : > { %2433 = vmax.xlane.f32.xlu1 %v2432_v54  ;;  %v2829_v54 = vld [vmem:[#allocation10] sm:$0xff] }
 0xd33   : > { %3813 = vrot.lane.b32.xlu1 %v4720_v59, %s4138_s17 }
 0xd37   : > { %2524 = vrot.lane.b32.xlu1 %v4707_v51, %s4138_s17 }
 0xdaf   : > { %v2434_v55 = vpop.xlane.xlu1 %2433 }
 0xdb0   : > { %v2435_v56 = vsub.f32 %v2431_v53, %v2434_v55  ;;  %v2830_v55 = vld [vmem:[#allocation10 + $0x8] sm:$0xff] }
 0xdb2   : > { %v2436_v57 = vmul.f32 1.442695, %v2435_v56  ;;  %v3651_v56 = vpack.c.bf16 %v2830_v55, %v2829_v54 }
 0xdb3   : > { %v3814_v6 = vpop.permute.xlu1 %3813 }
 0xdb4   : > { %3854 = vpow2.f32 %v2436_v57  ;;  %v3816_v7 = vunpack.i.h.bf16 %v3814_v6  ;;  %v3815_v8 = vunpack.i.l.bf16 %v3814_v6  ;;  %v2832_v57 = vld [vmem:[#allocation10 + $0x18] sm:$0xff] }
 0xdb5   : > { %v2922_v6 = vld [vmem:[%s5090_s0 + $0x20] sm:$0xff] }
 0xdb6   : > { %v3638_v0 = vpack.c.bf16 %v3816_v7, %v3815_v8 }
 0xdb7   : > { %v2525_v11 = vpop.permute.xlu1 %2524 }
 0xdbe   : > { %v3855_v60 = vpop.eup %3854 }
 0xdbf   : > { %v2438_v62 = vsel %vm1655_vm4, %v3855_v60, 0.0 }
 0xdc0   : > { %2439 = vadd.xlane.f32.xlu0 %v2438_v62  ;;  %v2918_v62 = vld [vmem:[%s5090_s0] sm:$0xff] }
 0xdd6   : > { %3808 = vrot.lane.b32.xlu0 %v4720_v59, %s4135_s20  ;;  %s5087_s20 = smov 8  }
 0xe4d   : > { %v2440_v63 = vpop.xlane.xlu0 %2439 }
 0xe4e   : > { %3856 = vrcp.f32 %v2440_v63  ;;  %v2919_v63 = vld [vmem:[%s5090_s0 + $0x8] sm:$0xff] }
 0xe51   : > { %v3809_v1 = vpop.permute.xlu0 %3808 }
 0xe52   : > { %v3811_v2 = vunpack.i.h.bf16 %v3809_v1  ;;  %v3810_v3 = vunpack.i.l.bf16 %v3809_v1  ;;  %v2920_v1 = vld [vmem:[%s5090_s0 + $0x10] sm:$0xff] }
 0xe54   : > { %v3635_v4 = vpack.c.bf16 %v3811_v2, %v3810_v3  ;;  %v3657_v2 = vpack.c.bf16 %v2919_v63, %v2918_v62  ;;  %v2921_v3 = vld [vmem:[%s5090_s0 + $0x18] sm:$0xff] }
 0xe56   : > { %3636 = vmatpush3.bf16.msra.mxu0 %v3635_v4  ;;  %v3660_v4 = vpack.c.bf16 %v2921_v3, %v2920_v1 }
 0xe57   : > { %3637 = vmatprep.subr.bf16.mxu0 %v4129_v10 }
 0xe58   : > { %v3857_v51 = vpop.eup %3856 }
 0xe59   : > { %v2442_v9 = vmul.f32 %v3857_v51, %v3855_v60  ;;  %v2923_v51 = vld [vmem:[%s5090_s0 + $0x28] sm:$0xff] }
 0xe5a   : > { %v3663_v7 = vpack.c.bf16 %v2923_v51, %v2922_v6 }
 0xe5b   : > { %3272 = vst.msk [vmem:[%s4757_s23 + $0x10] sm:$0xff] %vm1655_vm4, %v2442_v9  ;;  %3513 = vmatmul.mubr.msk.f32.vlgmr.msra.gmra.mrb[18].mxu0 %vm1655_vm4, %v2442_v9 }
 0xe5c   : > { %3519 = vmatprep.mubr.msk.f32.mxu0 %vm4130_vm1, %v4131_v13 }
 0xe5f   : > { %3640 = vmatpush3.bf16.xpose.msk.msra.mxu0 %vm4716_vm6, %v3638_v0 }
 0xe60   : > { %3650 = vmatprep.subr.bf16.mxu0 %v4129_v10 }
 0xe66   : > { %3520 = vmatmul.mubr.msk.f32.vlgmr.msra.gmra.mrb[20].mxu0 %vm981_vm2, %v2525_v11 }
 0xe67   : > { %3548 = vmatprep.mubr.msk.f32.mxu0 %vm4130_vm1, %v4131_v13  ;;  %3652 = vmatpush3.bf16.msra.mxu0 %v3651_v56 }
 0xe68   : > { %3653 = vmatprep.subr.bf16.mxu0 %v4129_v10 }
 0xf2e   : > { %v2520_v12 = vpop.f32.mrb[18].mxu0 }
 0xf2f   : > { %v3514_v14 = vpop.f32.mrb[19].mxu0 }
 0xf39   : > { %v2602_v15 = vpop.f32.mrb[20].mxu0 }
 0xf3a   : > { %v2606_v16 = vmul.f32 0.35355338, %v2602_v15  ;;  %v3521_v17 = vpop.f32.mrb[21].mxu0  ;;  %v3282_v15 = vld [vmem:[%s5092_s2] ss:$0 sm:$0xff]  ;;  %s3045_s2 = sshll.u32 %s4757_s23, 4  ;;  %s4905_s2 = int_to_ptr.vmem [resolvable:$true] %s3045_s2 }
 0xf3b   : > { %s4010_s17 = scalar_lea.vmem %s4905_s2, 512  ;;  %p4017_p9 = scmp.lt.s32.totalorder %s4905_s2, %s4015_s8 }
 0xf3c   : > { %v2607_v18 = vadd.f32 %v2606_v16, %v4739_v5  ;;  %p4011_p7 = scmp.ne.s32.totalorder %s4905_s2, %s4010_s17 }
 0xf3e   : > { %v2608_v20 = vsel %vm1655_vm4, %v2607_v18, -inf  ;;  %p4012_p13 = pnand %p4011_p7, %p5096_p10 }
 0xf3f   : > { %2609 = vmax.xlane.f32.xlu0 %v2608_v20  ;;  %v2925_v20 = vld [vmem:[%s5090_s0 + $0x38] sm:$0xff] }
 0xf40   : > { %p4013_p5 = pneg %p4012_p13 }
 0xf55   : > { %3818 = vrot.lane.b32.xlu0 %v4720_v59, %s5085_s25  ;;  %s5095_s25 = sld [smem:[#allocation43_spill]] }
 0xf59   : > { %2705 = vrot.lane.b32.xlu0 %v2520_v12, %s5086_s1  ;;  %v3281_v12 = vld [vmem:[%s5091_s24] ss:$0 sm:$0xff]  ;;  %s5093_s24 = sld [smem:[#allocation39_spill]] }
 0xf5b   : > { %s4903_s1 = scalar_lea.hbm %s5095_s25, %s3294_s29 }
 0xf5f   : > { %v3283_v32 = vld [vmem:[%s5093_s24] ss:$0 sm:$0xff] }
 0xfcc   : > { %v2610_v58 = vpop.xlane.xlu0 %2609 }
 0xfcd   : > { %v2611_v22 = vsub.f32 %v2607_v18, %v2610_v58  ;;  %v2924_v18 = vld [vmem:[%s5090_s0 + $0x30] sm:$0xff] }
 0xfce   : > { %v3666_v58 = vpack.c.bf16 %v2925_v20, %v2924_v18 }
 0xfcf   : > { %v2612_v23 = vmul.f32 1.442695, %v2611_v22  ;;  %v2926_v22 = vld [vmem:[%s5090_s0 + $0x40] sm:$0xff] }
 0xfd0   : > { %v3819_v24 = vpop.permute.xlu0 %3818 }
 0xfd1   : > { %3858 = vpow2.f32 %v2612_v23  ;;  %v3821_v25 = vunpack.i.h.bf16 %v3819_v24  ;;  %v3820_v26 = vunpack.i.l.bf16 %v3819_v24  ;;  %v2927_v23 = vld [vmem:[%s5090_s0 + $0x48] sm:$0xff] }
 0xfd2   : > { %v3669_v24 = vpack.c.bf16 %v2927_v23, %v2926_v22 }
 0xfd3   : > { %v3642_v27 = vpack.c.bf16 %v3821_v25, %v3820_v26  ;;  %v2928_v25 = vld [vmem:[%s5090_s0 + $0x50] sm:$0xff]  ;;  %v2929_v26 = vld [vmem:[%s5090_s0 + $0x58] sm:$0xff] }
 0xfd4   : > { %v2706_v41 = vpop.permute.xlu0 %2705 }
 0xfd5   : > { %3643 = vmatpush3.bf16.msra.mxu1 %v3642_v27  ;;  %v3672_v27 = vpack.c.bf16 %v2929_v26, %v2928_v25 }
 0xfd6   : > { %3644 = vmatprep.subr.bf16.mxu1 %v4129_v10 }
 0xfdb   : > { %v3859_v5 = vpop.eup %3858 }
 0xfdc   : > { %v2614_v28 = vsel %vm1655_vm4, %v3859_v5, 0.0 }
 0xfdd   : > { %2615 = vadd.xlane.f32.xlu1 %v2614_v28  ;;  %v2931_v28 = vld [vmem:[%s5090_s0 + $0x68] sm:$0xff] }
 0xfee   : > { %2701 = vrot.lane.b32.xlu1 %v2344_v21, %s5087_s20 }
0x106a   : > { %v2616_v59 = vpop.xlane.xlu1 %2615 }
0x106b   : > { %3860 = vrcp.f32 %v2616_v59 }
0x106e   : > { %v2702_v39 = vpop.permute.xlu1 %2701 }
0x106f   : > { %v2712_v40 = vsel %vm981_vm2, %v4776_v19, %v2702_v39 }
0x1070   : > { %v2713_v42 = vsel %vm1655_vm4, %v2712_v40, %v2706_v41 }
0x1075   : > { %v3861_v29 = vpop.eup %3860 }
0x1076   : > { %v2618_v30 = vmul.f32 %v3861_v29, %v3859_v5  ;;  %v2930_v5 = vld [vmem:[%s5090_s0 + $0x60] sm:$0xff]  ;;  %v2932_v29 = vld [vmem:[%s5090_s0 + $0x70] sm:$0xff] }
0x1077   : > { %v3675_v59 = vpack.c.bf16 %v2931_v28, %v2930_v5 }
0x1078   : > { %3277 = vst.msk [vmem:[%s4757_s23 + $0x18] sm:$0xff] %vm1655_vm4, %v2618_v30  ;;  %3527 = vmatmul.mubr.msk.f32.vlgmr.msra.gmra.mrb[16].mxu1 %vm1655_vm4, %v2618_v30  ;;  %v2933_v30 = vld [vmem:[%s5090_s0 + $0x78] sm:$0xff]  ;;  %s4016_s23 = scalar_lea.vmem %s4015_s8, 1024 }
0x1079   : > { %3537 = vmatprep.mubr.msk.f32.mxu1 %vm4130_vm1, %v4131_v13  ;;  %3646 = vmatpush3.bf16.msra.mxu1 %v3645_v34  ;;  %v3678_v31 = vpack.c.bf16 %v2933_v30, %v2932_v29  ;;  %p4018_p1 = scmp.lt.s32.totalorder %s4016_s23, %s4010_s17 }
0x107a   : > { %3647 = vmatprep.subr.bf16.mxu1 %v4129_v10 }
0x107b   : > { %p4019_p2 = por %p4018_p1, %p4017_p9 }
0x107d   : > { %3649 = vmatpush3.bf16.msra.mxu1 %v3648_v36  ;;  %p4020_p12 = pnand %p4019_p2, %p4013_p5 }
0x107e   : > { %3656 = vmatprep.subr.bf16.mxu1 %v4129_v10 }
0x114b   : > { %v2696_v37 = vpop.f32.mrb[16].mxu1 }
0x114c   : > { %2709 = vrot.lane.b32.xlu1 %v2696_v37, %s5088_s5  ;;  %v3528_v38 = vpop.f32.mrb[17].mxu1  ;;  %s3019_s5 = scalar_lea.sflag [#allocation13], %s4486_s19 }
0x11be   : > { %v2710_v43 = vpop.permute.xlu1 %2709 }
0x11bf   : > { %v2714_v44 = vsel %vm1657_vm5, %v2713_v42, %v2710_v43 }
0x11c0   : > { %3538 = vmatmul.mubr.msk.f32.vlgmr.msra.gmra.mrb[18].mxu1 %vm865_vm0, %v2714_v44 }
0x11c1   : > { %3583 = vmatprep.mubr.msk.f32.mxu1 %vm4130_vm1, %v4131_v13  ;;  %3658 = vmatpush3.bf16.msra.mxu1 %v3657_v2 }
0x11c2   : > { %3659 = vmatprep.subr.bf16.mxu1 %v4129_v10 }
0x11c5   : > { %3661 = vmatpush3.bf16.msra.mxu1 %v3660_v4 }
0x11c6   : > { %3662 = vmatprep.subr.bf16.mxu1 %v4129_v10 }
0x11c9   : > { %3664 = vmatpush3.bf16.msra.mxu1 %v3663_v7 }
0x11ca   : > { %3665 = vmatprep.subr.bf16.mxu1 %v4129_v10 }
0x11cd   : > { %3667 = vmatpush3.bf16.msra.mxu1 %v3666_v58 }
0x11ce   : > { %3668 = vmatprep.subr.bf16.mxu1 %v4129_v10 }
0x11d1   : > { %3670 = vmatpush3.bf16.msra.mxu1 %v3669_v24 }
0x11d2   : > { %3671 = vmatprep.subr.bf16.mxu1 %v4129_v10 }
0x11d5   : > { %3673 = vmatpush3.bf16.msra.mxu1 %v3672_v27 }
0x11d6   : > { %3674 = vmatprep.subr.bf16.mxu1 %v4129_v10 }
0x11d9   : > { %3676 = vmatpush3.bf16.msra.mxu1 %v3675_v59 }
0x11da   : > { %3677 = vmatprep.subr.bf16.mxu1 %v4129_v10 }
0x11dd   : > { %3679 = vmatpush3.bf16.msra.mxu1 %v3678_v31 }
0x1293   : > { %v2795_v46 = vpop.f32.mrb[18].mxu1 }
0x1294   : > { %v2796_v47 = vadd.f32 %v3279_v45, %v2795_v46  ;;  %v3539_v21 = vpop.f32.mrb[19].mxu1 }
0x1296   : > { %v4826_v19 = vadd.f32 %v2796_v47, %v4655_v61  ;;  %v2831_v61 = vld [vmem:[#allocation10 + $0x10] sm:$0xff] }
0x1297   : > { %v3654_v60 = vpack.c.bf16 %v2832_v57, %v2831_v61 }
0x1298   : > { %v2802_v48 = vsel %vm865_vm0, %v4826_v19, 0.0 }
0x1299   : > { %2803 = vadd.xlane.f32.xlu0 %v2802_v48  ;;  %3655 = vmatpush3.bf16.msra.mxu0 %v3654_v60 }
0x1326   : > { %v2804_v49 = vpop.xlane.xlu0 %2803 }
0x1327   : > { %v2805_v50 = vmul.f32 0.03125, %v2804_v49 }
0x1329   : > { %v2806_v52 = vsub.f32 %v4826_v19, %v2805_v50 }
0x132b   : > { %v2807_v53 = vmul.f32 %v2806_v52, %v2806_v52 }
0x132d   : > { %v2808_v13 = vsel %vm865_vm0, %v2807_v53, 0.0 }
0x132e   : > { %2809 = vadd.xlane.f32.xlu1 %v2808_v13 }
0x13bb   : > { %v2810_v8 = vpop.xlane.xlu1 %2809 }
0x13bc   : > { %v2811_v9 = vmul.f32 0.03125, %v2810_v8 }
0x13be   : > { %v2812_v0 = vadd.f32 1e-05, %v2811_v9 }
0x13c0   : > { %3862 = vrsqrt.f32 %v2812_v0 }
0x13ca   : > { %v3863_v11 = vpop.eup %3862 }
0x13cb   : > { %v2814_v14 = vmul.f32 %v3863_v11, %v2806_v52 }
0x13cd   : > { %v2821_v16 = vmul.f32 %v3281_v12, %v2814_v14 }
0x13cf   : > { %v2828_v17 = vadd.f32 %v3282_v15, %v2821_v16 }
0x13d1   : > { %3549 = vmatmul.mubr.msk.f32.vlgmr.msra.gmra.mrb[22].mxu0 %vm865_vm0, %v2828_v17 }
0x14a4   : > { %v2909_v33 = vpop.f32.mrb[22].mxu0 }
0x14a5   : > { %v2910_v34 = vadd.f32 %v3283_v32, %v2909_v33  ;;  %v3550_v10 = vpop.f32.mrb[23].mxu0 }
0x14a7   : > { %v2914_v35 = vmul.f32 0.70710677, %v2910_v34  ;;  %v2913_v37 = vmul.f32 0.5, %v2910_v34 }
0x14a9   : > { %3864 = verf.f32 %v2914_v35 }
0x14b3   : > { %v3865_v36 = vpop.eup %3864 }
0x14b4   : > { %v2916_v38 = vadd.f32 1.0, %v3865_v36 }
0x14b6   : > { %v2917_v39 = vmul.f32 %v2916_v38, %v2913_v37 }
0x14b8   : > { %3584 = vmatmul.mubr.f32.vlgmr.msra.gmra.mrb[20].mxu1 %v2917_v39 }
0x14b9   : > { %4023 = shalt.err (!%p4020_p12)
}
0x14ba   : > { %s4024_s4 = scalar_lea.hbm %s4903_s1, 512  ;;  %s4028_s30 = scalar_lea.hbm %s5095_s25, 1024 }
0x14bb   : > { %p4025_p6 = scmp.ne.s32.totalorder %s4903_s1, %s4024_s4  ;;  %p4029_p4 = scmp.lt.u32.totalorder %s4903_s1, %s5095_s25 }
0x14bc   : > { %p4030_p8 = scmp.lt.u32.totalorder %s4028_s30, %s4024_s4  ;;  %p4032_p7 = scmp.lt.u32.totalorder %s4024_s4, %s4903_s1 }
0x14bd   : > { %p4026_p11 = pnand %p4025_p6, %p5096_p10 }
0x14be   : > { %p4031_p3 = por %p4030_p8, %p4029_p4 }
0x14bf   : > { %p4027_p0 = pneg %p4026_p11 }
0x14c0   : > { %p4033_p13 = por %p4032_p7, %p4031_p3 }
0x14c2   : > { %p4034_p5 = pnand %p4033_p13, %p4027_p0 }
0x14c4   : > { %4037 = shalt.err (!%p4034_p5)
}
0x14c5   : > { %s4147_s17 = smov 128   ;;  %s5097_s24 = sld [smem:[#allocation41_spill]] }
0x14c6   : > { %3697 = dma.vmem_to_hbm [thread:$0]  (%p5096_p10), %s4905_s2, 512, %s4903_s1, %s3019_s5, %s4147_s17, %s4147_s17, %s5087_s20  }
0x14c7   : > { %s3288_s4 = sshll.u32 %s4295_s6, 7  ;;  %s849_s29 = scalar_lea.vmem [#allocation11], %s4489_s27 }
0x14c8   : > { %s3032_s30 = sshll.u32 %s849_s29, 4  ;;  %s5098_s0 = sld [smem:[#allocation42_spill]]  ;;  %s4943_s30 = int_to_ptr.vmem [resolvable:$true] %s3032_s30 }
0x14c9   : > { %s3014_s20 = scalar_lea.sflag [#allocation4], %s4486_s19  ;;  %s4038_s6 = scalar_lea.vmem %s4943_s30, 128 }
0x14ca   : > { %p4039_p9 = scmp.ne.s32.totalorder %s4943_s30, %s4038_s6  ;;  %s4148_s27 = smov [#allocation11]  }
0x14cb   : > { %v3285_v40 = vld [vmem:[%s5097_s24] ss:$0 sm:$0xff]  ;;  %s4042_s2 = sshll.u32 %s4148_s27, 4  ;;  %s4043_s2 = int_to_ptr.vmem [resolvable:$false] %s4042_s2 }
0x14cc   : > { %p4040_p1 = pnand %p4039_p9, %p5096_p10  ;;  %s4044_s1 = scalar_lea.vmem %s4043_s2, 256 }
0x14cd   : > { %p4045_p12 = scmp.lt.s32.totalorder %s4943_s30, %s4043_s2  ;;  %p4046_p6 = scmp.lt.s32.totalorder %s4044_s1, %s4038_s6 }
0x14ce   : > { %s4941_s9 = scalar_lea.hbm %s5098_s0, %s3288_s4  ;;  %p4041_p2 = pneg %p4040_p1 }
0x14cf   : > { %p4047_p11 = por %p4046_p6, %p4045_p12 }
0x14d1   : > { %p4048_p0 = pnand %p4047_p11, %p4041_p2 }
0x158b   : > { %v3007_v41 = vpop.f32.mrb[20].mxu1 }
0x158c   : > { %v3008_v42 = vadd.f32 %v3285_v40, %v3007_v41  ;;  %v3585_v43 = vpop.f32.mrb[21].mxu1 }
0x158e   : > { %v3011_v44 = vadd.f32 %v3008_v42, %v4826_v19 }
0x1590   : > { %3012 = vst.msk [vmem:[%s849_s29] sm:$0xff] %vm865_vm0, %v3011_v44 }
0x1591   : > { %4051 = shalt.err (!%p4048_p0)
}
0x1592   : > { %s4052_s19 = scalar_lea.hbm %s4941_s9, 128  ;;  %s4056_s8 = scalar_lea.hbm %s5098_s0, 256 }
0x1593   : > { %p4053_p4 = scmp.ne.s32.totalorder %s4941_s9, %s4052_s19  ;;  %p4057_p7 = scmp.lt.u32.totalorder %s4941_s9, %s5098_s0 }
0x1594   : > { %p4058_p13 = scmp.lt.u32.totalorder %s4056_s8, %s4052_s19  ;;  %p4060_p9 = scmp.lt.u32.totalorder %s4052_s19, %s4941_s9 }
0x1595   : > { %p4054_p8 = pnand %p4053_p4, %p5096_p10 }
0x1596   : > { %p4059_p5 = por %p4058_p13, %p4057_p7 }
0x1597   : > { %p4055_p3 = pneg %p4054_p8 }
0x1598   : > { %p4061_p1 = por %p4060_p9, %p4059_p5 }
0x159a   : > { %p4062_p2 = pnand %p4061_p1, %p4055_p3 }
0x159c   : > { %4065 = shalt.err (!%p4062_p2)
}
0x159d   : > { %3696 = dma.vmem_to_hbm [thread:$0]  (%p5096_p10), %s4943_s30, 128, %s4941_s9, %s3014_s20  }
0x159e PF: > { %s5099_s4 = sld [smem:[#allocation20_spill]]  ;;  %s5100_s29 = sld [smem:[#allocation22_spill]] }
0x159f   : > { %p5102_p6 = scmp.ge.s32.totalorder %s4120_s28, 2 }
0x15a4   : > { %s3060_s21 = sand.u32 1, %s5099_s4   ;;  %p5101_p12 = scmp.ne.s32.totalorder %s5100_s29, 0 }
0x15a5   : > { %s3061_s3 = scalar_lea.sflag [#allocation4], %s3060_s21 }
0x15a6   : > { %p3718_p11 = pnand %p5102_p6, %p5101_p12 }
0x15a8   : > { %4099 = dma.done.wait (!%p3718_p11), %s3061_s3, 128  }
0x15a9   : > { %4101 = vsyncadd (!%p3718_p11), %s3061_s3, 4294967168  ;;  %s3070_s6 = scalar_lea.sflag [#allocation13], %s3060_s21 }
0x15aa   : > { %4103 = dma.done.wait (!%p3718_p11), %s3070_s6, 512  }
0x15ab   : > { %4105 = vsyncadd (!%p3718_p11), %s3070_s6, 4294966784  ;;  %s5103_s28 = sld [smem:[#allocation23_spill]]  ;;  %s5104_s7 = sld [smem:[#allocation21_spill]] }
0x15ac   : > { %s5105_s27 = sld [smem:[#allocation24_spill]]  ;;  %s5106_s5 = smov %s4112_s26 }
0x15b1   : > { %p45_p10 = scmp.ge.s32.totalorder %s5103_s28, 4   ;;  %s5107_s26 = smov %s5104_s7 }
0x15b3   :  { %47 = sbr.rel (!%p45_p10) target bundleno = 29 (0x1d), region = 205 }
0x15ba   :  { %3075 = vsyncpa [#allocation3], 1 }
0x15bb   :  { %3077 = vsyncpa [#allocation3 + $0x1], 1 }
0x15bc   :  { %3078 = vsyncpa [#allocation6], 1 }
0x15bd   :  { %3080 = vsyncpa [#allocation6 + $0x1], 1 }
0x15be   :  { %3081 = vsyncpa [#allocation9], 1 }
0x15bf   :  { %3082 = vsyncpa [#allocation4], 1 }
0x15c0   :  { %3084 = vsyncpa [#allocation4 + $0x1], 1 }
0x15c1   :  { %3085 = vsyncpa [#allocation13], 1 }
0x15c2   :  { %3087 = vsyncpa [#allocation13 + $0x1], 1 }

</bundles_post_ra>
